<compile_context>
chip_gen: v7x
topology: tpu7x:2x2x1
jax: 0.10.0
libtpu: 0.0.40
codegen_flags: <defaults>
</compile_context>

<pallas_src>
import jax
import jax.numpy as jnp
from jax.experimental import pallas as pl

# ---- small config consistent with the module structure ----
VOCAB   = 65            # vocab_size (len of char set)
VPAD    = 128           # lm_head padded to a lane-dense 128 columns
N_EMB   = 64            # n_emb
N_HEAD  = 4             # n_head
HEAD    = N_EMB // N_HEAD
N_LAYER = 2             # n_layer
BLOCK   = 16            # block_size (seq length T used here)
EPS     = 1e-5          # torch.nn.LayerNorm default eps
NEG_BIG = -1e30         # finite additive mask value (no inf - inf NaN hazard)


def _layernorm(x, w, b):
    # one-pass variance: mean and mean-of-squares are independent XLU reductions
    mu = jnp.mean(x, axis=-1, keepdims=True)
    ms = jnp.mean(x * x, axis=-1, keepdims=True)
    var = ms - mu * mu
    return (x - mu) * jax.lax.rsqrt(var + EPS) * w + b


# --------------------------- fused Pallas kernel ---------------------------

def gpt_kernel(x_ref, bias_ref, ln1w_ref, ln1b_ref, wqkv_ref, wo_ref, bo_ref,
               ln2w_ref, ln2b_ref, w1_ref, b1_ref, w2_ref, b2_ref,
               wlm_ref, blm_ref, o_ref):
    x = x_ref[...]                                   # (N, E) f32 residual stream
    bias = bias_ref[...]                             # (N, N) f32 additive causal mask

    for l in range(N_LAYER):                         # static layer loop, weights VMEM-resident
        # ---- multi-head self-attention on LN1(x) ----
        xn = _layernorm(x, ln1w_ref[l], ln1b_ref[l]).astype(jnp.bfloat16)     # (N, E)
        # fused qkv projection: one lane-dense bf16 matmul, f32 accumulate
        qkv = jnp.dot(xn, wqkv_ref[l], preferred_element_type=jnp.float32)    # (N, 3E)

        head_outs = []
        for h in range(N_HEAD):                      # static, tiny head loop (2-D ops only)
            q = qkv[:, h * HEAD:(h + 1) * HEAD].astype(jnp.bfloat16)                  # (N, HD), scale pre-folded
            k = qkv[:, N_EMB + h * HEAD:N_EMB + (h + 1) * HEAD].astype(jnp.bfloat16)  # (N, HD)
            v = qkv[:, 2 * N_EMB + h * HEAD:2 * N_EMB + (h + 1) * HEAD].astype(jnp.bfloat16)

            # scores: q @ k^T via dot_general contracting the last dims (no transpose)
            s = jax.lax.dot_general(q, k, (((1,), (1,)), ((), ())),
                                    preferred_element_type=jnp.float32)       # (N, N)
            s = s + bias                                                       # additive causal mask
            s = s - jnp.max(s, axis=-1, keepdims=True)
            p = jnp.exp(s)
            p = p * pl.reciprocal(jnp.sum(p, axis=-1, keepdims=True), approx=True)

            head_outs.append(jnp.dot(p.astype(jnp.bfloat16), v,
                                     preferred_element_type=jnp.float32))     # (N, HD)

        # concat heads along lanes, single output projection (head-sum done in the MXU)
        o_cat = jnp.concatenate(head_outs, axis=-1).astype(jnp.bfloat16)      # (N, E)
        x = x + jnp.dot(o_cat, wo_ref[l], preferred_element_type=jnp.float32) + bo_ref[l]

        # ---- feed-forward on LN2(x) ----
        xn2 = _layernorm(x, ln2w_ref[l], ln2b_ref[l]).astype(jnp.bfloat16)
        h1 = jnp.dot(xn2, w1_ref[l], preferred_element_type=jnp.float32) + b1_ref[l]
        h1 = jnp.maximum(h1, 0.0).astype(jnp.bfloat16)                         # ReLU
        x = x + jnp.dot(h1, w2_ref[l], preferred_element_type=jnp.float32) + b2_ref[l]

    # ---- lm_head (vocab zero-padded to 128 lanes; gpt.forward applies no ln_f) ----
    o_ref[...] = jnp.dot(x.astype(jnp.bfloat16), wlm_ref[...],
                         preferred_element_type=jnp.float32) + blm_ref[...]


# --------------------------- wrapper ---------------------------

def gpt_forward(idx, params):
    """Full gpt forward: embedding gathers in plain JAX, everything else in one Pallas kernel."""
    B, T = idx.shape
    N = B * T
    E = N_EMB

    # token + position embeddings (plain-JAX gather glue), flattened to (B*T, E)
    x = (jnp.take(params['tok'], idx, axis=0) + params['pos'][:T][None]).reshape(N, E)
    x = x.astype(jnp.float32)

    # additive block-diagonal causal bias over the flattened batch*time axis:
    # token n may attend to token m iff same batch element and m <= n.
    r = jnp.arange(N, dtype=jnp.int32)
    allowed = (r[:, None] // T == r[None, :] // T) & (r[:, None] >= r[None, :])
    bias = jnp.where(allowed, 0.0, NEG_BIG).astype(jnp.float32)

    blocks = params['blocks']
    scale = jnp.float32(E ** -0.5)                   # PyTorch Head scales by C**-0.5, C = n_emb
    stk = lambda key: jnp.stack([blk[key] for blk in blocks])      # (L, ...) f32

    # fused qkv slab (E, 3E) per layer, attention scale folded into the q columns, bf16
    wqkv = jnp.stack([jnp.concatenate([blk['wq'] * scale, blk['wk'], blk['wv']], axis=1)
                      for blk in blocks]).astype(jnp.bfloat16)     # (L, E, 3E)
    wo = stk('wo').astype(jnp.bfloat16)                            # (L, E, E)
    w1 = stk('w1').astype(jnp.bfloat16)                            # (L, E, 4E)
    w2 = stk('w2').astype(jnp.bfloat16)                            # (L, 4E, E)

    # zero-pad lm_head to 128 output lanes for a lane-dense (unmasked) output store
    wlm_pad = jnp.zeros((E, VPAD), jnp.bfloat16).at[:, :VOCAB].set(
        params['wlm'].astype(jnp.bfloat16))
    blm_pad = jnp.zeros((1, VPAD), jnp.float32).at[:, :VOCAB].set(params['blm'])

    args = (x, bias, stk('ln1w'), stk('ln1b'), wqkv, wo, stk('bo'),
            stk('ln2w'), stk('ln2b'), w1, stk('b1'), w2, stk('b2'),
            wlm_pad, blm_pad)

    out = pl.pallas_call(
        gpt_kernel,
        out_shape=jax.ShapeDtypeStruct((N, VPAD), jnp.float32),
    )(*args)

    return out.reshape(B, T, VPAD)[:, :, :VOCAB]     # drop vocab padding


# --------------------------- params & pure-JAX reference ---------------------------

def init_params(key):
    std = 0.02
    keys = jax.random.split(key, 3 + N_LAYER)
    params = {
        'tok': jax.random.normal(keys[0], (VOCAB, N_EMB), jnp.float32) * std,
        'pos': jax.random.normal(keys[1], (BLOCK, N_EMB), jnp.float32) * std,
        'wlm': jax.random.normal(keys[2], (N_EMB, VOCAB), jnp.float32) * std,
        'blm': jnp.zeros((1, VOCAB), jnp.float32),
        'blocks': [],
    }
    for l in range(N_LAYER):
        k = jax.random.split(keys[3 + l], 6)
        params['blocks'].append({
            'ln1w': jnp.ones((1, N_EMB), jnp.float32),
            'ln1b': jnp.zeros((1, N_EMB), jnp.float32),
            'wq': jax.random.normal(k[0], (N_EMB, N_EMB), jnp.float32) * std,
            'wk': jax.random.normal(k[1], (N_EMB, N_EMB), jnp.float32) * std,
            'wv': jax.random.normal(k[2], (N_EMB, N_EMB), jnp.float32) * std,
            'wo': jax.random.normal(k[3], (N_EMB, N_EMB), jnp.float32) * std,
            'bo': jnp.zeros((1, N_EMB), jnp.float32),
            'ln2w': jnp.ones((1, N_EMB), jnp.float32),
            'ln2b': jnp.zeros((1, N_EMB), jnp.float32),
            'w1': jax.random.normal(k[4], (N_EMB, 4 * N_EMB), jnp.float32) * std,
            'b1': jnp.zeros((1, 4 * N_EMB), jnp.float32),
            'w2': jax.random.normal(k[5], (4 * N_EMB, N_EMB), jnp.float32) * std,
            'b2': jnp.zeros((1, N_EMB), jnp.float32),
        })
    return params


def gpt_reference(idx, params):
    """Pure-JAX f32 reference with the exact PyTorch forward semantics (no ln_f in forward)."""
    def ln(x, w, b):
        mu = x.mean(-1, keepdims=True)
        var = ((x - mu) ** 2).mean(-1, keepdims=True)
        return (x - mu) / jnp.sqrt(var + EPS) * w + b

    B, T = idx.shape
    x = jnp.take(params['tok'], idx, axis=0) + params['pos'][:T][None]
    causal = jnp.tril(jnp.ones((T, T), bool))
    for p in params['blocks']:
        xn = ln(x, p['ln1w'][0], p['ln1b'][0])
        q = xn @ p['wq']; k = xn @ p['wk']; v = xn @ p['wv']
        qh = q.reshape(B, T, N_HEAD, HEAD).transpose(0, 2, 1, 3)
        kh = k.reshape(B, T, N_HEAD, HEAD).transpose(0, 2, 1, 3)
        vh = v.reshape(B, T, N_HEAD, HEAD).transpose(0, 2, 1, 3)
        wei = jnp.einsum('bhqd,bhkd->bhqk', qh, kh) * (N_EMB ** -0.5)
        wei = jnp.where(causal, wei, -jnp.inf)
        wei = jax.nn.softmax(wei, axis=-1)
        o = jnp.einsum('bhqk,bhkd->bhqd', wei, vh).transpose(0, 2, 1, 3).reshape(B, T, N_EMB)
        x = x + (o @ p['wo'] + p['bo'][0])
        xn2 = ln(x, p['ln2w'][0], p['ln2b'][0])
        x = x + (jnp.maximum(xn2 @ p['w1'] + p['b1'][0], 0.0) @ p['w2'] + p['b2'][0])
    # NOTE: gpt.forward() never applies ln_f before lm_head; match that.
    return x @ params['wlm'] + params['blm'][0]


# --------------------------- main ---------------------------

if __name__ == "__main__":
    root = jax.random.PRNGKey(0)
    k_idx, k_par = jax.random.split(root)
    B, T = 2, BLOCK
    idx = jax.random.randint(k_idx, (B, T), 0, VOCAB, dtype=jnp.int32)
    params = init_params(k_par)

    logits = gpt_forward(idx, params)
    logits = jax.block_until_ready(logits)

    ref = gpt_reference(idx, params)
    assert logits.shape == (B, T, VOCAB)
    max_err = float(jnp.max(jnp.abs(logits - ref)))
    assert jnp.allclose(logits, ref, atol=2e-3, rtol=2e-3), \
        f"mismatch vs pure-JAX reference (max abs err {max_err:.2e})"
    print("KERNEL_OK")
</pallas_src>

<mosaic_0001>
module attributes {stable_mosaic.version = 11 : i64} {
  func.func @gpt_kernel(%arg0: memref<32x64xf32, #tpu.memory_space<vmem>>, %arg1: memref<32x32xf32, #tpu.memory_space<vmem>>, %arg2: memref<2x1x64xf32, #tpu.memory_space<vmem>>, %arg3: memref<2x1x64xf32, #tpu.memory_space<vmem>>, %arg4: memref<2x64x192xbf16, #tpu.memory_space<vmem>>, %arg5: memref<2x64x64xbf16, #tpu.memory_space<vmem>>, %arg6: memref<2x1x64xf32, #tpu.memory_space<vmem>>, %arg7: memref<2x1x64xf32, #tpu.memory_space<vmem>>, %arg8: memref<2x1x64xf32, #tpu.memory_space<vmem>>, %arg9: memref<2x64x256xbf16, #tpu.memory_space<vmem>>, %arg10: memref<2x1x256xf32, #tpu.memory_space<vmem>>, %arg11: memref<2x256x64xbf16, #tpu.memory_space<vmem>>, %arg12: memref<2x1x64xf32, #tpu.memory_space<vmem>>, %arg13: memref<64x128xbf16, #tpu.memory_space<vmem>>, %arg14: memref<1x128xf32, #tpu.memory_space<vmem>>, %arg15: memref<32x128xf32, #tpu.memory_space<vmem>>) attributes {dimension_semantics = [], scalar_prefetch = 0 : i64, scratch_operands = 0 : i64, tpu.core_type = #tpu.core_type<tc>} {
    %c0 = arith.constant 0 : index
    %c0_0 = arith.constant 0 : index
    %0 = vector.load %arg0[%c0, %c0_0] : memref<32x64xf32, #tpu.memory_space<vmem>>, vector<32x64xf32>
    %c0_1 = arith.constant 0 : index
    %c0_2 = arith.constant 0 : index
    %1 = vector.load %arg1[%c0_1, %c0_2] : memref<32x32xf32, #tpu.memory_space<vmem>>, vector<32x32xf32>
    %c0_3 = arith.constant 0 : index
    %c0_4 = arith.constant 0 : index
    %c0_5 = arith.constant 0 : index
    %2 = vector.load %arg2[%c0_3, %c0_4, %c0_5] : memref<2x1x64xf32, #tpu.memory_space<vmem>>, vector<1x1x64xf32>
    %3 = vector.shape_cast %2 : vector<1x1x64xf32> to vector<1x64xf32>
    %c0_6 = arith.constant 0 : index
    %c0_7 = arith.constant 0 : index
    %c0_8 = arith.constant 0 : index
    %4 = vector.load %arg3[%c0_6, %c0_7, %c0_8] : memref<2x1x64xf32, #tpu.memory_space<vmem>>, vector<1x1x64xf32>
    %5 = vector.shape_cast %4 : vector<1x1x64xf32> to vector<1x64xf32>
    %cst = arith.constant dense<0.000000e+00> : vector<32xf32>
    %6 = vector.multi_reduction <add>, %0, %cst [1] : vector<32x64xf32> to vector<32xf32>
    %7 = vector.shape_cast %6 : vector<32xf32> to vector<32x1xf32>
    %cst_9 = arith.constant 6.400000e+01 : f32
    %8 = vector.broadcast %cst_9 : f32 to vector<32x1xf32>
    %9 = arith.divf %7, %8 : vector<32x1xf32>
    %10 = arith.mulf %0, %0 : vector<32x64xf32>
    %cst_10 = arith.constant dense<0.000000e+00> : vector<32xf32>
    %11 = vector.multi_reduction <add>, %10, %cst_10 [1] : vector<32x64xf32> to vector<32xf32>
    %12 = vector.shape_cast %11 : vector<32xf32> to vector<32x1xf32>
    %cst_11 = arith.constant 6.400000e+01 : f32
    %13 = vector.broadcast %cst_11 : f32 to vector<32x1xf32>
    %14 = arith.divf %12, %13 : vector<32x1xf32>
    %15 = arith.mulf %9, %9 : vector<32x1xf32>
    %16 = arith.subf %14, %15 : vector<32x1xf32>
    %17 = vector.broadcast %9 : vector<32x1xf32> to vector<32x64xf32>
    %18 = arith.subf %0, %17 : vector<32x64xf32>
    %cst_12 = arith.constant 9.99999974E-6 : f32
    %19 = vector.broadcast %cst_12 : f32 to vector<32x1xf32>
    %20 = arith.addf %16, %19 : vector<32x1xf32>
    %21 = math.rsqrt %20 : vector<32x1xf32>
    %22 = vector.broadcast %21 : vector<32x1xf32> to vector<32x64xf32>
    %23 = arith.mulf %18, %22 : vector<32x64xf32>
    %24 = vector.broadcast %3 : vector<1x64xf32> to vector<32x64xf32>
    %25 = arith.mulf %23, %24 : vector<32x64xf32>
    %26 = vector.broadcast %5 : vector<1x64xf32> to vector<32x64xf32>
    %27 = arith.addf %25, %26 : vector<32x64xf32>
    %28 = arith.truncf %27 : vector<32x64xf32> to vector<32x64xbf16>
    %c0_13 = arith.constant 0 : index
    %c0_14 = arith.constant 0 : index
    %c0_15 = arith.constant 0 : index
    %29 = vector.load %arg4[%c0_13, %c0_14, %c0_15] : memref<2x64x192xbf16, #tpu.memory_space<vmem>>, vector<1x64x192xbf16>
    %30 = vector.shape_cast %29 : vector<1x64x192xbf16> to vector<64x192xbf16>
    %cst_16 = arith.constant dense<0.000000e+00> : vector<32x192xf32>
    %31 = tpu.matmul %28, %30, %cst_16 {dimension_numbers = #tpu.dot_dimension_numbers<[1], [0], [0], [1], [0, 0, 1, 1], [], []>} : vector<32x64xbf16>, vector<64x192xbf16>, vector<32x192xf32> -> vector<32x192xf32>
    %32 = vector.extract_strided_slice %31 {offsets = [0, 0], sizes = [32, 16], strides = [1, 1]} : vector<32x192xf32> to vector<32x16xf32>
    %33 = arith.truncf %32 : vector<32x16xf32> to vector<32x16xbf16>
    %34 = vector.extract_strided_slice %31 {offsets = [0, 64], sizes = [32, 16], strides = [1, 1]} : vector<32x192xf32> to vector<32x16xf32>
    %35 = arith.truncf %34 : vector<32x16xf32> to vector<32x16xbf16>
    %36 = vector.extract_strided_slice %31 {offsets = [0, 128], sizes = [32, 16], strides = [1, 1]} : vector<32x192xf32> to vector<32x16xf32>
    %37 = arith.truncf %36 : vector<32x16xf32> to vector<32x16xbf16>
    %cst_17 = arith.constant dense<0.000000e+00> : vector<32x32xf32>
    %38 = tpu.matmul %33, %35, %cst_17 {dimension_numbers = #tpu.dot_dimension_numbers<[1], [1], [0], [0], [0, 0, 1, 0], [], []>} : vector<32x16xbf16>, vector<32x16xbf16>, vector<32x32xf32> -> vector<32x32xf32>
    %39 = arith.addf %38, %1 : vector<32x32xf32>
    %cst_18 = arith.constant dense<0xFF800000> : vector<32xf32>
    %40 = vector.multi_reduction <maximumf>, %39, %cst_18 [1] : vector<32x32xf32> to vector<32xf32>
    %41 = vector.shape_cast %40 : vector<32xf32> to vector<32x1xf32>
    %42 = vector.broadcast %41 : vector<32x1xf32> to vector<32x32xf32>
    %43 = arith.subf %39, %42 : vector<32x32xf32>
    %44 = math.exp %43 : vector<32x32xf32>
    %cst_19 = arith.constant dense<0.000000e+00> : vector<32xf32>
    %45 = vector.multi_reduction <add>, %44, %cst_19 [1] : vector<32x32xf32> to vector<32xf32>
    %46 = vector.shape_cast %45 : vector<32xf32> to vector<32x1xf32>
    %47 = tpu.reciprocal %46 {approx = true} : vector<32x1xf32> -> vector<32x1xf32>
    %48 = vector.broadcast %47 : vector<32x1xf32> to vector<32x32xf32>
    %49 = arith.mulf %44, %48 : vector<32x32xf32>
    %50 = arith.truncf %49 : vector<32x32xf32> to vector<32x32xbf16>
    %cst_20 = arith.constant dense<0.000000e+00> : vector<32x16xf32>
    %51 = tpu.matmul %50, %37, %cst_20 {dimension_numbers = #tpu.dot_dimension_numbers<[1], [0], [0], [1], [0, 0, 1, 1], [], []>} : vector<32x32xbf16>, vector<32x16xbf16>, vector<32x16xf32> -> vector<32x16xf32>
    %52 = vector.extract_strided_slice %31 {offsets = [0, 16], sizes = [32, 16], strides = [1, 1]} : vector<32x192xf32> to vector<32x16xf32>
    %53 = arith.truncf %52 : vector<32x16xf32> to vector<32x16xbf16>
    %54 = vector.extract_strided_slice %31 {offsets = [0, 80], sizes = [32, 16], strides = [1, 1]} : vector<32x192xf32> to vector<32x16xf32>
    %55 = arith.truncf %54 : vector<32x16xf32> to vector<32x16xbf16>
    %56 = vector.extract_strided_slice %31 {offsets = [0, 144], sizes = [32, 16], strides = [1, 1]} : vector<32x192xf32> to vector<32x16xf32>
    %57 = arith.truncf %56 : vector<32x16xf32> to vector<32x16xbf16>
    %cst_21 = arith.constant dense<0.000000e+00> : vector<32x32xf32>
    %58 = tpu.matmul %53, %55, %cst_21 {dimension_numbers = #tpu.dot_dimension_numbers<[1], [1], [0], [0], [0, 0, 1, 0], [], []>} : vector<32x16xbf16>, vector<32x16xbf16>, vector<32x32xf32> -> vector<32x32xf32>
    %59 = arith.addf %58, %1 : vector<32x32xf32>
    %cst_22 = arith.constant dense<0xFF800000> : vector<32xf32>
    %60 = vector.multi_reduction <maximumf>, %59, %cst_22 [1] : vector<32x32xf32> to vector<32xf32>
    %61 = vector.shape_cast %60 : vector<32xf32> to vector<32x1xf32>
    %62 = vector.broadcast %61 : vector<32x1xf32> to vector<32x32xf32>
    %63 = arith.subf %59, %62 : vector<32x32xf32>
    %64 = math.exp %63 : vector<32x32xf32>
    %cst_23 = arith.constant dense<0.000000e+00> : vector<32xf32>
    %65 = vector.multi_reduction <add>, %64, %cst_23 [1] : vector<32x32xf32> to vector<32xf32>
    %66 = vector.shape_cast %65 : vector<32xf32> to vector<32x1xf32>
    %67 = tpu.reciprocal %66 {approx = true} : vector<32x1xf32> -> vector<32x1xf32>
    %68 = vector.broadcast %67 : vector<32x1xf32> to vector<32x32xf32>
    %69 = arith.mulf %64, %68 : vector<32x32xf32>
    %70 = arith.truncf %69 : vector<32x32xf32> to vector<32x32xbf16>
    %cst_24 = arith.constant dense<0.000000e+00> : vector<32x16xf32>
    %71 = tpu.matmul %70, %57, %cst_24 {dimension_numbers = #tpu.dot_dimension_numbers<[1], [0], [0], [1], [0, 0, 1, 1], [], []>} : vector<32x32xbf16>, vector<32x16xbf16>, vector<32x16xf32> -> vector<32x16xf32>
    %72 = vector.extract_strided_slice %31 {offsets = [0, 32], sizes = [32, 16], strides = [1, 1]} : vector<32x192xf32> to vector<32x16xf32>
    %73 = arith.truncf %72 : vector<32x16xf32> to vector<32x16xbf16>
    %74 = vector.extract_strided_slice %31 {offsets = [0, 96], sizes = [32, 16], strides = [1, 1]} : vector<32x192xf32> to vector<32x16xf32>
    %75 = arith.truncf %74 : vector<32x16xf32> to vector<32x16xbf16>
    %76 = vector.extract_strided_slice %31 {offsets = [0, 160], sizes = [32, 16], strides = [1, 1]} : vector<32x192xf32> to vector<32x16xf32>
    %77 = arith.truncf %76 : vector<32x16xf32> to vector<32x16xbf16>
    %cst_25 = arith.constant dense<0.000000e+00> : vector<32x32xf32>
    %78 = tpu.matmul %73, %75, %cst_25 {dimension_numbers = #tpu.dot_dimension_numbers<[1], [1], [0], [0], [0, 0, 1, 0], [], []>} : vector<32x16xbf16>, vector<32x16xbf16>, vector<32x32xf32> -> vector<32x32xf32>
    %79 = arith.addf %78, %1 : vector<32x32xf32>
    %cst_26 = arith.constant dense<0xFF800000> : vector<32xf32>
    %80 = vector.multi_reduction <maximumf>, %79, %cst_26 [1] : vector<32x32xf32> to vector<32xf32>
    %81 = vector.shape_cast %80 : vector<32xf32> to vector<32x1xf32>
    %82 = vector.broadcast %81 : vector<32x1xf32> to vector<32x32xf32>
    %83 = arith.subf %79, %82 : vector<32x32xf32>
    %84 = math.exp %83 : vector<32x32xf32>
    %cst_27 = arith.constant dense<0.000000e+00> : vector<32xf32>
    %85 = vector.multi_reduction <add>, %84, %cst_27 [1] : vector<32x32xf32> to vector<32xf32>
    %86 = vector.shape_cast %85 : vector<32xf32> to vector<32x1xf32>
    %87 = tpu.reciprocal %86 {approx = true} : vector<32x1xf32> -> vector<32x1xf32>
    %88 = vector.broadcast %87 : vector<32x1xf32> to vector<32x32xf32>
    %89 = arith.mulf %84, %88 : vector<32x32xf32>
    %90 = arith.truncf %89 : vector<32x32xf32> to vector<32x32xbf16>
    %cst_28 = arith.constant dense<0.000000e+00> : vector<32x16xf32>
    %91 = tpu.matmul %90, %77, %cst_28 {dimension_numbers = #tpu.dot_dimension_numbers<[1], [0], [0], [1], [0, 0, 1, 1], [], []>} : vector<32x32xbf16>, vector<32x16xbf16>, vector<32x16xf32> -> vector<32x16xf32>
    %92 = vector.extract_strided_slice %31 {offsets = [0, 48], sizes = [32, 16], strides = [1, 1]} : vector<32x192xf32> to vector<32x16xf32>
    %93 = arith.truncf %92 : vector<32x16xf32> to vector<32x16xbf16>
    %94 = vector.extract_strided_slice %31 {offsets = [0, 112], sizes = [32, 16], strides = [1, 1]} : vector<32x192xf32> to vector<32x16xf32>
    %95 = arith.truncf %94 : vector<32x16xf32> to vector<32x16xbf16>
    %96 = vector.extract_strided_slice %31 {offsets = [0, 176], sizes = [32, 16], strides = [1, 1]} : vector<32x192xf32> to vector<32x16xf32>
    %97 = arith.truncf %96 : vector<32x16xf32> to vector<32x16xbf16>
    %cst_29 = arith.constant dense<0.000000e+00> : vector<32x32xf32>
    %98 = tpu.matmul %93, %95, %cst_29 {dimension_numbers = #tpu.dot_dimension_numbers<[1], [1], [0], [0], [0, 0, 1, 0], [], []>} : vector<32x16xbf16>, vector<32x16xbf16>, vector<32x32xf32> -> vector<32x32xf32>
    %99 = arith.addf %98, %1 : vector<32x32xf32>
    %cst_30 = arith.constant dense<0xFF800000> : vector<32xf32>
    %100 = vector.multi_reduction <maximumf>, %99, %cst_30 [1] : vector<32x32xf32> to vector<32xf32>
    %101 = vector.shape_cast %100 : vector<32xf32> to vector<32x1xf32>
    %102 = vector.broadcast %101 : vector<32x1xf32> to vector<32x32xf32>
    %103 = arith.subf %99, %102 : vector<32x32xf32>
    %104 = math.exp %103 : vector<32x32xf32>
    %cst_31 = arith.constant dense<0.000000e+00> : vector<32xf32>
    %105 = vector.multi_reduction <add>, %104, %cst_31 [1] : vector<32x32xf32> to vector<32xf32>
    %106 = vector.shape_cast %105 : vector<32xf32> to vector<32x1xf32>
    %107 = tpu.reciprocal %106 {approx = true} : vector<32x1xf32> -> vector<32x1xf32>
    %108 = vector.broadcast %107 : vector<32x1xf32> to vector<32x32xf32>
    %109 = arith.mulf %104, %108 : vector<32x32xf32>
    %110 = arith.truncf %109 : vector<32x32xf32> to vector<32x32xbf16>
    %cst_32 = arith.constant dense<0.000000e+00> : vector<32x16xf32>
    %111 = tpu.matmul %110, %97, %cst_32 {dimension_numbers = #tpu.dot_dimension_numbers<[1], [0], [0], [1], [0, 0, 1, 1], [], []>} : vector<32x32xbf16>, vector<32x16xbf16>, vector<32x16xf32> -> vector<32x16xf32>
    %112 = tpu.concatenate %51, %71, %91, %111 in 1 : vector<32x16xf32>, vector<32x16xf32>, vector<32x16xf32>, vector<32x16xf32> -> vector<32x64xf32>
    %113 = arith.truncf %112 : vector<32x64xf32> to vector<32x64xbf16>
    %c0_33 = arith.constant 0 : index
    %c0_34 = arith.constant 0 : index
    %c0_35 = arith.constant 0 : index
    %114 = vector.load %arg5[%c0_33, %c0_34, %c0_35] : memref<2x64x64xbf16, #tpu.memory_space<vmem>>, vector<1x64x64xbf16>
    %115 = vector.shape_cast %114 : vector<1x64x64xbf16> to vector<64x64xbf16>
    %cst_36 = arith.constant dense<0.000000e+00> : vector<32x64xf32>
    %116 = tpu.matmul %113, %115, %cst_36 {dimension_numbers = #tpu.dot_dimension_numbers<[1], [0], [0], [1], [0, 0, 1, 1], [], []>} : vector<32x64xbf16>, vector<64x64xbf16>, vector<32x64xf32> -> vector<32x64xf32>
    %117 = arith.addf %0, %116 : vector<32x64xf32>
    %c0_37 = arith.constant 0 : index
    %c0_38 = arith.constant 0 : index
    %c0_39 = arith.constant 0 : index
    %118 = vector.load %arg6[%c0_37, %c0_38, %c0_39] : memref<2x1x64xf32, #tpu.memory_space<vmem>>, vector<1x1x64xf32>
    %119 = vector.shape_cast %118 : vector<1x1x64xf32> to vector<1x64xf32>
    %120 = vector.broadcast %119 : vector<1x64xf32> to vector<32x64xf32>
    %121 = arith.addf %117, %120 : vector<32x64xf32>
    %c0_40 = arith.constant 0 : index
    %c0_41 = arith.constant 0 : index
    %c0_42 = arith.constant 0 : index
    %122 = vector.load %arg7[%c0_40, %c0_41, %c0_42] : memref<2x1x64xf32, #tpu.memory_space<vmem>>, vector<1x1x64xf32>
    %123 = vector.shape_cast %122 : vector<1x1x64xf32> to vector<1x64xf32>
    %c0_43 = arith.constant 0 : index
    %c0_44 = arith.constant 0 : index
    %c0_45 = arith.constant 0 : index
    %124 = vector.load %arg8[%c0_43, %c0_44, %c0_45] : memref<2x1x64xf32, #tpu.memory_space<vmem>>, vector<1x1x64xf32>
    %125 = vector.shape_cast %124 : vector<1x1x64xf32> to vector<1x64xf32>
    %cst_46 = arith.constant dense<0.000000e+00> : vector<32xf32>
    %126 = vector.multi_reduction <add>, %121, %cst_46 [1] : vector<32x64xf32> to vector<32xf32>
    %127 = vector.shape_cast %126 : vector<32xf32> to vector<32x1xf32>
    %cst_47 = arith.constant 6.400000e+01 : f32
    %128 = vector.broadcast %cst_47 : f32 to vector<32x1xf32>
    %129 = arith.divf %127, %128 : vector<32x1xf32>
    %130 = arith.mulf %121, %121 : vector<32x64xf32>
    %cst_48 = arith.constant dense<0.000000e+00> : vector<32xf32>
    %131 = vector.multi_reduction <add>, %130, %cst_48 [1] : vector<32x64xf32> to vector<32xf32>
    %132 = vector.shape_cast %131 : vector<32xf32> to vector<32x1xf32>
    %cst_49 = arith.constant 6.400000e+01 : f32
    %133 = vector.broadcast %cst_49 : f32 to vector<32x1xf32>
    %134 = arith.divf %132, %133 : vector<32x1xf32>
    %135 = arith.mulf %129, %129 : vector<32x1xf32>
    %136 = arith.subf %134, %135 : vector<32x1xf32>
    %137 = vector.broadcast %129 : vector<32x1xf32> to vector<32x64xf32>
    %138 = arith.subf %121, %137 : vector<32x64xf32>
    %cst_50 = arith.constant 9.99999974E-6 : f32
    %139 = vector.broadcast %cst_50 : f32 to vector<32x1xf32>
    %140 = arith.addf %136, %139 : vector<32x1xf32>
    %141 = math.rsqrt %140 : vector<32x1xf32>
    %142 = vector.broadcast %141 : vector<32x1xf32> to vector<32x64xf32>
    %143 = arith.mulf %138, %142 : vector<32x64xf32>
    %144 = vector.broadcast %123 : vector<1x64xf32> to vector<32x64xf32>
    %145 = arith.mulf %143, %144 : vector<32x64xf32>
    %146 = vector.broadcast %125 : vector<1x64xf32> to vector<32x64xf32>
    %147 = arith.addf %145, %146 : vector<32x64xf32>
    %148 = arith.truncf %147 : vector<32x64xf32> to vector<32x64xbf16>
    %c0_51 = arith.constant 0 : index
    %c0_52 = arith.constant 0 : index
    %c0_53 = arith.constant 0 : index
    %149 = vector.load %arg9[%c0_51, %c0_52, %c0_53] : memref<2x64x256xbf16, #tpu.memory_space<vmem>>, vector<1x64x256xbf16>
    %150 = vector.shape_cast %149 : vector<1x64x256xbf16> to vector<64x256xbf16>
    %cst_54 = arith.constant dense<0.000000e+00> : vector<32x256xf32>
    %151 = tpu.matmul %148, %150, %cst_54 {dimension_numbers = #tpu.dot_dimension_numbers<[1], [0], [0], [1], [0, 0, 1, 1], [], []>} : vector<32x64xbf16>, vector<64x256xbf16>, vector<32x256xf32> -> vector<32x256xf32>
    %c0_55 = arith.constant 0 : index
    %c0_56 = arith.constant 0 : index
    %c0_57 = arith.constant 0 : index
    %152 = vector.load %arg10[%c0_55, %c0_56, %c0_57] : memref<2x1x256xf32, #tpu.memory_space<vmem>>, vector<1x1x256xf32>
    %153 = vector.shape_cast %152 : vector<1x1x256xf32> to vector<1x256xf32>
    %154 = vector.broadcast %153 : vector<1x256xf32> to vector<32x256xf32>
    %155 = arith.addf %151, %154 : vector<32x256xf32>
    %cst_58 = arith.constant 0.000000e+00 : f32
    %156 = vector.broadcast %cst_58 : f32 to vector<32x256xf32>
    %157 = arith.maximumf %155, %156 : vector<32x256xf32>
    %158 = arith.truncf %157 : vector<32x256xf32> to vector<32x256xbf16>
    %c0_59 = arith.constant 0 : index
    %c0_60 = arith.constant 0 : index
    %c0_61 = arith.constant 0 : index
    %159 = vector.load %arg11[%c0_59, %c0_60, %c0_61] : memref<2x256x64xbf16, #tpu.memory_space<vmem>>, vector<1x256x64xbf16>
    %160 = vector.shape_cast %159 : vector<1x256x64xbf16> to vector<256x64xbf16>
    %cst_62 = arith.constant dense<0.000000e+00> : vector<32x64xf32>
    %161 = tpu.matmul %158, %160, %cst_62 {dimension_numbers = #tpu.dot_dimension_numbers<[1], [0], [0], [1], [0, 0, 1, 1], [], []>} : vector<32x256xbf16>, vector<256x64xbf16>, vector<32x64xf32> -> vector<32x64xf32>
    %162 = arith.addf %121, %161 : vector<32x64xf32>
    %c0_63 = arith.constant 0 : index
    %c0_64 = arith.constant 0 : index
    %c0_65 = arith.constant 0 : index
    %163 = vector.load %arg12[%c0_63, %c0_64, %c0_65] : memref<2x1x64xf32, #tpu.memory_space<vmem>>, vector<1x1x64xf32>
    %164 = vector.shape_cast %163 : vector<1x1x64xf32> to vector<1x64xf32>
    %165 = vector.broadcast %164 : vector<1x64xf32> to vector<32x64xf32>
    %166 = arith.addf %162, %165 : vector<32x64xf32>
    %c1 = arith.constant 1 : index
    %c0_66 = arith.constant 0 : index
    %c0_67 = arith.constant 0 : index
    %167 = vector.load %arg2[%c1, %c0_66, %c0_67] : memref<2x1x64xf32, #tpu.memory_space<vmem>>, vector<1x1x64xf32>
    %168 = vector.shape_cast %167 : vector<1x1x64xf32> to vector<1x64xf32>
    %c1_68 = arith.constant 1 : index
    %c0_69 = arith.constant 0 : index
    %c0_70 = arith.constant 0 : index
    %169 = vector.load %arg3[%c1_68, %c0_69, %c0_70] : memref<2x1x64xf32, #tpu.memory_space<vmem>>, vector<1x1x64xf32>
    %170 = vector.shape_cast %169 : vector<1x1x64xf32> to vector<1x64xf32>
    %cst_71 = arith.constant dense<0.000000e+00> : vector<32xf32>
    %171 = vector.multi_reduction <add>, %166, %cst_71 [1] : vector<32x64xf32> to vector<32xf32>
    %172 = vector.shape_cast %171 : vector<32xf32> to vector<32x1xf32>
    %cst_72 = arith.constant 6.400000e+01 : f32
    %173 = vector.broadcast %cst_72 : f32 to vector<32x1xf32>
    %174 = arith.divf %172, %173 : vector<32x1xf32>
    %175 = arith.mulf %166, %166 : vector<32x64xf32>
    %cst_73 = arith.constant dense<0.000000e+00> : vector<32xf32>
    %176 = vector.multi_reduction <add>, %175, %cst_73 [1] : vector<32x64xf32> to vector<32xf32>
    %177 = vector.shape_cast %176 : vector<32xf32> to vector<32x1xf32>
    %cst_74 = arith.constant 6.400000e+01 : f32
    %178 = vector.broadcast %cst_74 : f32 to vector<32x1xf32>
    %179 = arith.divf %177, %178 : vector<32x1xf32>
    %180 = arith.mulf %174, %174 : vector<32x1xf32>
    %181 = arith.subf %179, %180 : vector<32x1xf32>
    %182 = vector.broadcast %174 : vector<32x1xf32> to vector<32x64xf32>
    %183 = arith.subf %166, %182 : vector<32x64xf32>
    %cst_75 = arith.constant 9.99999974E-6 : f32
    %184 = vector.broadcast %cst_75 : f32 to vector<32x1xf32>
    %185 = arith.addf %181, %184 : vector<32x1xf32>
    %186 = math.rsqrt %185 : vector<32x1xf32>
    %187 = vector.broadcast %186 : vector<32x1xf32> to vector<32x64xf32>
    %188 = arith.mulf %183, %187 : vector<32x64xf32>
    %189 = vector.broadcast %168 : vector<1x64xf32> to vector<32x64xf32>
    %190 = arith.mulf %188, %189 : vector<32x64xf32>
    %191 = vector.broadcast %170 : vector<1x64xf32> to vector<32x64xf32>
    %192 = arith.addf %190, %191 : vector<32x64xf32>
    %193 = arith.truncf %192 : vector<32x64xf32> to vector<32x64xbf16>
    %c1_76 = arith.constant 1 : index
    %c0_77 = arith.constant 0 : index
    %c0_78 = arith.constant 0 : index
    %194 = vector.load %arg4[%c1_76, %c0_77, %c0_78] : memref<2x64x192xbf16, #tpu.memory_space<vmem>>, vector<1x64x192xbf16>
    %195 = vector.shape_cast %194 : vector<1x64x192xbf16> to vector<64x192xbf16>
    %cst_79 = arith.constant dense<0.000000e+00> : vector<32x192xf32>
    %196 = tpu.matmul %193, %195, %cst_79 {dimension_numbers = #tpu.dot_dimension_numbers<[1], [0], [0], [1], [0, 0, 1, 1], [], []>} : vector<32x64xbf16>, vector<64x192xbf16>, vector<32x192xf32> -> vector<32x192xf32>
    %197 = vector.extract_strided_slice %196 {offsets = [0, 0], sizes = [32, 16], strides = [1, 1]} : vector<32x192xf32> to vector<32x16xf32>
    %198 = arith.truncf %197 : vector<32x16xf32> to vector<32x16xbf16>
    %199 = vector.extract_strided_slice %196 {offsets = [0, 64], sizes = [32, 16], strides = [1, 1]} : vector<32x192xf32> to vector<32x16xf32>
    %200 = arith.truncf %199 : vector<32x16xf32> to vector<32x16xbf16>
    %201 = vector.extract_strided_slice %196 {offsets = [0, 128], sizes = [32, 16], strides = [1, 1]} : vector<32x192xf32> to vector<32x16xf32>
    %202 = arith.truncf %201 : vector<32x16xf32> to vector<32x16xbf16>
    %cst_80 = arith.constant dense<0.000000e+00> : vector<32x32xf32>
    %203 = tpu.matmul %198, %200, %cst_80 {dimension_numbers = #tpu.dot_dimension_numbers<[1], [1], [0], [0], [0, 0, 1, 0], [], []>} : vector<32x16xbf16>, vector<32x16xbf16>, vector<32x32xf32> -> vector<32x32xf32>
    %204 = arith.addf %203, %1 : vector<32x32xf32>
    %cst_81 = arith.constant dense<0xFF800000> : vector<32xf32>
    %205 = vector.multi_reduction <maximumf>, %204, %cst_81 [1] : vector<32x32xf32> to vector<32xf32>
    %206 = vector.shape_cast %205 : vector<32xf32> to vector<32x1xf32>
    %207 = vector.broadcast %206 : vector<32x1xf32> to vector<32x32xf32>
    %208 = arith.subf %204, %207 : vector<32x32xf32>
    %209 = math.exp %208 : vector<32x32xf32>
    %cst_82 = arith.constant dense<0.000000e+00> : vector<32xf32>
    %210 = vector.multi_reduction <add>, %209, %cst_82 [1] : vector<32x32xf32> to vector<32xf32>
    %211 = vector.shape_cast %210 : vector<32xf32> to vector<32x1xf32>
    %212 = tpu.reciprocal %211 {approx = true} : vector<32x1xf32> -> vector<32x1xf32>
    %213 = vector.broadcast %212 : vector<32x1xf32> to vector<32x32xf32>
    %214 = arith.mulf %209, %213 : vector<32x32xf32>
    %215 = arith.truncf %214 : vector<32x32xf32> to vector<32x32xbf16>
    %cst_83 = arith.constant dense<0.000000e+00> : vector<32x16xf32>
    %216 = tpu.matmul %215, %202, %cst_83 {dimension_numbers = #tpu.dot_dimension_numbers<[1], [0], [0], [1], [0, 0, 1, 1], [], []>} : vector<32x32xbf16>, vector<32x16xbf16>, vector<32x16xf32> -> vector<32x16xf32>
    %217 = vector.extract_strided_slice %196 {offsets = [0, 16], sizes = [32, 16], strides = [1, 1]} : vector<32x192xf32> to vector<32x16xf32>
    %218 = arith.truncf %217 : vector<32x16xf32> to vector<32x16xbf16>
    %219 = vector.extract_strided_slice %196 {offsets = [0, 80], sizes = [32, 16], strides = [1, 1]} : vector<32x192xf32> to vector<32x16xf32>
    %220 = arith.truncf %219 : vector<32x16xf32> to vector<32x16xbf16>
    %221 = vector.extract_strided_slice %196 {offsets = [0, 144], sizes = [32, 16], strides = [1, 1]} : vector<32x192xf32> to vector<32x16xf32>
    %222 = arith.truncf %221 : vector<32x16xf32> to vector<32x16xbf16>
    %cst_84 = arith.constant dense<0.000000e+00> : vector<32x32xf32>
    %223 = tpu.matmul %218, %220, %cst_84 {dimension_numbers = #tpu.dot_dimension_numbers<[1], [1], [0], [0], [0, 0, 1, 0], [], []>} : vector<32x16xbf16>, vector<32x16xbf16>, vector<32x32xf32> -> vector<32x32xf32>
    %224 = arith.addf %223, %1 : vector<32x32xf32>
    %cst_85 = arith.constant dense<0xFF800000> : vector<32xf32>
    %225 = vector.multi_reduction <maximumf>, %224, %cst_85 [1] : vector<32x32xf32> to vector<32xf32>
    %226 = vector.shape_cast %225 : vector<32xf32> to vector<32x1xf32>
    %227 = vector.broadcast %226 : vector<32x1xf32> to vector<32x32xf32>
    %228 = arith.subf %224, %227 : vector<32x32xf32>
    %229 = math.exp %228 : vector<32x32xf32>
    %cst_86 = arith.constant dense<0.000000e+00> : vector<32xf32>
    %230 = vector.multi_reduction <add>, %229, %cst_86 [1] : vector<32x32xf32> to vector<32xf32>
    %231 = vector.shape_cast %230 : vector<32xf32> to vector<32x1xf32>
    %232 = tpu.reciprocal %231 {approx = true} : vector<32x1xf32> -> vector<32x1xf32>
    %233 = vector.broadcast %232 : vector<32x1xf32> to vector<32x32xf32>
    %234 = arith.mulf %229, %233 : vector<32x32xf32>
    %235 = arith.truncf %234 : vector<32x32xf32> to vector<32x32xbf16>
    %cst_87 = arith.constant dense<0.000000e+00> : vector<32x16xf32>
    %236 = tpu.matmul %235, %222, %cst_87 {dimension_numbers = #tpu.dot_dimension_numbers<[1], [0], [0], [1], [0, 0, 1, 1], [], []>} : vector<32x32xbf16>, vector<32x16xbf16>, vector<32x16xf32> -> vector<32x16xf32>
    %237 = vector.extract_strided_slice %196 {offsets = [0, 32], sizes = [32, 16], strides = [1, 1]} : vector<32x192xf32> to vector<32x16xf32>
    %238 = arith.truncf %237 : vector<32x16xf32> to vector<32x16xbf16>
    %239 = vector.extract_strided_slice %196 {offsets = [0, 96], sizes = [32, 16], strides = [1, 1]} : vector<32x192xf32> to vector<32x16xf32>
    %240 = arith.truncf %239 : vector<32x16xf32> to vector<32x16xbf16>
    %241 = vector.extract_strided_slice %196 {offsets = [0, 160], sizes = [32, 16], strides = [1, 1]} : vector<32x192xf32> to vector<32x16xf32>
    %242 = arith.truncf %241 : vector<32x16xf32> to vector<32x16xbf16>
    %cst_88 = arith.constant dense<0.000000e+00> : vector<32x32xf32>
    %243 = tpu.matmul %238, %240, %cst_88 {dimension_numbers = #tpu.dot_dimension_numbers<[1], [1], [0], [0], [0, 0, 1, 0], [], []>} : vector<32x16xbf16>, vector<32x16xbf16>, vector<32x32xf32> -> vector<32x32xf32>
    %244 = arith.addf %243, %1 : vector<32x32xf32>
    %cst_89 = arith.constant dense<0xFF800000> : vector<32xf32>
    %245 = vector.multi_reduction <maximumf>, %244, %cst_89 [1] : vector<32x32xf32> to vector<32xf32>
    %246 = vector.shape_cast %245 : vector<32xf32> to vector<32x1xf32>
    %247 = vector.broadcast %246 : vector<32x1xf32> to vector<32x32xf32>
    %248 = arith.subf %244, %247 : vector<32x32xf32>
    %249 = math.exp %248 : vector<32x32xf32>
    %cst_90 = arith.constant dense<0.000000e+00> : vector<32xf32>
    %250 = vector.multi_reduction <add>, %249, %cst_90 [1] : vector<32x32xf32> to vector<32xf32>
    %251 = vector.shape_cast %250 : vector<32xf32> to vector<32x1xf32>
    %252 = tpu.reciprocal %251 {approx = true} : vector<32x1xf32> -> vector<32x1xf32>
    %253 = vector.broadcast %252 : vector<32x1xf32> to vector<32x32xf32>
    %254 = arith.mulf %249, %253 : vector<32x32xf32>
    %255 = arith.truncf %254 : vector<32x32xf32> to vector<32x32xbf16>
    %cst_91 = arith.constant dense<0.000000e+00> : vector<32x16xf32>
    %256 = tpu.matmul %255, %242, %cst_91 {dimension_numbers = #tpu.dot_dimension_numbers<[1], [0], [0], [1], [0, 0, 1, 1], [], []>} : vector<32x32xbf16>, vector<32x16xbf16>, vector<32x16xf32> -> vector<32x16xf32>
    %257 = vector.extract_strided_slice %196 {offsets = [0, 48], sizes = [32, 16], strides = [1, 1]} : vector<32x192xf32> to vector<32x16xf32>
    %258 = arith.truncf %257 : vector<32x16xf32> to vector<32x16xbf16>
    %259 = vector.extract_strided_slice %196 {offsets = [0, 112], sizes = [32, 16], strides = [1, 1]} : vector<32x192xf32> to vector<32x16xf32>
    %260 = arith.truncf %259 : vector<32x16xf32> to vector<32x16xbf16>
    %261 = vector.extract_strided_slice %196 {offsets = [0, 176], sizes = [32, 16], strides = [1, 1]} : vector<32x192xf32> to vector<32x16xf32>
    %262 = arith.truncf %261 : vector<32x16xf32> to vector<32x16xbf16>
    %cst_92 = arith.constant dense<0.000000e+00> : vector<32x32xf32>
    %263 = tpu.matmul %258, %260, %cst_92 {dimension_numbers = #tpu.dot_dimension_numbers<[1], [1], [0], [0], [0, 0, 1, 0], [], []>} : vector<32x16xbf16>, vector<32x16xbf16>, vector<32x32xf32> -> vector<32x32xf32>
    %264 = arith.addf %263, %1 : vector<32x32xf32>
    %cst_93 = arith.constant dense<0xFF800000> : vector<32xf32>
    %265 = vector.multi_reduction <maximumf>, %264, %cst_93 [1] : vector<32x32xf32> to vector<32xf32>
    %266 = vector.shape_cast %265 : vector<32xf32> to vector<32x1xf32>
    %267 = vector.broadcast %266 : vector<32x1xf32> to vector<32x32xf32>
    %268 = arith.subf %264, %267 : vector<32x32xf32>
    %269 = math.exp %268 : vector<32x32xf32>
    %cst_94 = arith.constant dense<0.000000e+00> : vector<32xf32>
    %270 = vector.multi_reduction <add>, %269, %cst_94 [1] : vector<32x32xf32> to vector<32xf32>
    %271 = vector.shape_cast %270 : vector<32xf32> to vector<32x1xf32>
    %272 = tpu.reciprocal %271 {approx = true} : vector<32x1xf32> -> vector<32x1xf32>
    %273 = vector.broadcast %272 : vector<32x1xf32> to vector<32x32xf32>
    %274 = arith.mulf %269, %273 : vector<32x32xf32>
    %275 = arith.truncf %274 : vector<32x32xf32> to vector<32x32xbf16>
    %cst_95 = arith.constant dense<0.000000e+00> : vector<32x16xf32>
    %276 = tpu.matmul %275, %262, %cst_95 {dimension_numbers = #tpu.dot_dimension_numbers<[1], [0], [0], [1], [0, 0, 1, 1], [], []>} : vector<32x32xbf16>, vector<32x16xbf16>, vector<32x16xf32> -> vector<32x16xf32>
    %277 = tpu.concatenate %216, %236, %256, %276 in 1 : vector<32x16xf32>, vector<32x16xf32>, vector<32x16xf32>, vector<32x16xf32> -> vector<32x64xf32>
    %278 = arith.truncf %277 : vector<32x64xf32> to vector<32x64xbf16>
    %c1_96 = arith.constant 1 : index
    %c0_97 = arith.constant 0 : index
    %c0_98 = arith.constant 0 : index
    %279 = vector.load %arg5[%c1_96, %c0_97, %c0_98] : memref<2x64x64xbf16, #tpu.memory_space<vmem>>, vector<1x64x64xbf16>
    %280 = vector.shape_cast %279 : vector<1x64x64xbf16> to vector<64x64xbf16>
    %cst_99 = arith.constant dense<0.000000e+00> : vector<32x64xf32>
    %281 = tpu.matmul %278, %280, %cst_99 {dimension_numbers = #tpu.dot_dimension_numbers<[1], [0], [0], [1], [0, 0, 1, 1], [], []>} : vector<32x64xbf16>, vector<64x64xbf16>, vector<32x64xf32> -> vector<32x64xf32>
    %282 = arith.addf %166, %281 : vector<32x64xf32>
    %c1_100 = arith.constant 1 : index
    %c0_101 = arith.constant 0 : index
    %c0_102 = arith.constant 0 : index
    %283 = vector.load %arg6[%c1_100, %c0_101, %c0_102] : memref<2x1x64xf32, #tpu.memory_space<vmem>>, vector<1x1x64xf32>
    %284 = vector.shape_cast %283 : vector<1x1x64xf32> to vector<1x64xf32>
    %285 = vector.broadcast %284 : vector<1x64xf32> to vector<32x64xf32>
    %286 = arith.addf %282, %285 : vector<32x64xf32>
    %c1_103 = arith.constant 1 : index
    %c0_104 = arith.constant 0 : index
    %c0_105 = arith.constant 0 : index
    %287 = vector.load %arg7[%c1_103, %c0_104, %c0_105] : memref<2x1x64xf32, #tpu.memory_space<vmem>>, vector<1x1x64xf32>
    %288 = vector.shape_cast %287 : vector<1x1x64xf32> to vector<1x64xf32>
    %c1_106 = arith.constant 1 : index
    %c0_107 = arith.constant 0 : index
    %c0_108 = arith.constant 0 : index
    %289 = vector.load %arg8[%c1_106, %c0_107, %c0_108] : memref<2x1x64xf32, #tpu.memory_space<vmem>>, vector<1x1x64xf32>
    %290 = vector.shape_cast %289 : vector<1x1x64xf32> to vector<1x64xf32>
    %cst_109 = arith.constant dense<0.000000e+00> : vector<32xf32>
    %291 = vector.multi_reduction <add>, %286, %cst_109 [1] : vector<32x64xf32> to vector<32xf32>
    %292 = vector.shape_cast %291 : vector<32xf32> to vector<32x1xf32>
    %cst_110 = arith.constant 6.400000e+01 : f32
    %293 = vector.broadcast %cst_110 : f32 to vector<32x1xf32>
    %294 = arith.divf %292, %293 : vector<32x1xf32>
    %295 = arith.mulf %286, %286 : vector<32x64xf32>
    %cst_111 = arith.constant dense<0.000000e+00> : vector<32xf32>
    %296 = vector.multi_reduction <add>, %295, %cst_111 [1] : vector<32x64xf32> to vector<32xf32>
    %297 = vector.shape_cast %296 : vector<32xf32> to vector<32x1xf32>
    %cst_112 = arith.constant 6.400000e+01 : f32
    %298 = vector.broadcast %cst_112 : f32 to vector<32x1xf32>
    %299 = arith.divf %297, %298 : vector<32x1xf32>
    %300 = arith.mulf %294, %294 : vector<32x1xf32>
    %301 = arith.subf %299, %300 : vector<32x1xf32>
    %302 = vector.broadcast %294 : vector<32x1xf32> to vector<32x64xf32>
    %303 = arith.subf %286, %302 : vector<32x64xf32>
    %cst_113 = arith.constant 9.99999974E-6 : f32
    %304 = vector.broadcast %cst_113 : f32 to vector<32x1xf32>
    %305 = arith.addf %301, %304 : vector<32x1xf32>
    %306 = math.rsqrt %305 : vector<32x1xf32>
    %307 = vector.broadcast %306 : vector<32x1xf32> to vector<32x64xf32>
    %308 = arith.mulf %303, %307 : vector<32x64xf32>
    %309 = vector.broadcast %288 : vector<1x64xf32> to vector<32x64xf32>
    %310 = arith.mulf %308, %309 : vector<32x64xf32>
    %311 = vector.broadcast %290 : vector<1x64xf32> to vector<32x64xf32>
    %312 = arith.addf %310, %311 : vector<32x64xf32>
    %313 = arith.truncf %312 : vector<32x64xf32> to vector<32x64xbf16>
    %c1_114 = arith.constant 1 : index
    %c0_115 = arith.constant 0 : index
    %c0_116 = arith.constant 0 : index
    %314 = vector.load %arg9[%c1_114, %c0_115, %c0_116] : memref<2x64x256xbf16, #tpu.memory_space<vmem>>, vector<1x64x256xbf16>
    %315 = vector.shape_cast %314 : vector<1x64x256xbf16> to vector<64x256xbf16>
    %cst_117 = arith.constant dense<0.000000e+00> : vector<32x256xf32>
    %316 = tpu.matmul %313, %315, %cst_117 {dimension_numbers = #tpu.dot_dimension_numbers<[1], [0], [0], [1], [0, 0, 1, 1], [], []>} : vector<32x64xbf16>, vector<64x256xbf16>, vector<32x256xf32> -> vector<32x256xf32>
    %c1_118 = arith.constant 1 : index
    %c0_119 = arith.constant 0 : index
    %c0_120 = arith.constant 0 : index
    %317 = vector.load %arg10[%c1_118, %c0_119, %c0_120] : memref<2x1x256xf32, #tpu.memory_space<vmem>>, vector<1x1x256xf32>
    %318 = vector.shape_cast %317 : vector<1x1x256xf32> to vector<1x256xf32>
    %319 = vector.broadcast %318 : vector<1x256xf32> to vector<32x256xf32>
    %320 = arith.addf %316, %319 : vector<32x256xf32>
    %cst_121 = arith.constant 0.000000e+00 : f32
    %321 = vector.broadcast %cst_121 : f32 to vector<32x256xf32>
    %322 = arith.maximumf %320, %321 : vector<32x256xf32>
    %323 = arith.truncf %322 : vector<32x256xf32> to vector<32x256xbf16>
    %c1_122 = arith.constant 1 : index
    %c0_123 = arith.constant 0 : index
    %c0_124 = arith.constant 0 : index
    %324 = vector.load %arg11[%c1_122, %c0_123, %c0_124] : memref<2x256x64xbf16, #tpu.memory_space<vmem>>, vector<1x256x64xbf16>
    %325 = vector.shape_cast %324 : vector<1x256x64xbf16> to vector<256x64xbf16>
    %cst_125 = arith.constant dense<0.000000e+00> : vector<32x64xf32>
    %326 = tpu.matmul %323, %325, %cst_125 {dimension_numbers = #tpu.dot_dimension_numbers<[1], [0], [0], [1], [0, 0, 1, 1], [], []>} : vector<32x256xbf16>, vector<256x64xbf16>, vector<32x64xf32> -> vector<32x64xf32>
    %327 = arith.addf %286, %326 : vector<32x64xf32>
    %c1_126 = arith.constant 1 : index
    %c0_127 = arith.constant 0 : index
    %c0_128 = arith.constant 0 : index
    %328 = vector.load %arg12[%c1_126, %c0_127, %c0_128] : memref<2x1x64xf32, #tpu.memory_space<vmem>>, vector<1x1x64xf32>
    %329 = vector.shape_cast %328 : vector<1x1x64xf32> to vector<1x64xf32>
    %330 = vector.broadcast %329 : vector<1x64xf32> to vector<32x64xf32>
    %331 = arith.addf %327, %330 : vector<32x64xf32>
    %332 = arith.truncf %331 : vector<32x64xf32> to vector<32x64xbf16>
    %c0_129 = arith.constant 0 : index
    %c0_130 = arith.constant 0 : index
    %333 = vector.load %arg13[%c0_129, %c0_130] : memref<64x128xbf16, #tpu.memory_space<vmem>>, vector<64x128xbf16>
    %cst_131 = arith.constant dense<0.000000e+00> : vector<32x128xf32>
    %334 = tpu.matmul %332, %333, %cst_131 {dimension_numbers = #tpu.dot_dimension_numbers<[1], [0], [0], [1], [0, 0, 1, 1], [], []>} : vector<32x64xbf16>, vector<64x128xbf16>, vector<32x128xf32> -> vector<32x128xf32>
    %c0_132 = arith.constant 0 : index
    %c0_133 = arith.constant 0 : index
    %335 = vector.load %arg14[%c0_132, %c0_133] : memref<1x128xf32, #tpu.memory_space<vmem>>, vector<1x128xf32>
    %336 = vector.broadcast %335 : vector<1x128xf32> to vector<32x128xf32>
    %337 = arith.addf %334, %336 : vector<32x128xf32>
    %c0_134 = arith.constant 0 : index
    %c0_135 = arith.constant 0 : index
    %338 = vector.load %arg15[%c0_134, %c0_135] : memref<32x128xf32, #tpu.memory_space<vmem>>, vector<32x128xf32>
    tpu.vector_store %arg15[%c0_134, %c0_135], %337 {strides = array<i32>} : memref<32x128xf32, #tpu.memory_space<vmem>>, vector<32x128xf32>,
    return
  }
}

</mosaic_0001>

<bundles_post_ra>
// kernel: tpu_custom_call.1
= control target key start
LH: loop header
LB: loop body
LE: loop exit
PB: predicated region body
PF: predicated region fallthrough
CT: control target
= control target key end

     0   :  { %20 = vsyncpa [#allocation3], 0  ;;  %s5306_s0 = inlined_call_operand.vmem [shape: f32[32,64], index: 0, kind: input, shape index: {}]   ;;  %s5307_s1 = inlined_call_operand.vmem [shape: f32[32,32], index: 1, kind: input, shape index: {}]   ;;  %s5308_s2 = inlined_call_operand.hbm [shape: f32[2,1,64], index: 2, kind: input, shape index: {}]   ;;  %s5309_s3 = inlined_call_operand.hbm [shape: f32[2,1,64], index: 3, kind: input, shape index: {}]   ;;  %s5310_s4 = inlined_call_operand.vmem [shape: bf16[2,64,192], index: 4, kind: input, shape index: {}]   ;;  %s5311_s5 = inlined_call_operand.vmem [shape: bf16[2,64,64], index: 5, kind: input, shape index: {}]   ;;  %s5312_s6 = inlined_call_operand.hbm [shape: f32[2,1,64], index: 6, kind: input, shape index: {}]   ;;  %s5313_s7 = inlined_call_operand.hbm [shape: f32[2,1,64], index: 7, kind: input, shape index: {}]   ;;  %s5314_s8 = inlined_call_operand.hbm [shape: f32[2,1,64], index: 8, kind: input, shape index: {}]   ;;  %s5315_s9 = inlined_call_operand.vmem [shape: bf16[2,64,256], index: 9, kind: input, shape index: {}]   ;;  %s5316_s10 = inlined_call_operand.vmem [shape: f32[2,1,256], index: 10, kind: input, shape index: {}]   ;;  %s5317_s11 = inlined_call_operand.vmem [shape: bf16[2,256,64], index: 11, kind: input, shape index: {}]   ;;  %s5318_s12 = inlined_call_operand.vmem [shape: f32[2,1,64], index: 12, kind: input, shape index: {}]   ;;  %s5319_s13 = inlined_call_operand.vmem [shape: bf16[64,128], index: 13, kind: input, shape index: {}]   ;;  %s5320_s14 = inlined_call_operand.vmem [shape: f32[1,128], index: 14, kind: input, shape index: {}]   ;;  %s5321_s15 = inlined_call_operand.hbm [shape: f32[32,128], index: 15, kind: output, shape index: {}]  }
   0x1   :  { %21 = vsyncpa [#allocation6], 0 }
   0x2   :  { %22 = vsyncpa [#allocation9], 0 }
   0x3   :  { %23 = vsyncpa [#allocation4], 0  ;;  %s4179_s18 = smov [#allocation5]   ;;  %s4180_s20 = smov [#allocation8]  }
   0x4   :  { %s45_s19 = sshll.u32 %s4179_s18, 4  ;;  %s73_s21 = sshll.u32 %s4180_s20, 4  ;;  %s46_s19 = int_to_ptr.vmem [resolvable:$true] %s45_s19  ;;  %s4276_s21 = int_to_ptr.vmem [resolvable:$true] %s73_s21 }
   0x5   :  { %s4039_s24 = scalar_lea.hbm %s5309_s3, 32 }
   0x6   :  { %p4040_p0 = scmp.ne.s32.totalorder %s5309_s3, %s4039_s24  ;;  %p4043_p1 = scmp.lt.u32.totalorder %s4039_s24, %s5309_s3 }
   0x8   :  { %p4045_p2 = pnand %p4043_p1, %p4040_p0 }
   0xa   :  { %4048 = shalt.err (!%p4045_p2)
}
   0xb   :  { %s4049_s29 = scalar_lea.vmem %s46_s19, 32  ;;  %p4054_p4 = scmp.lt.s32.totalorder %s46_s19, %s46_s19 }
   0xc   :  { %p4050_p3 = scmp.ne.s32.totalorder %s46_s19, %s4049_s29  ;;  %p4055_p5 = scmp.lt.s32.totalorder %s4049_s29, %s4049_s29 }
   0xe   :  { %p4056_p6 = por %p4055_p5, %p4054_p4 }
  0x10   :  { %p4057_p7 = pnand %p4056_p6, %p4050_p3 }
  0x12   :  { %4060 = shalt.err (!%p4057_p7)
}
  0x13   :  { %s4181_s30 = smov 16   ;;  %s4182_s16 = smov 1  }
  0x14   :  { %51 = dma.hbm_to_vmem [thread:$0]  %s5309_s3, 32, %s46_s19, [#allocation6], %s4181_s30, %s4181_s30, %s4182_s16  }
  0x15   :  { %s4061_s23 = scalar_lea.hbm %s5313_s7, 32 }
  0x16   :  { %p4062_p8 = scmp.ne.s32.totalorder %s5313_s7, %s4061_s23  ;;  %p4065_p9 = scmp.lt.u32.totalorder %s4061_s23, %s5313_s7 }
  0x18   :  { %p4067_p10 = pnand %p4065_p9, %p4062_p8 }
  0x1a   :  { %4070 = shalt.err (!%p4067_p10)
}
  0x1b   :  { %s4071_s28 = scalar_lea.vmem %s4276_s21, 32  ;;  %p4076_p12 = scmp.lt.s32.totalorder %s4276_s21, %s4276_s21 }
  0x1c   :  { %p4072_p11 = scmp.ne.s32.totalorder %s4276_s21, %s4071_s28  ;;  %p4077_p13 = scmp.lt.s32.totalorder %s4071_s28, %s4071_s28 }
  0x1e   :  { %p4078_p0 = por %p4077_p13, %p4076_p12 }
  0x20   :  { %p4079_p1 = pnand %p4078_p0, %p4072_p11 }
  0x22   :  { %4082 = shalt.err (!%p4079_p1)
}
  0x23   :  { %79 = dma.hbm_to_vmem [thread:$0]  %s5313_s7, 32, %s4276_s21, [#allocation9], %s4181_s30, %s4181_s30, %s4182_s16  }
  0x24   :  { %s4183_s29 = smov [#allocation2]   ;;  %s4184_s18 = smov [#allocation7]  }
  0x25   :  { %s33_s17 = sshll.u32 %s4183_s29, 4  ;;  %s61_s20 = sshll.u32 %s4184_s18, 4  ;;  %s34_s17 = int_to_ptr.vmem [resolvable:$true] %s33_s17  ;;  %s4313_s20 = int_to_ptr.vmem [resolvable:$true] %s61_s20 }
  0x26   :  { %s4083_s24 = scalar_lea.hbm %s5308_s2, 32 }
  0x27   :  { %p4084_p2 = scmp.ne.s32.totalorder %s5308_s2, %s4083_s24  ;;  %p4087_p3 = scmp.lt.u32.totalorder %s4083_s24, %s5308_s2 }
  0x29   :  { %p4089_p4 = pnand %p4087_p3, %p4084_p2 }
  0x2b   :  { %4092 = shalt.err (!%p4089_p4)
}
  0x2c   :  { %s4093_s7 = scalar_lea.vmem %s34_s17, 32  ;;  %p4098_p6 = scmp.lt.s32.totalorder %s34_s17, %s34_s17 }
  0x2d   :  { %p4094_p5 = scmp.ne.s32.totalorder %s34_s17, %s4093_s7  ;;  %p4099_p7 = scmp.lt.s32.totalorder %s4093_s7, %s4093_s7 }
  0x2f   :  { %p4100_p8 = por %p4099_p7, %p4098_p6 }
  0x31   :  { %p4101_p9 = pnand %p4100_p8, %p4094_p5 }
  0x33   :  { %4104 = shalt.err (!%p4101_p9)
}
  0x34   :  { %39 = dma.hbm_to_vmem [thread:$0]  %s5308_s2, 32, %s34_s17, [#allocation3], %s4181_s30, %s4181_s30, %s4182_s16  }
  0x35   :  { %s4105_s18 = scalar_lea.hbm %s5312_s6, 32 }
  0x36   :  { %p4106_p10 = scmp.ne.s32.totalorder %s5312_s6, %s4105_s18  ;;  %p4109_p11 = scmp.lt.u32.totalorder %s4105_s18, %s5312_s6 }
  0x38   :  { %p4111_p12 = pnand %p4109_p11, %p4106_p10 }
  0x3a   :  { %4114 = shalt.err (!%p4111_p12)
}
  0x3b   :  { %s4115_s26 = scalar_lea.vmem %s4313_s20, 32  ;;  %p4120_p0 = scmp.lt.s32.totalorder %s4313_s20, %s4313_s20 }
  0x3c   :  { %p4116_p13 = scmp.ne.s32.totalorder %s4313_s20, %s4115_s26  ;;  %p4121_p1 = scmp.lt.s32.totalorder %s4115_s26, %s4115_s26 }
  0x3e   :  { %p4122_p2 = por %p4121_p1, %p4120_p0 }
  0x40   :  { %p4123_p3 = pnand %p4122_p2, %p4116_p13 }
  0x42   :  { %4126 = shalt.err (!%p4123_p3)
}
  0x43   :  { %67 = dma.hbm_to_vmem [thread:$0]  %s5312_s6, 32, %s4313_s20, [#allocation6], %s4181_s30, %s4181_s30, %s4182_s16  }
  0x44   :  { %s4185_s27 = smov [#allocation10]   ;;  %s4127_s3 = scalar_lea.hbm %s5314_s8, 32 }
  0x45   :  { %s85_s28 = sshll.u32 %s4185_s27, 4  ;;  %p4128_p4 = scmp.ne.s32.totalorder %s5314_s8, %s4127_s3  ;;  %s86_s28 = int_to_ptr.vmem [resolvable:$true] %s85_s28 }
  0x46   :  { %p4131_p5 = scmp.lt.u32.totalorder %s4127_s3, %s5314_s8 }
  0x48   :  { %p4133_p6 = pnand %p4131_p5, %p4128_p4 }
  0x4a   :  { %4136 = shalt.err (!%p4133_p6)
}
  0x4b   :  { %s4137_s23 = scalar_lea.vmem %s86_s28, 32  ;;  %p4142_p8 = scmp.lt.s32.totalorder %s86_s28, %s86_s28 }
  0x4c   :  { %p4138_p7 = scmp.ne.s32.totalorder %s86_s28, %s4137_s23  ;;  %p4143_p9 = scmp.lt.s32.totalorder %s4137_s23, %s4137_s23 }
  0x4e   :  { %p4144_p10 = por %p4143_p9, %p4142_p8 }
  0x50   :  { %p4145_p11 = pnand %p4144_p10, %p4138_p7 }
  0x52   :  { %4148 = shalt.err (!%p4145_p11)
}
  0x53   :  { %91 = dma.hbm_to_vmem [thread:$0]  %s5314_s8, 32, %s86_s28, [#allocation9], %s4181_s30, %s4181_s30, %s4182_s16  }
  0x54   :  { %4171 = dma.done.wait [#allocation3], 32  }
  0x55   :  { %4172 = vsyncadd [#allocation3], 4294967264 }
  0x56   :  { %4173 = dma.done.wait [#allocation6], 64  }
  0x57   :  { %4174 = vsyncadd [#allocation6], 4294967232 }
  0x58   :  { %4175 = dma.done.wait [#allocation9], 64  }
  0x59   :  { %4176 = vsyncadd [#allocation9], 4294967232  ;;  %vm130_vm0 = vcmask 523264   ;;  %v4368_v0 = vld [vmem:[%s5306_s0] sm:$0xff]  ;;  %v4373_v1 = vld [vmem:[%s5306_s0 + $0x8] sm:$0xff]  ;;  %v4186_v24 = vmov 0  }
  0x5a   :  { %v131_v2 = vsel %vm130_vm0, %v4368_v0, 0.0  ;;  %v148_v3 = vmul.f32 %v4368_v0, %v4368_v0  ;;  %v149_v4 = vmul.f32 %v4373_v1, %v4373_v1  ;;  %v4384_v5 = vld [vmem:[%s5306_s0 + $0x10] sm:$0xff]  ;;  %v134_v7 = vsel %vm130_vm0, %v4373_v1, 0.0  ;;  %v4393_v9 = vld [vmem:[%s5306_s0 + $0x18] sm:$0xff]  ;;  %v3779_v16 = vld [vmem:[%s5310_s4 + $0x4] ss:$8 sps:$4 sm:$0xff]   ;;  %300 = vmatprep.mubr.bf16.mxu1 %v4186_v24 }
  0x5b   :  { %132 = vadd.xlane.f32.xlu0 %v131_v2  ;;  %v150_v10 = vmul.f32 %v4384_v5, %v4384_v5  ;;  %v151_v11 = vmul.f32 %v4393_v9, %v4393_v9  ;;  %v137_v12 = vsel %vm130_vm0, %v4384_v5, 0.0  ;;  %v140_v13 = vsel %vm130_vm0, %v4393_v9, 0.0  ;;  %v3781_v17 = vld [vmem:[%s5310_s4] ss:$8 sps:$4 sm:$0xff]   ;;  %268 = vmatprep.subr.bf16.mxu1 %v3779_v16  ;;  %v3782_v18 = vld [vmem:[%s5310_s4 + $0x14] ss:$8 sps:$4 sm:$0xff]  }
  0x5c   :  { %v152_v6 = vsel %vm130_vm0, %v148_v3, 0.0  ;;  %v155_v8 = vsel %vm130_vm0, %v149_v4, 0.0  ;;  %269 = vmatpush1.bf16.msra.mxu1 %v3781_v17  ;;  %v3784_v19 = vld [vmem:[%s5310_s4 + $0x10] ss:$8 sps:$4 sm:$0xff]   ;;  %v3785_v20 = vld [vmem:[%s5310_s4 + $0x24] ss:$8 sps:$4 sm:$0xff]  }
  0x5d   :  { %153 = vadd.xlane.f32.xlu1 %v152_v6  ;;  %v158_v14 = vsel %vm130_vm0, %v150_v10, 0.0  ;;  %v161_v15 = vsel %vm130_vm0, %v151_v11, 0.0  ;;  %270 = vmatprep.subr.bf16.mxu1 %v3782_v18  ;;  %v3787_v21 = vld [vmem:[%s5310_s4 + $0x20] ss:$8 sps:$4 sm:$0xff]   ;;  %v3788_v22 = vld [vmem:[%s5310_s4 + $0x34] ss:$8 sps:$4 sm:$0xff]  }
  0x5e   :  { %v3790_v23 = vld [vmem:[%s5310_s4 + $0x30] ss:$8 sps:$4 sm:$0xff]   ;;  %v3191_v56 = vld [vmem:[#allocation2] ss:$0 sm:$0xff]  ;;  %v3192_v61 = vld [vmem:[#allocation5] ss:$0 sm:$0xff] }
  0x5f   :  { %135 = vadd.xlane.f32.xlu0 %v134_v7  ;;  %vm331_vm1 = vcmask 130048   ;;  %s4187_s16 = smov 48   ;;  %s4188_s17 = smov 64   ;;  %vm393_vm2 = vcmask 261120   ;;  %vm1081_vm3 = vcmask 392192  }
  0x60   :  { %271 = vmatpush1.bf16.msra.mxu1 %v3784_v19  ;;  %s4189_s27 = smov 112   ;;  %s4190_s28 = smov 96  }
  0x61   :  { %156 = vadd.xlane.f32.xlu1 %v155_v8  ;;  %272 = vmatprep.subr.bf16.mxu1 %v3785_v20  ;;  %s4191_s7 = smov 32   ;;  %s4192_s20 = smov 80  }
  0x63   :  { %138 = vadd.xlane.f32.xlu0 %v137_v12 }
  0x64   :  { %273 = vmatpush1.bf16.msra.mxu1 %v3787_v21 }
  0x65   :  { %141 = vadd.xlane.f32.xlu1 %v140_v13  ;;  %274 = vmatprep.subr.bf16.mxu1 %v3788_v22 }
  0x67   :  { %159 = vadd.xlane.f32.xlu0 %v158_v14 }
  0x68   :  { %275 = vmatpush1.bf16.msra.mxu1 %v3790_v23 }
  0x69   :  { %162 = vadd.xlane.f32.xlu1 %v161_v15 }
  0xe8   :  { %v133_v25 = vpop.xlane.xlu0 %132 }
  0xe9   :  { %v144_v26 = vmul.f32 0.015625, %v133_v25 }
  0xea   :  { %v154_v27 = vpop.xlane.xlu1 %153 }
  0xeb   :  { %v168_v28 = vmul.f32 %v144_v26, %v144_v26  ;;  %v164_v29 = vmul.f32 0.015625, %v154_v27  ;;  %v176_v52 = vsub.f32 %v4368_v0, %v144_v26 }
  0xec   :  { %v136_v30 = vpop.xlane.xlu0 %135 }
  0xed   :  { %v172_v31 = vsub.f32 %v164_v29, %v168_v28  ;;  %v145_v32 = vmul.f32 0.015625, %v136_v30 }
  0xee   :  { %v157_v33 = vpop.xlane.xlu1 %156 }
  0xef   :  { %v180_v34 = vadd.f32 1e-05, %v172_v31  ;;  %v169_v35 = vmul.f32 %v145_v32, %v145_v32  ;;  %v165_v36 = vmul.f32 0.015625, %v157_v33  ;;  %v177_v57 = vsub.f32 %v4373_v1, %v145_v32 }
  0xf0   :  { %v139_v37 = vpop.xlane.xlu0 %138 }
  0xf1   :  { %3871 = vrsqrt.f32 %v180_v34  ;;  %v173_v38 = vsub.f32 %v165_v36, %v169_v35  ;;  %v146_v39 = vmul.f32 0.015625, %v139_v37 }
  0xf2   :  { %v142_v40 = vpop.xlane.xlu1 %141 }
  0xf3   :  { %v181_v41 = vadd.f32 1e-05, %v173_v38  ;;  %v170_v42 = vmul.f32 %v146_v39, %v146_v39  ;;  %v147_v43 = vmul.f32 0.015625, %v142_v40  ;;  %v178_v63 = vsub.f32 %v4384_v5, %v146_v39 }
  0xf4   :  { %v160_v44 = vpop.xlane.xlu0 %159 }
  0xf5   :  { %3873 = vrsqrt.f32 %v181_v41  ;;  %v166_v45 = vmul.f32 0.015625, %v160_v44  ;;  %v171_v47 = vmul.f32 %v147_v43, %v147_v43  ;;  %v179_v0 = vsub.f32 %v4393_v9, %v147_v43  ;;  %v4497_v44 = vld [vmem:[%s5307_s1] sm:$0xff] }
  0xf6   :  { %v163_v46 = vpop.xlane.xlu1 %162 }
  0xf7   :  { %v174_v48 = vsub.f32 %v166_v45, %v170_v42  ;;  %v167_v49 = vmul.f32 0.015625, %v163_v46  ;;  %v4492_v42 = vld [vmem:[%s5307_s1 + $0x10] sm:$0xff] }
  0xf9   :  { %v182_v50 = vadd.f32 1e-05, %v174_v48  ;;  %v175_v51 = vsub.f32 %v167_v49, %v171_v47  ;;  %v4503_v47 = vld [vmem:[%s5307_s1 + $0x8] sm:$0xff] }
  0xfb   :  { %v3872_v53 = vpop.eup %3871  ;;  %3875 = vrsqrt.f32 %v182_v50  ;;  %v183_v54 = vadd.f32 1e-05, %v175_v51 }
  0xfc   :  { %v188_v55 = vmul.f32 %v3872_v53, %v176_v52  ;;  %v4512_v52 = vld [vmem:[%s5307_s1 + $0x18] sm:$0xff] }
  0xfd   :  { %3877 = vrsqrt.f32 %v183_v54 }
  0xfe   :  { %v198_v60 = vmul.f32 %v3191_v56, %v188_v55 }
  0xff   :  { %v3874_v58 = vpop.eup %3873 }
 0x100   :  { %v189_v59 = vmul.f32 %v3874_v58, %v177_v57  ;;  %v208_v2 = vadd.f32 %v3192_v61, %v198_v60 }
 0x102   :  { %v199_v62 = vmul.f32 %v3191_v56, %v189_v59 }
 0x104   :  { %v209_v3 = vadd.f32 %v3192_v61, %v199_v62 }
 0x105   :  { %v3876_v4 = vpop.eup %3875 }
 0x106   :  { %v212_v6 = vpack.c.bf16 %v209_v3, %v208_v2  ;;  %v190_v7 = vmul.f32 %v3876_v4, %v178_v63 }
 0x107   :  { %v3878_v8 = vpop.eup %3877 }
 0x108   :  { %3201 = vmatmul.mubr.msk.bf16.vlgmr.msra.gmra.mrb[0].mxu1 %vm130_vm0, %v212_v6  ;;  %v191_v10 = vmul.f32 %v3878_v8, %v179_v0  ;;  %v200_v11 = vmul.f32 %v3191_v56, %v190_v7 }
 0x109   :  { %310 = vmatprep.mubr.bf16.mxu1 %v4186_v24 }
 0x10a   :  { %v201_v1 = vmul.f32 %v3191_v56, %v191_v10  ;;  %v210_v12 = vadd.f32 %v3192_v61, %v200_v11 }
 0x10c   :  { %v211_v13 = vadd.f32 %v3192_v61, %v201_v1 }
 0x10e   :  { %v213_v14 = vpack.c.bf16 %v211_v13, %v210_v12 }
 0x110   :  { %3202 = vmatmul.mubr.msk.bf16.gmra.mrb[4].mxu1 %vm130_vm0, %v213_v14 }
 0x1db   :  { %v302_v5 = vpop.f32.mrb[0].mxu1 }
 0x1dc   :  { %v304_v15 = vpop.f32.mrb[1].mxu1 }
 0x1dd   :  { %v306_v16 = vpop.f32.mrb[2].mxu1 }
 0x1de   :  { %v4437_v17 = vpack.c.bf16 %v306_v16, %v302_v5  ;;  %v308_v9 = vpop.f32.mrb[3].mxu1 }
 0x1df   :  { %v4439_v18 = vpack.c.bf16 %v308_v9, %v304_v15 }
 0x1e0   :  { %499 = vrot.lane.b32.xlu1 %v4437_v17, %s4187_s16  ;;  %327 = vrot.lane.b32.xlu0 %v4437_v17, %s4188_s17 }
 0x1e1   :  { %3526 = vmatprep.mubr.msk.bf16.mxu1 %vm331_vm1, %v4437_v17 }
 0x1e3   :  { %v312_v19 = vpop.f32.mrb[4].mxu1 }
 0x1e4   :  { %495 = vrot.lane.b32.xlu0 %v4437_v17, %s4189_s27  ;;  %v314_v20 = vpop.f32.mrb[5].mxu1 }
 0x1e5   :  { %v316_v21 = vpop.f32.mrb[6].mxu1 }
 0x1e6   :  { %v4449_v22 = vpack.c.bf16 %v316_v21, %v312_v19  ;;  %v318_v23 = vpop.f32.mrb[7].mxu1 }
 0x1e7   :  { %v4451_v25 = vpack.c.bf16 %v318_v23, %v314_v20 }
 0x1e8   :  { %497 = vrot.lane.b32.xlu0 %v4449_v22, %s4189_s27  ;;  %329 = vrot.lane.b32.xlu1 %v4449_v22, %s4188_s17 }
 0x1ec   :  { %673 = vrot.lane.b32.xlu0 %v4437_v17, %s4190_s28  ;;  %501 = vrot.lane.b32.xlu1 %v4449_v22, %s4187_s16 }
 0x1f0   :  { %677 = vrot.lane.b32.xlu1 %v4437_v17, %s4191_s7 }
 0x1f4   :  { %679 = vrot.lane.b32.xlu1 %v4449_v22, %s4191_s7 }
 0x1f8   :  { %675 = vrot.lane.b32.xlu1 %v4449_v22, %s4190_s28 }
 0x252   :  { %v500_v26 = vpop.permute.xlu1 %499  ;;  %v328_v27 = vpop.permute.xlu0 %327 }
 0x253   :  { %3686 = vmatprep.subr.msk.bf16.mxu1 %vm331_vm1, %v328_v27  ;;  %3688 = vmatprep.subr.msk.bf16.mxu0 %vm331_vm1, %v500_v26  ;;  %v339_v28 = vsel %vm331_vm1, %v328_v27, 0  ;;  %v510_v29 = vsel %vm331_vm1, %v500_v26, 0 }
 0x254   :  { %3523 = vmatpush3.bf16.xpose.msra.mxu1 %v339_v28  ;;  %3539 = vmatpush3.bf16.xpose.msra.mxu0 %v510_v29 }
 0x256   :  { %v496_v30 = vpop.permute.xlu0 %495 }
 0x257   :  { %3542 = vmatprep.mubr.msk.bf16.mxu0 %vm331_vm1, %v496_v30 }
 0x25a   :  { %v330_v31 = vpop.permute.xlu1 %329  ;;  %v498_v35 = vpop.permute.xlu0 %497 }
 0x25b   :  { %3687 = vmatprep.subr.msk.bf16.mxu1 %vm331_vm1, %v330_v31  ;;  %v342_v32 = vsel %vm331_vm1, %v330_v31, 0 }
 0x25c   :  { %3525 = vmatpush3.bf16.xpose.msra.mxu1 %v342_v32 }
 0x25d   :  { %3530 = vmatprep.subr.bf16.mxu1 %v4439_v18 }
 0x25e   :  { %v502_v33 = vpop.permute.xlu1 %501  ;;  %v674_v38 = vpop.permute.xlu0 %673 }
 0x25f   :  { %3689 = vmatprep.subr.msk.bf16.mxu0 %vm331_vm1, %v502_v33  ;;  %v513_v34 = vsel %vm331_vm1, %v502_v33, 0 }
 0x260   :  { %3541 = vmatpush3.bf16.xpose.msra.mxu0 %v513_v34 }
 0x262   :  { %v678_v36 = vpop.permute.xlu1 %677 }
 0x263   :  { %3527 = vmatmul.mubr.msk.bf16.vlgmr.msra.gmra.mrb[8].mxu1 %vm331_vm1, %v4449_v22  ;;  %3690 = vmatprep.subr.msk.bf16.mxu0 %vm331_vm1, %v678_v36  ;;  %v688_v37 = vsel %vm331_vm1, %v678_v36, 0 }
 0x264   :  { %3531 = vmatpush3.bf16.msra.mxu1 %v4439_v18 }
 0x265   :  { %3532 = vmatprep.subr.bf16.mxu1 %v4451_v25 }
 0x266   :  { %v680_v39 = vpop.permute.xlu1 %679 }
 0x267   :  { %3543 = vmatmul.mubr.msk.bf16.vlgmr.msra.gmra.mrb[0].mxu0 %vm331_vm1, %v498_v35  ;;  %v691_v40 = vsel %vm331_vm1, %v680_v39, 0 }
 0x268   :  { %3533 = vmatpush3.bf16.msra.mxu1 %v4451_v25  ;;  %3555 = vmatpush3.bf16.xpose.msra.mxu0 %v688_v37 }
 0x269   :  { %3558 = vmatprep.mubr.msk.bf16.mxu0 %vm331_vm1, %v674_v38  ;;  %3691 = vmatprep.subr.msk.bf16.mxu0 %vm331_vm1, %v680_v39 }
 0x26a   :  { %v676_v41 = vpop.permute.xlu1 %675 }
 0x270   :  { %3557 = vmatpush3.bf16.xpose.msra.mxu0 %v691_v40 }
 0x277   :  { %3559 = vmatmul.mubr.msk.bf16.vlgmr.msra.gmra.mrb[4].mxu0 %vm331_vm1, %v676_v41 }
 0x336   :  { %v3528_v43 = vpop.f32.mrb[8].mxu1 }
 0x337   :  { %v387_v45 = vadd.f32 %v3528_v43, %v4492_v42  ;;  %v378_v46 = vpop.f32.mrb[9].mxu1 }
 0x338   :  { %v3529_v48 = vpop.f32.mrb[10].mxu1  ;;  %v4506_v49 = vadd.f32 %v378_v46, %v4497_v44 }
 0x339   :  { %v381_v50 = vpop.f32.mrb[11].mxu1  ;;  %v400_v51 = vsel %vm393_vm2, %v387_v45, -inf  ;;  %v390_v58 = vadd.f32 %v3529_v48, %v4512_v52 }
 0x33a   :  { %v382_v53 = vadd.f32 %v381_v50, %v4503_v47  ;;  %401 = vmax.xlane.f32.xlu0 %v400_v51  ;;  %v3544_v54 = vpop.f32.mrb[0].mxu0  ;;  %v394_v61 = vsel %vm393_vm2, %v4506_v49, -inf }
 0x33b   :  { %v549_v55 = vpop.f32.mrb[1].mxu0  ;;  %v403_v3 = vsel %vm393_vm2, %v390_v58, -inf  ;;  %v558_v0 = vadd.f32 %v3544_v54, %v4492_v42 }
 0x33c   :  { %v3545_v56 = vpop.f32.mrb[2].mxu0  ;;  %v397_v57 = vsel %vm393_vm2, %v382_v53, -inf  ;;  %v550_v2 = vadd.f32 %v549_v55, %v4497_v44 }
 0x33d   :  { %v561_v59 = vadd.f32 %v3545_v56, %v4512_v52  ;;  %398 = vmax.xlane.f32.xlu1 %v397_v57  ;;  %v552_v60 = vpop.f32.mrb[3].mxu0  ;;  %v570_v7 = vsel %vm393_vm2, %v558_v0, -inf }
 0x33e   :  { %395 = vmax.xlane.f32.xlu0 %v394_v61  ;;  %v553_v63 = vadd.f32 %v552_v60, %v4503_v47  ;;  %v564_v6 = vsel %vm393_vm2, %v550_v2, -inf }
 0x33f   :  { %v573_v62 = vsel %vm393_vm2, %v561_v59, -inf }
 0x340   :  { %v567_v4 = vsel %vm393_vm2, %v553_v63, -inf }
 0x341   :  { %574 = vmax.xlane.f32.xlu1 %v573_v62 }
 0x342   :  { %404 = vmax.xlane.f32.xlu0 %v403_v3 }
 0x345   :  { %568 = vmax.xlane.f32.xlu1 %v567_v4 }
 0x346   :  { %565 = vmax.xlane.f32.xlu0 %v564_v6 }
 0x34a   :  { %571 = vmax.xlane.f32.xlu0 %v570_v7  ;;  %v3560_v8 = vpop.f32.mrb[4].mxu0 }
 0x34b   :  { %v727_v10 = vpop.f32.mrb[5].mxu0  ;;  %v4533_v14 = vadd.f32 %v3560_v8, %v4492_v42 }
 0x34c   :  { %v4529_v11 = vadd.f32 %v727_v10, %v4497_v44  ;;  %v3561_v1 = vpop.f32.mrb[6].mxu0 }
 0x34d   :  { %v739_v12 = vadd.f32 %v3561_v1, %v4512_v52  ;;  %v730_v13 = vpop.f32.mrb[7].mxu0  ;;  %v748_v9 = vsel %vm393_vm2, %v4533_v14, -inf }
 0x34e   :  { %v742_v5 = vsel %vm393_vm2, %v4529_v11, -inf  ;;  %v731_v15 = vadd.f32 %v730_v13, %v4503_v47 }
 0x34f   :  { %743 = vmax.xlane.f32.xlu0 %v742_v5  ;;  %v751_v16 = vsel %vm393_vm2, %v739_v12, -inf }
 0x350   :  { %752 = vmax.xlane.f32.xlu1 %v751_v16  ;;  %v745_v19 = vsel %vm393_vm2, %v731_v15, -inf }
 0x353   :  { %749 = vmax.xlane.f32.xlu0 %v748_v9 }
 0x354   :  { %746 = vmax.xlane.f32.xlu1 %v745_v19 }
 0x365   :  { %614 = vrot.lane.b32.xlu1 %v4451_v25, %s4189_s27 }
 0x369   :  { %788 = vrot.lane.b32.xlu1 %v4439_v18, %s4190_s28 }
 0x3c7   :  { %v402_v20 = vpop.xlane.xlu0 %401 }
 0x3c8   :  { %v408_v21 = vsub.f32 %v387_v45, %v402_v20 }
 0x3ca   :  { %v414_v23 = vmul.f32 1.442695, %v408_v21  ;;  %v399_v26 = vpop.xlane.xlu1 %398 }
 0x3cb   :  { %v396_v27 = vpop.xlane.xlu0 %395  ;;  %v407_v32 = vsub.f32 %v382_v53, %v399_v26 }
 0x3cc   :  { %3879 = vpow2.f32 %v414_v23  ;;  %v406_v37 = vsub.f32 %v4506_v49, %v396_v27 }
 0x3cd   :  { %v412_v39 = vmul.f32 1.442695, %v407_v32 }
 0x3ce   :  { %v575_v28 = vpop.xlane.xlu1 %574  ;;  %v410_v46 = vmul.f32 1.442695, %v406_v37 }
 0x3cf   :  { %v579_v29 = vsub.f32 %v561_v59, %v575_v28  ;;  %v405_v30 = vpop.xlane.xlu0 %404 }
 0x3d0   :  { %v409_v31 = vsub.f32 %v390_v58, %v405_v30 }
 0x3d1   :  { %v586_v33 = vmul.f32 1.442695, %v579_v29 }
 0x3d2   :  { %v416_v34 = vmul.f32 1.442695, %v409_v31  ;;  %v569_v35 = vpop.xlane.xlu1 %568 }
 0x3d3   :  { %v566_v36 = vpop.xlane.xlu0 %565  ;;  %v577_v40 = vsub.f32 %v553_v63, %v569_v35 }
 0x3d4   :  { %3881 = vpow2.f32 %v416_v34  ;;  %v576_v48 = vsub.f32 %v550_v2, %v566_v36 }
 0x3d5   :  { %3883 = vpow2.f32 %v586_v33  ;;  %v582_v50 = vmul.f32 1.442695, %v577_v40 }
 0x3d6   :  { %v4547_v38 = vpop.eup %3879  ;;  %3885 = vpow2.f32 %v412_v39  ;;  %v580_v53 = vmul.f32 1.442695, %v576_v48 }
 0x3d7   :  { %v572_v41 = vpop.xlane.xlu0 %571  ;;  %v424_v43 = vsel %vm393_vm2, %v4547_v38, 0.0 }
 0x3d8   :  { %v578_v45 = vsub.f32 %v558_v0, %v572_v41  ;;  %425 = vadd.xlane.f32.xlu0 %v424_v43 }
 0x3da   :  { %v584_v51 = vmul.f32 1.442695, %v578_v45 }
 0x3dc   :  { %3887 = vpow2.f32 %v584_v51  ;;  %v744_v16 = vpop.xlane.xlu0 %743 }
 0x3dd   :  { %3889 = vpow2.f32 %v410_v46  ;;  %v753_v49 = vpop.xlane.xlu1 %752  ;;  %v754_v20 = vsub.f32 %v4529_v11, %v744_v16 }
 0x3de   :  { %v4551_v54 = vpop.eup %3881  ;;  %3891 = vpow2.f32 %v582_v50  ;;  %v757_v55 = vsub.f32 %v739_v12, %v753_v49 }
 0x3df   :  { %v427_v56 = vsel %vm393_vm2, %v4551_v54, 0.0  ;;  %v4555_v57 = vpop.eup %3883  ;;  %3893 = vpow2.f32 %v580_v53  ;;  %v758_v23 = vmul.f32 1.442695, %v754_v20 }
 0x3e0   :  { %v764_v58 = vmul.f32 1.442695, %v757_v55  ;;  %428 = vadd.xlane.f32.xlu1 %v427_v56  ;;  %v597_v61 = vsel %vm393_vm2, %v4555_v57, 0.0  ;;  %v4559_v62 = vpop.eup %3885  ;;  %v750_v9 = vpop.xlane.xlu0 %749 }
 0x3e1   :  { %v747_v59 = vpop.xlane.xlu1 %746  ;;  %v421_v4 = vsel %vm393_vm2, %v4559_v62, 0.0  ;;  %v756_v19 = vsub.f32 %v4533_v14, %v750_v9 }
 0x3e2   :  { %3895 = vpow2.f32 %v764_v58  ;;  %v755_v60 = vsub.f32 %v731_v15, %v747_v59 }
 0x3e3   :  { %v762_v21 = vmul.f32 1.442695, %v756_v19 }
 0x3e4   :  { %v760_v63 = vmul.f32 1.442695, %v755_v60  ;;  %598 = vadd.xlane.f32.xlu1 %v597_v61 }
 0x3e6   :  { %v4561_v2 = vpop.eup %3887  ;;  %3897 = vpow2.f32 %v760_v63 }
 0x3e7   :  { %v4563_v3 = vpop.eup %3889  ;;  %v594_v0 = vsel %vm393_vm2, %v4561_v2, 0.0  ;;  %3899 = vpow2.f32 %v762_v21 }
 0x3e8   :  { %v4569_v6 = vpop.eup %3891  ;;  %422 = vadd.xlane.f32.xlu1 %v421_v4  ;;  %595 = vadd.xlane.f32.xlu0 %v594_v0  ;;  %v418_v10 = vsel %vm393_vm2, %v4563_v3, 0.0  ;;  %3901 = vpow2.f32 %v758_v23 }
 0x3e9   :  { %v4571_v7 = vpop.eup %3893  ;;  %v591_v8 = vsel %vm393_vm2, %v4569_v6, 0.0 }
 0x3ea   :  { %v588_v13 = vsel %vm393_vm2, %v4571_v7, 0.0 }
 0x3ec   :  { %v4577_v1 = vpop.eup %3895  ;;  %592 = vadd.xlane.f32.xlu1 %v591_v8  ;;  %419 = vadd.xlane.f32.xlu0 %v418_v10 }
 0x3ed   :  { %v775_v12 = vsel %vm393_vm2, %v4577_v1, 0.0 }
 0x3f0   :  { %v4583_v5 = vpop.eup %3897  ;;  %776 = vadd.xlane.f32.xlu1 %v775_v12  ;;  %589 = vadd.xlane.f32.xlu0 %v588_v13 }
 0x3f1   :  { %v769_v15 = vsel %vm393_vm2, %v4583_v5, 0.0  ;;  %v4597_v26 = vpop.eup %3899 }
 0x3f2   :  { %v772_v27 = vsel %vm393_vm2, %v4597_v26, 0.0  ;;  %v4601_v28 = vpop.eup %3901 }
 0x3f3   :  { %v766_v29 = vsel %vm393_vm2, %v4601_v28, 0.0 }
 0x3f4   :  { %770 = vadd.xlane.f32.xlu1 %v769_v15 }
 0x405   :  { %790 = vrot.lane.b32.xlu1 %v4451_v25, %s4190_s28 }
 0x406   :  { %612 = vrot.lane.b32.xlu0 %v4439_v18, %s4189_s27 }
 0x409   :  { %855 = vrot.lane.b32.xlu1 %v4449_v22, %s4181_s30 }
 0x40d   :  { %851 = vrot.lane.b32.xlu1 %v4449_v22, %s4192_s20  ;;  %v615_v22 = vpop.permute.xlu1 %614 }
 0x411   :  { %v789_v11 = vpop.permute.xlu1 %788 }
 0x425   :  { %773 = vadd.xlane.f32.xlu0 %v772_v27 }
 0x429   :  { %767 = vadd.xlane.f32.xlu0 %v766_v29 }
 0x43f   :  { %853 = vrot.lane.b32.xlu0 %v4437_v17, %s4181_s30 }
 0x443   :  { %849 = vrot.lane.b32.xlu0 %v4437_v17, %s4192_s20 }
 0x465   :  { %v426_v30 = vpop.xlane.xlu0 %425 }
 0x46d   :  { %v429_v14 = vpop.xlane.xlu1 %428 }
 0x46e   :  { %3903 = vrcp.f32 %v429_v14 }
 0x471   :  { %v599_v31 = vpop.xlane.xlu1 %598 }
 0x475   :  { %v423_v32 = vpop.xlane.xlu1 %422  ;;  %v596_v33 = vpop.xlane.xlu0 %595 }
 0x476   :  { %3905 = vrcp.f32 %v423_v32 }
 0x477   :  { %3907 = vrcp.f32 %v426_v30 }
 0x478   :  { %v3904_v39 = vpop.eup %3903 }
 0x479   :  { %v420_v34 = vpop.xlane.xlu0 %419  ;;  %v593_v35 = vpop.xlane.xlu1 %592  ;;  %v437_v43 = vmul.f32 %v3904_v39, %v4551_v54 }
 0x47a   :  { %3909 = vrcp.f32 %v420_v34 }
 0x47b   :  { %3911 = vrcp.f32 %v593_v35 }
 0x47d   :  { %v590_v36 = vpop.xlane.xlu0 %589  ;;  %v777_v51 = vpop.xlane.xlu1 %776 }
 0x47e   :  { %3913 = vrcp.f32 %v590_v36 }
 0x47f   :  { %3915 = vrcp.f32 %v596_v33 }
 0x480   :  { %3917 = vrcp.f32 %v599_v31  ;;  %v3906_v17 = vpop.eup %3905 }
 0x481   :  { %v613_v37 = vpop.permute.xlu0 %612  ;;  %v3908_v40 = vpop.eup %3907  ;;  %v435_v46 = vmul.f32 %v3906_v17, %v4559_v62 }
 0x482   :  { %3546 = vmatprep.subr.bf16.mxu1 %v613_v37  ;;  %v436_v50 = vmul.f32 %v3908_v40, %v4547_v38  ;;  %v771_v38 = vpop.xlane.xlu1 %770 }
 0x484   :  { %v3910_v41 = vpop.eup %3909  ;;  %v439_v55 = vpack.c.bf16 %v437_v43, %v436_v50 }
 0x485   :  { %v434_v45 = vmul.f32 %v3910_v41, %v4563_v3  ;;  %v3912_v48 = vpop.eup %3911 }
 0x486   :  { %v605_v59 = vmul.f32 %v3912_v48, %v4569_v6  ;;  %v791_v3 = vpop.permute.xlu1 %790 }
 0x487   :  { %v438_v53 = vpack.c.bf16 %v435_v46, %v434_v45 }
 0x488   :  { %v3914_v49 = vpop.eup %3913 }
 0x489   :  { %v3916_v56 = vpop.eup %3915  ;;  %3534 = vmatprep.mubr.msk.bf16.mxu1 %vm393_vm2, %v438_v53  ;;  %v604_v58 = vmul.f32 %v3914_v49, %v4571_v7 }
 0x48a   :  { %3535 = vmatmul.mubr.msk.bf16.vlgmr.msra.gmra.mrb[12].mxu1 %vm393_vm2, %v439_v55  ;;  %v3918_v54 = vpop.eup %3917  ;;  %v606_v61 = vmul.f32 %v3916_v56, %v4561_v2  ;;  %v856_v21 = vpop.permute.xlu1 %855 }
 0x48b   :  { %3547 = vmatpush3.bf16.msra.mxu1 %v613_v37  ;;  %v608_v60 = vpack.c.bf16 %v605_v59, %v604_v58  ;;  %v607_v62 = vmul.f32 %v3918_v54, %v4555_v57  ;;  %v867_v23 = vsel %vm331_vm1, %v856_v21, 0 }
 0x48c   :  { %3548 = vmatprep.subr.bf16.mxu1 %v615_v22 }
 0x48d   :  { %3550 = vmatprep.mubr.msk.bf16.mxu1 %vm393_vm2, %v608_v60  ;;  %v609_v63 = vpack.c.bf16 %v607_v62, %v606_v61 }
 0x48f   :  { %3549 = vmatpush3.bf16.msra.mxu1 %v615_v22 }
 0x490   :  { %3562 = vmatprep.subr.bf16.mxu1 %v789_v11 }
 0x492   :  { %3551 = vmatmul.mubr.msk.bf16.vlgmr.msra.gmra.mrb[16].mxu1 %vm393_vm2, %v609_v63 }
 0x493   :  { %3563 = vmatpush3.bf16.msra.mxu1 %v789_v11 }
 0x494   :  { %3564 = vmatprep.subr.bf16.mxu1 %v791_v3 }
 0x497   :  { %3565 = vmatpush3.bf16.msra.mxu1 %v791_v3 }
 0x4b2   :  { %v774_v4 = vpop.xlane.xlu0 %773 }
 0x4b3   :  { %3919 = vrcp.f32 %v774_v4 }
 0x4b4   :  { %3921 = vrcp.f32 %v771_v38 }
 0x4b5   :  { %3923 = vrcp.f32 %v777_v51 }
 0x4b6   :  { %v768_v2 = vpop.xlane.xlu0 %767 }
 0x4b7   :  { %3925 = vrcp.f32 %v768_v2 }
 0x4ba   :  { %v854_v0 = vpop.permute.xlu0 %853 }
 0x4bb   :  { %3692 = vmatprep.subr.msk.bf16.mxu1 %vm331_vm1, %v854_v0  ;;  %v864_v20 = vsel %vm331_vm1, %v854_v0, 0 }
 0x4bd   :  { %v3920_v6 = vpop.eup %3919 }
 0x4be   :  { %v3922_v57 = vpop.eup %3921  ;;  %v784_v10 = vmul.f32 %v3920_v6, %v4597_v26  ;;  %v850_v19 = vpop.permute.xlu0 %849 }
 0x4bf   :  { %v3924_v7 = vpop.eup %3923  ;;  %v783_v13 = vmul.f32 %v3922_v57, %v4583_v5  ;;  %v852_v5 = vpop.permute.xlu1 %851 }
 0x4c0   :  { %v785_v15 = vmul.f32 %v3924_v7, %v4577_v1 }
 0x4c1   :  { %v3926_v8 = vpop.eup %3925 }
 0x4c2   :  { %v782_v12 = vmul.f32 %v3926_v8, %v4601_v28  ;;  %v787_v9 = vpack.c.bf16 %v785_v15, %v784_v10 }
 0x4c4   :  { %v786_v16 = vpack.c.bf16 %v783_v13, %v782_v12 }
 0x4c6   :  { %3566 = vmatprep.mubr.msk.bf16.mxu1 %vm393_vm2, %v786_v16 }
 0x4c7   :  { %3567 = vmatmul.mubr.msk.bf16.vlgmr.msra.gmra.mrb[20].mxu1 %vm393_vm2, %v787_v9 }
 0x4c8   :  { %3571 = vmatpush3.bf16.xpose.msra.mxu1 %v864_v20  ;;  %3574 = vmatprep.mubr.msk.bf16.mxu1 %vm331_vm1, %v850_v19 }
 0x4c9   :  { %3693 = vmatprep.subr.msk.bf16.mxu1 %vm331_vm1, %v856_v21 }
 0x4d0   :  { %3573 = vmatpush3.bf16.xpose.msra.mxu1 %v867_v23 }
 0x4d7   :  { %3575 = vmatmul.mubr.msk.bf16.vlgmr.msra.gmra.mrb[24].mxu1 %vm331_vm1, %v852_v5 }
 0x4d8   :  { %1372 = vmatprep.mubr.bf16.mxu1 %v4186_v24 }
 0x55d   :  { %v4634_v1 = vpop.f32.mrb[12].mxu1 }
 0x55e   :  { %v4636_v26 = vpop.f32.mrb[13].mxu1 }
 0x55f   :  { %v4638_v27 = vpop.f32.mrb[14].mxu1 }
 0x560   :  { %v4640_v28 = vpop.f32.mrb[15].mxu1 }
 0x565   :  { %v3552_v29 = vpop.f32.mrb[16].mxu1 }
 0x566   :  { %v658_v22 = vpop.f32.mrb[17].mxu1 }
 0x567   :  { %v3553_v11 = vpop.f32.mrb[18].mxu1 }
 0x568   :  { %v3724_v14 = vpack.i.bf16 %v3553_v11, %v3552_v29  ;;  %v661_v30 = vpop.f32.mrb[19].mxu1  ;;  %v3792_v11 = vld [vmem:[%s5311_s5 + $0x8] sm:$0xff]  }
 0x569   :  { %v3719_v31 = vpack.i.bf16 %v661_v30, %v658_v22  ;;  %v3791_v22 = vld [vmem:[%s5311_s5] sm:$0xff]   ;;  %v3794_v30 = vld [vmem:[%s5311_s5 + $0x18] sm:$0xff]  }
 0x59a   :  { %v3568_v32 = vpop.f32.mrb[20].mxu1 }
 0x59b   :  { %v834_v33 = vpop.f32.mrb[21].mxu1 }
 0x59c   :  { %v3569_v34 = vpop.f32.mrb[22].mxu1 }
 0x59d   :  { %v3734_v35 = vpack.i.bf16 %v3569_v34, %v3568_v32  ;;  %v837_v36 = vpop.f32.mrb[23].mxu1 }
 0x59e   :  { %v3729_v37 = vpack.i.bf16 %v837_v36, %v834_v33 }
 0x5aa   :  { %v3576_v39 = vpop.f32.mrb[24].mxu1 }
 0x5ab   :  { %v903_v17 = vpop.f32.mrb[25].mxu1  ;;  %v912_v45 = vadd.f32 %v3576_v39, %v4492_v42 }
 0x5ac   :  { %v904_v40 = vadd.f32 %v903_v17, %v4497_v44  ;;  %v3577_v41 = vpop.f32.mrb[26].mxu1 }
 0x5ad   :  { %v906_v43 = vpop.f32.mrb[27].mxu1  ;;  %v915_v51 = vadd.f32 %v3577_v41, %v4512_v52  ;;  %v924_v53 = vsel %vm393_vm2, %v912_v45, -inf }
 0x5ae   :  { %v907_v46 = vadd.f32 %v906_v43, %v4503_v47  ;;  %v918_v48 = vsel %vm393_vm2, %v904_v40, -inf }
 0x5af   :  { %919 = vmax.xlane.f32.xlu0 %v918_v48  ;;  %v927_v49 = vsel %vm393_vm2, %v915_v51, -inf }
 0x5b0   :  { %v921_v50 = vsel %vm393_vm2, %v907_v46, -inf }
 0x5b1   :  { %922 = vmax.xlane.f32.xlu1 %v921_v50 }
 0x5b3   :  { %925 = vmax.xlane.f32.xlu0 %v924_v53 }
 0x5b7   :  { %928 = vmax.xlane.f32.xlu0 %v927_v49 }
 0x63c   :  { %v920_v44 = vpop.xlane.xlu0 %919 }
 0x63d   :  { %v930_v55 = vsub.f32 %v904_v40, %v920_v44 }
 0x63e   :  { %v923_v56 = vpop.xlane.xlu1 %922 }
 0x63f   :  { %v934_v47 = vmul.f32 1.442695, %v930_v55  ;;  %v931_v59 = vsub.f32 %v907_v46, %v923_v56 }
 0x640   :  { %v926_v42 = vpop.xlane.xlu0 %925 }
 0x641   :  { %v932_v58 = vsub.f32 %v912_v45, %v926_v42  ;;  %v936_v38 = vmul.f32 1.442695, %v931_v59 }
 0x643   :  { %v938_v54 = vmul.f32 1.442695, %v932_v58 }
 0x644   :  { %v929_v60 = vpop.xlane.xlu0 %928 }
 0x645   :  { %3927 = vpow2.f32 %v938_v54  ;;  %v933_v61 = vsub.f32 %v915_v51, %v929_v60 }
 0x646   :  { %3929 = vpow2.f32 %v934_v47 }
 0x647   :  { %v940_v52 = vmul.f32 1.442695, %v933_v61 }
 0x649   :  { %3931 = vpow2.f32 %v940_v52 }
 0x64a   :  { %3933 = vpow2.f32 %v936_v38 }
 0x64f   :  { %v3928_v62 = vpop.eup %3927 }
 0x650   :  { %v948_v63 = vsel %vm393_vm2, %v3928_v62, 0.0  ;;  %v3930_v3 = vpop.eup %3929 }
 0x651   :  { %949 = vadd.xlane.f32.xlu0 %v948_v63  ;;  %v942_v2 = vsel %vm393_vm2, %v3930_v3, 0.0 }
 0x653   :  { %v3932_v4 = vpop.eup %3931 }
 0x654   :  { %v951_v0 = vsel %vm393_vm2, %v3932_v4, 0.0  ;;  %v3934_v6 = vpop.eup %3933 }
 0x655   :  { %943 = vadd.xlane.f32.xlu0 %v942_v2  ;;  %952 = vadd.xlane.f32.xlu1 %v951_v0  ;;  %v945_v57 = vsel %vm393_vm2, %v3934_v6, 0.0  ;;  %v3225_v2 = vld [vmem:[#allocation7] ss:$0 sm:$0xff] }
 0x659   :  { %946 = vadd.xlane.f32.xlu1 %v945_v57 }
 0x66a   :  { %966 = vrot.lane.b32.xlu1 %v4451_v25, %s4192_s20 }
 0x66b   :  { %964 = vrot.lane.b32.xlu0 %v4439_v18, %s4192_s20 }
 0x66e   :  { %3720 = vrot.lane.b32.xlu1 %v3719_v31, %s4181_s30 }
 0x66f   :  { %3730 = vrot.lane.b32.xlu0 %v3729_v37, %s4191_s7 }
 0x672   :  { %3725 = vrot.lane.b32.xlu1 %v3724_v14, %s4181_s30  ;;  %v3793_v14 = vld [vmem:[%s5311_s5 + $0x10] sm:$0xff]  }
 0x676   :  { %3735 = vrot.lane.b32.xlu1 %v3734_v35, %s4191_s7 }
 0x6de   :  { %v950_v7 = vpop.xlane.xlu0 %949 }
 0x6e2   :  { %v953_v8 = vpop.xlane.xlu1 %952  ;;  %v944_v10 = vpop.xlane.xlu0 %943 }
 0x6e3   :  { %3935 = vrcp.f32 %v953_v8 }
 0x6e4   :  { %3937 = vrcp.f32 %v944_v10 }
 0x6e5   :  { %3939 = vrcp.f32 %v950_v7 }
 0x6e6   :  { %v947_v12 = vpop.xlane.xlu1 %946  ;;  %v965_v13 = vpop.permute.xlu0 %964 }
 0x6e7   :  { %3941 = vrcp.f32 %v947_v12  ;;  %3578 = vmatprep.subr.bf16.mxu0 %v965_v13  ;;  %v4032_v12 = vld [vmem:[%s5306_s0 + $0x18] sm:$0xff] }
 0x6e8   :  { %3579 = vmatpush3.bf16.msra.mxu0 %v965_v13 }
 0x6ea   :  { %v967_v18 = vpop.permute.xlu1 %966  ;;  %v3731_v40 = vpop.permute.xlu0 %3730 }
 0x6eb   :  { %3580 = vmatprep.subr.bf16.mxu0 %v967_v18  ;;  %v3733_v51 = vunpack.i.h.bf16 %v3731_v40  ;;  %v3732_v53 = vunpack.i.l.bf16 %v3731_v40  ;;  %v3801_v40 = vld [vmem:[%s5315_s9 + $0x20] ss:$8 sps:$4 sm:$0xff]  }
 0x6ec   :  { %3581 = vmatpush3.bf16.msra.mxu0 %v967_v18  ;;  %v4033_v18 = vld [vmem:[%s5306_s0 + $0x8] sm:$0xff] }
 0x6ed   :  { %v3936_v25 = vpop.eup %3935  ;;  %3586 = vmatprep.subr.bf16.mxu0 %v3791_v22 }
 0x6ee   :  { %v3938_v15 = vpop.eup %3937  ;;  %v961_v19 = vmul.f32 %v3936_v25, %v3932_v4  ;;  %v3721_v37 = vpop.permute.xlu1 %3720 }
 0x6ef   :  { %v3940_v16 = vpop.eup %3939  ;;  %v958_v20 = vmul.f32 %v3938_v15, %v3930_v3  ;;  %v3723_v41 = vunpack.i.h.bf16 %v3721_v37  ;;  %v3722_v43 = vunpack.i.l.bf16 %v3721_v37  ;;  %v3800_v37 = vld [vmem:[%s5315_s9 + $0x14] ss:$8 sps:$4 sm:$0xff]  }
 0x6f0   :  { %v960_v23 = vmul.f32 %v3940_v16, %v3928_v62 }
 0x6f1   :  { %v3942_v9 = vpop.eup %3941  ;;  %v1074_v49 = vsel %vm331_vm1, %v4640_v28, %v3723_v41  ;;  %v1073_v44 = vsel %vm331_vm1, %v4636_v26, %v3722_v43  ;;  %v3806_v41 = vld [vmem:[%s5315_s9 + $0x34] ss:$8 sps:$4 sm:$0xff]   ;;  %v3804_v43 = vld [vmem:[%s5315_s9 + $0x30] ss:$8 sps:$4 sm:$0xff]  }
 0x6f2   :  { %v959_v21 = vmul.f32 %v3942_v9, %v3934_v6  ;;  %v963_v29 = vpack.c.bf16 %v961_v19, %v960_v23  ;;  %v3726_v39 = vpop.permute.xlu1 %3725  ;;  %v1077_v52 = vsel %vm393_vm2, %v1073_v44, %v3732_v53  ;;  %v4031_v6 = vld [vmem:[%s5306_s0] sm:$0xff]  ;;  %v3812_v53 = vld [vmem:[%s5317_s11 + $0x10] sm:$0xff]   ;;  %v3814_v44 = vld [vmem:[%s5317_s11 + $0x18] sm:$0xff]  }
 0x6f3   :  { %v3728_v45 = vunpack.i.h.bf16 %v3726_v39  ;;  %v3727_v46 = vunpack.i.l.bf16 %v3726_v39  ;;  %v3798_v39 = vld [vmem:[%s5315_s9 + $0x10] ss:$8 sps:$4 sm:$0xff]  }
 0x6f4   :  { %v962_v5 = vpack.c.bf16 %v959_v21, %v958_v20  ;;  %v4034_v21 = vld [vmem:[%s5306_s0 + $0x10] sm:$0xff] }
 0x6f5   :  { %v1076_v56 = vsel %vm331_vm1, %v4638_v27, %v3728_v45  ;;  %v1075_v42 = vsel %vm331_vm1, %v4634_v1, %v3727_v46  ;;  %v1078_v27 = vsel %vm393_vm2, %v1074_v49, %v3733_v51  ;;  %v3807_v45 = vld [vmem:[%s5317_s11 + $0x40] sm:$0xff]   ;;  %v3811_v51 = vld [vmem:[%s5317_s11 + $0x50] sm:$0xff]   ;;  %v3813_v49 = vld [vmem:[%s5317_s11 + $0x58] sm:$0xff]  }
 0x6f6   :  { %3582 = vmatprep.mubr.msk.bf16.mxu0 %vm393_vm2, %v962_v5  ;;  %v3736_v17 = vpop.permute.xlu1 %3735  ;;  %v3808_v46 = vld [vmem:[%s5317_s11] sm:$0xff]  }
 0x6f7   :  { %3583 = vmatmul.mubr.msk.bf16.vlgmr.msra.gmra.mrb[8].mxu0 %vm393_vm2, %v963_v29  ;;  %v3738_v48 = vunpack.i.h.bf16 %v3736_v17  ;;  %v3737_v50 = vunpack.i.l.bf16 %v3736_v17  ;;  %v3803_v17 = vld [vmem:[%s5315_s9 + $0x24] ss:$8 sps:$4 sm:$0xff]  }
 0x6f8   :  { %3587 = vmatpush3.bf16.msra.mxu0 %v3791_v22 }
 0x6f9   :  { %3588 = vmatprep.subr.bf16.mxu0 %v3792_v11  ;;  %v1079_v54 = vsel %vm393_vm2, %v1075_v42, %v3737_v50  ;;  %v1080_v60 = vsel %vm393_vm2, %v1076_v56, %v3738_v48  ;;  %v3809_v48 = vld [vmem:[%s5317_s11 + $0x48] sm:$0xff]   ;;  %v3816_v56 = vld [vmem:[%s5317_s11 + $0x20] sm:$0xff]  }
 0x6fa   :  { %v3810_v50 = vld [vmem:[%s5317_s11 + $0x8] sm:$0xff]  }
 0x6fb   :  { %v3817_v42 = vld [vmem:[%s5317_s11 + $0x68] sm:$0xff]  }
 0x6fc   :  { %3589 = vmatpush3.bf16.msra.mxu0 %v3792_v11 }
 0x6fd   :  { %3590 = vmatprep.subr.bf16.mxu0 %v3793_v14 }
 0x700   :  { %3591 = vmatpush3.bf16.msra.mxu0 %v3793_v14 }
 0x701   :  { %3592 = vmatprep.subr.bf16.mxu0 %v3794_v30 }
 0x704   :  { %3593 = vmatpush3.bf16.msra.mxu0 %v3794_v30 }
 0x705   :  { %3422 = vmatprep.subr.bf16.mxu0 %v3807_v45 }
 0x7ca   :  { %v3584_v31 = vpop.f32.mrb[8].mxu0 }
 0x7cb   :  { %v1010_v32 = vpop.f32.mrb[9].mxu0 }
 0x7cc   :  { %v3585_v33 = vpop.f32.mrb[10].mxu0 }
 0x7cd   :  { %v3744_v34 = vpack.i.bf16 %v3585_v33, %v3584_v31  ;;  %v1013_v35 = vpop.f32.mrb[11].mxu0 }
 0x7ce   :  { %v3739_v36 = vpack.i.bf16 %v1013_v35, %v1010_v32  ;;  %v3797_v35 = vld [vmem:[%s5315_s9 + $0x4] ss:$8 sps:$4 sm:$0xff]  }
 0x7cf   :  { %3745 = vrot.lane.b32.xlu1 %v3744_v34, %s4187_s16  ;;  %1340 = vmatprep.subr.bf16.mxu1 %v3797_v35 }
 0x7d0   :  { %3740 = vrot.lane.b32.xlu0 %v3739_v36, %s4187_s16  ;;  %v3795_v36 = vld [vmem:[%s5315_s9] ss:$8 sps:$4 sm:$0xff]  }
 0x7d1   :  { %1341 = vmatpush1.bf16.msra.mxu1 %v3795_v36 }
 0x7d2   :  { %1342 = vmatprep.subr.bf16.mxu1 %v3800_v37 }
 0x7d5   :  { %1343 = vmatpush1.bf16.msra.mxu1 %v3798_v39 }
 0x7d6   :  { %1344 = vmatprep.subr.bf16.mxu1 %v3803_v17 }
 0x7d9   :  { %1345 = vmatpush1.bf16.msra.mxu1 %v3801_v40 }
 0x7da   :  { %1346 = vmatprep.subr.bf16.mxu1 %v3806_v41 }
 0x7dd   :  { %1347 = vmatpush1.bf16.msra.mxu1 %v3804_v43 }
 0x841   :  { %v3746_v55 = vpop.permute.xlu1 %3745 }
 0x842   :  { %v3748_v58 = vunpack.i.h.bf16 %v3746_v55  ;;  %v3747_v47 = vunpack.i.l.bf16 %v3746_v55  ;;  %v3741_v59 = vpop.permute.xlu0 %3740  ;;  %v3815_v55 = vld [vmem:[%s5317_s11 + $0x60] sm:$0xff]  }
 0x843   :  { %v3743_v61 = vunpack.i.h.bf16 %v3741_v59  ;;  %v3742_v28 = vunpack.i.l.bf16 %v3741_v59 }
 0x844   :  { %v1085_v38 = vsel %vm1081_vm3, %v1080_v60, %v3748_v58  ;;  %v1084_v26 = vsel %vm1081_vm3, %v1079_v54, %v3747_v47 }
 0x845   :  { %v1087_v62 = vpack.c.bf16 %v1085_v38, %v1084_v26  ;;  %v1082_v1 = vsel %vm1081_vm3, %v1077_v52, %v3742_v28  ;;  %v1083_v63 = vsel %vm1081_vm3, %v1078_v27, %v3743_v61 }
 0x846   :  { %v1086_v3 = vpack.c.bf16 %v1083_v63, %v1082_v1 }
 0x848   :  { %3594 = vmatprep.mubr.msk.bf16.mxu0 %vm130_vm0, %v1086_v3 }
 0x849   :  { %3595 = vmatmul.mubr.msk.bf16.vlgmr.msra.gmra.mrb[12].mxu0 %vm130_vm0, %v1087_v62 }
 0x84a   :  { %3423 = vmatpush3.bf16.msra.mxu0 %v3808_v46 }
 0x84b   :  { %3424 = vmatprep.subr.bf16.mxu0 %v3809_v48 }
 0x84e   :  { %3425 = vmatpush3.bf16.msra.mxu0 %v3810_v50 }
 0x84f   :  { %3426 = vmatprep.subr.bf16.mxu0 %v3811_v51  ;;  %v3818_v51 = vld [vmem:[%s5317_s11 + $0x28] sm:$0xff]  }
 0x852   :  { %3427 = vmatpush3.bf16.msra.mxu0 %v3812_v53  ;;  %v3819_v53 = vld [vmem:[%s5317_s11 + $0x70] sm:$0xff]  }
 0x853   :  { %3428 = vmatprep.subr.bf16.mxu0 %v3813_v49  ;;  %v3820_v49 = vld [vmem:[%s5317_s11 + $0x30] sm:$0xff]  }
 0x856   :  { %3429 = vmatpush3.bf16.msra.mxu0 %v3814_v44  ;;  %v3821_v44 = vld [vmem:[%s5317_s11 + $0x78] sm:$0xff]  }
 0x857   :  { %3430 = vmatprep.subr.bf16.mxu0 %v3815_v55  ;;  %v3822_v55 = vld [vmem:[%s5317_s11 + $0x38] sm:$0xff]  }
 0x85a   :  { %3431 = vmatpush3.bf16.msra.mxu0 %v3816_v56  ;;  %v1284_v56 = vlaneseq }
 0x85b   :  { %3432 = vmatprep.subr.bf16.mxu0 %v3817_v42 }
 0x85c   :  { %v4816_v42 = vshrl.u32 %v1284_v56, 7 }
 0x85e   :  { %3433 = vmatpush3.bf16.msra.mxu0 %v3818_v51 }
 0x85f   :  { %3434 = vmatprep.subr.bf16.mxu0 %v3819_v53 }
 0x862   :  { %3435 = vmatpush3.bf16.msra.mxu0 %v3820_v49 }
 0x863   :  { %3436 = vmatprep.subr.bf16.mxu0 %v3821_v44 }
 0x866   :  { %3437 = vmatpush3.bf16.msra.mxu0 %v3822_v55 }
 0x91c   :  { %v3596_v4 = vpop.f32.mrb[12].mxu0 }
 0x91d   :  { %v1160_v0 = vpop.f32.mrb[13].mxu0  ;;  %v1177_v23 = vadd.f32 %v4034_v21, %v3596_v4 }
 0x91e   :  { %v1175_v57 = vadd.f32 %v4031_v6, %v1160_v0  ;;  %v3597_v7 = vpop.f32.mrb[14].mxu0 }
 0x91f   :  { %v1163_v8 = vpop.f32.mrb[15].mxu0  ;;  %v1178_v13 = vadd.f32 %v4032_v12, %v3597_v7  ;;  %v4727_v14 = vadd.f32 %v3225_v2, %v1177_v23 }
 0x920   :  { %v4699_v10 = vadd.f32 %v3225_v2, %v1175_v57  ;;  %v1176_v25 = vadd.f32 %v4033_v18, %v1163_v8 }
 0x921   :  { %v4713_v19 = vadd.f32 %v3225_v2, %v1178_v13  ;;  %v1198_v32 = vsel %vm130_vm0, %v4727_v14, 0.0  ;;  %v1210_v33 = vmul.f32 %v4727_v14, %v4727_v14 }
 0x922   :  { %v4707_v15 = vadd.f32 %v3225_v2, %v1176_v25  ;;  %v1192_v16 = vsel %vm130_vm0, %v4699_v10, 0.0  ;;  %v1208_v9 = vmul.f32 %v4699_v10, %v4699_v10 }
 0x923   :  { %1193 = vadd.xlane.f32.xlu0 %v1192_v16  ;;  %v1201_v22 = vsel %vm130_vm0, %v4713_v19, 0.0  ;;  %v1211_v11 = vmul.f32 %v4713_v19, %v4713_v19  ;;  %v1218_v34 = vsel %vm130_vm0, %v1210_v33, 0.0 }
 0x924   :  { %v1195_v20 = vsel %vm130_vm0, %v4707_v15, 0.0  ;;  %v1212_v5 = vsel %vm130_vm0, %v1208_v9, 0.0  ;;  %v1209_v29 = vmul.f32 %v4707_v15, %v4707_v15 }
 0x925   :  { %1196 = vadd.xlane.f32.xlu1 %v1195_v20  ;;  %v1221_v31 = vsel %vm130_vm0, %v1211_v11, 0.0 }
 0x926   :  { %v1215_v30 = vsel %vm130_vm0, %v1209_v29, 0.0 }
 0x927   :  { %1213 = vadd.xlane.f32.xlu0 %v1212_v5  ;;  %v3226_v5 = vld [vmem:[#allocation8] ss:$0 sm:$0xff] }
 0x929   :  { %1202 = vadd.xlane.f32.xlu1 %v1201_v22 }
 0x92b   :  { %1216 = vadd.xlane.f32.xlu0 %v1215_v30 }
 0x92d   :  { %1222 = vadd.xlane.f32.xlu1 %v1221_v31 }
 0x92f   :  { %1199 = vadd.xlane.f32.xlu0 %v1198_v32  ;;  %v3227_v32 = vld [vmem:[#allocation10] ss:$0 sm:$0xff] }
 0x933   :  { %1219 = vadd.xlane.f32.xlu0 %v1218_v34 }
 0x9b0   :  { %v1194_v58 = vpop.xlane.xlu0 %1193 }
 0x9b1   :  { %v1204_v47 = vmul.f32 0.015625, %v1194_v58  ;;  %v1286_v58 = vsub.s32 0, %v4816_v42 }
 0x9b2   :  { %v1197_v59 = vpop.xlane.xlu1 %1196 }
 0x9b3   :  { %v1228_v60 = vmul.f32 %v1204_v47, %v1204_v47  ;;  %v1205_v61 = vmul.f32 0.015625, %v1197_v59  ;;  %v1236_v9 = vsub.f32 %v4699_v10, %v1204_v47  ;;  %v1282_v47 = vld [vmem:[%s5316_s10] sm:$0x3]  ;;  %v1290_v59 = vsub.s32 1, %v4816_v42 }
 0x9b4   :  { %v1214_v54 = vpop.xlane.xlu0 %1213 }
 0x9b5   :  { %v1224_v28 = vmul.f32 0.015625, %v1214_v54  ;;  %v1229_v62 = vmul.f32 %v1205_v61, %v1205_v61  ;;  %v1237_v29 = vsub.f32 %v4707_v15, %v1205_v61  ;;  %v1287_v54 = vrot.slane %v1282_v47, %v1286_v58 }
 0x9b6   :  { %v1203_v38 = vpop.xlane.xlu1 %1202 }
 0x9b7   :  { %v1232_v26 = vsub.f32 %v1224_v28, %v1228_v60  ;;  %v1207_v52 = vmul.f32 0.015625, %v1203_v38  ;;  %v1291_v60 = vrot.slane %v1282_v47, %v1290_v59 }
 0x9b8   :  { %v1217_v27 = vpop.xlane.xlu0 %1216 }
 0x9b9   :  { %v1240_v1 = vadd.f32 1e-05, %v1232_v26  ;;  %v1225_v63 = vmul.f32 0.015625, %v1217_v27  ;;  %v1231_v4 = vmul.f32 %v1207_v52, %v1207_v52  ;;  %v1239_v33 = vsub.f32 %v4713_v19, %v1207_v52 }
 0x9ba   :  { %v1223_v3 = vpop.xlane.xlu1 %1222 }
 0x9bb   :  { %3943 = vrsqrt.f32 %v1240_v1  ;;  %v1233_v2 = vsub.f32 %v1225_v63, %v1229_v62  ;;  %v1227_v0 = vmul.f32 0.015625, %v1223_v3 }
 0x9bc   :  { %v1200_v6 = vpop.xlane.xlu0 %1199 }
 0x9bd   :  { %v1241_v57 = vadd.f32 1e-05, %v1233_v2  ;;  %v1235_v7 = vsub.f32 %v1227_v0, %v1231_v4  ;;  %v1206_v8 = vmul.f32 0.015625, %v1200_v6 }
 0x9bf   :  { %3945 = vrsqrt.f32 %v1241_v57  ;;  %v1243_v12 = vadd.f32 1e-05, %v1235_v7  ;;  %v1230_v18 = vmul.f32 %v1206_v8, %v1206_v8  ;;  %v1238_v39 = vsub.f32 %v4727_v14, %v1206_v8 }
 0x9c0   :  { %v1220_v13 = vpop.xlane.xlu0 %1219 }
 0x9c1   :  { %3947 = vrsqrt.f32 %v1243_v12  ;;  %v1226_v25 = vmul.f32 0.015625, %v1220_v13 }
 0x9c3   :  { %v1234_v16 = vsub.f32 %v1226_v25, %v1230_v18 }
 0x9c5   :  { %v3944_v20 = vpop.eup %3943  ;;  %v1242_v21 = vadd.f32 1e-05, %v1234_v16 }
 0x9c6   :  { %v1248_v23 = vmul.f32 %v3944_v20, %v1236_v9 }
 0x9c7   :  { %3949 = vrsqrt.f32 %v1242_v21 }
 0x9c8   :  { %v1258_v30 = vmul.f32 %v3226_v5, %v1248_v23 }
 0x9c9   :  { %v3946_v22 = vpop.eup %3945 }
 0x9ca   :  { %v1249_v11 = vmul.f32 %v3946_v22, %v1237_v29  ;;  %v1268_v35 = vadd.f32 %v3227_v32, %v1258_v30 }
 0x9cb   :  { %v3948_v31 = vpop.eup %3947 }
 0x9cc   :  { %v1259_v34 = vmul.f32 %v3226_v5, %v1249_v11  ;;  %v1251_v37 = vmul.f32 %v3948_v31, %v1239_v33 }
 0x9ce   :  { %v1269_v36 = vadd.f32 %v3227_v32, %v1259_v34  ;;  %v1261_v43 = vmul.f32 %v3226_v5, %v1251_v37 }
 0x9d0   :  { %v1272_v17 = vpack.c.bf16 %v1269_v36, %v1268_v35  ;;  %v1271_v48 = vadd.f32 %v3227_v32, %v1261_v43 }
 0x9d1   :  { %v3950_v40 = vpop.eup %3949 }
 0x9d2   :  { %3236 = vmatmul.mubr.msk.bf16.vlgmr.msra.gmra.mrb[28].mxu1 %vm130_vm0, %v1272_v17  ;;  %v1250_v41 = vmul.f32 %v3950_v40, %v1238_v39 }
 0x9d3   :  { %1382 = vmatprep.mubr.bf16.mxu1 %v4186_v24 }
 0x9d4   :  { %v1260_v45 = vmul.f32 %v3226_v5, %v1250_v41 }
 0x9d6   :  { %v1270_v46 = vadd.f32 %v3227_v32, %v1260_v45  ;;  %v3254_v32 = vld [vmem:[%s5318_s12] ss:$0 sm:$0xff] }
 0x9d8   :  { %v1273_v50 = vpack.c.bf16 %v1271_v48, %v1270_v46 }
 0x9da   :  { %3237 = vmatmul.mubr.msk.bf16.gmra.mrb[32].mxu1 %vm130_vm0, %v1273_v50 }
 0x9db   :  { %1770 = vmatprep.mubr.bf16.mxu1 %v4186_v24 }
 0xaa5   :  { %v1374_v61 = vpop.f32.mrb[28].mxu1 }
 0xaa6   :  { %v1375_v28 = vadd.f32 %v1374_v61, %v1287_v54  ;;  %v1376_v38 = vpop.f32.mrb[29].mxu1 }
 0xaa7   :  { %v1377_v26 = vadd.f32 %v1376_v38, %v1291_v60  ;;  %v1378_v52 = vpop.f32.mrb[30].mxu1  ;;  %v3823_v38 = vld [vmem:[%s5310_s4 + $0x40] ss:$8 sps:$4 sm:$0xff]  }
 0xaa8   :  { %v1379_v27 = vadd.f32 %v1378_v52, %v1287_v54  ;;  %v1380_v62 = vpop.f32.mrb[31].mxu1  ;;  %v1393_v63 = vmax.f32 %v1375_v28, 0.0  ;;  %v3825_v28 = vld [vmem:[%s5310_s4 + $0x44] ss:$8 sps:$4 sm:$0xff]   ;;  %v3826_v52 = vld [vmem:[%s5310_s4 + $0x50] ss:$8 sps:$4 sm:$0xff]  }
 0xaa9   :  { %v1381_v1 = vadd.f32 %v1380_v62, %v1291_v60  ;;  %v1394_v4 = vmax.f32 %v1377_v26, 0.0  ;;  %1738 = vmatprep.subr.bf16.mxu1 %v3825_v28  ;;  %v3828_v26 = vld [vmem:[%s5310_s4 + $0x54] ss:$8 sps:$4 sm:$0xff]   ;;  %v3829_v62 = vld [vmem:[%s5310_s4 + $0x60] ss:$8 sps:$4 sm:$0xff]  }
 0xaaa   :  { %v1395_v3 = vmax.f32 %v1379_v27, 0.0  ;;  %1739 = vmatpush1.bf16.msra.mxu1 %v3823_v38  ;;  %v3831_v27 = vld [vmem:[%s5310_s4 + $0x64] ss:$8 sps:$4 sm:$0xff]  }
 0xaab   :  { %v1396_v2 = vmax.f32 %v1381_v1, 0.0  ;;  %1740 = vmatprep.subr.bf16.mxu1 %v3828_v26  ;;  %v3834_v1 = vld [vmem:[%s5310_s4 + $0x74] ss:$8 sps:$4 sm:$0xff]  }
 0xaac   :  { %v1401_v0 = vpack.c.bf16 %v1395_v3, %v1393_v63  ;;  %v3832_v63 = vld [vmem:[%s5310_s4 + $0x70] ss:$8 sps:$4 sm:$0xff]   ;;  %s4193_s4 = smov [#allocation11]  }
 0xaad   :  { %v1402_v6 = vpack.c.bf16 %v1396_v2, %v1394_v4  ;;  %v1384_v57 = vpop.f32.mrb[32].mxu1 }
 0xaae   :  { %v1385_v7 = vadd.f32 %v1384_v57, %v1287_v54  ;;  %v1386_v8 = vpop.f32.mrb[33].mxu1  ;;  %1741 = vmatpush1.bf16.msra.mxu1 %v3826_v52 }
 0xaaf   :  { %v1387_v12 = vadd.f32 %v1386_v8, %v1291_v60  ;;  %v1388_v13 = vpop.f32.mrb[34].mxu1  ;;  %1565 = vmatprep.mubr.bf16.mxu0 %v1402_v6  ;;  %1742 = vmatprep.subr.bf16.mxu1 %v3831_v27 }
 0xab0   :  { %v1389_v18 = vadd.f32 %v1388_v13, %v1287_v54  ;;  %v1390_v25 = vpop.f32.mrb[35].mxu1  ;;  %1566 = vmatmul.mubr.bf16.vlgmr.msra.gmra.mrb[16].mxu0 %v1401_v0  ;;  %v1397_v9 = vmax.f32 %v1385_v7, 0.0 }
 0xab1   :  { %v1391_v16 = vadd.f32 %v1390_v25, %v1291_v60  ;;  %v1398_v21 = vmax.f32 %v1387_v12, 0.0 }
 0xab2   :  { %v1399_v20 = vmax.f32 %v1389_v18, 0.0  ;;  %1743 = vmatpush1.bf16.msra.mxu1 %v3829_v62 }
 0xab3   :  { %v1400_v23 = vmax.f32 %v1391_v16, 0.0  ;;  %1744 = vmatprep.subr.bf16.mxu1 %v3834_v1 }
 0xab4   :  { %v1403_v5 = vpack.c.bf16 %v1399_v20, %v1397_v9 }
 0xab5   :  { %v1404_v29 = vpack.c.bf16 %v1400_v23, %v1398_v21 }
 0xab6   :  { %1745 = vmatpush1.bf16.msra.mxu1 %v3832_v63 }
 0xab7   :  { %1573 = vmatprep.mubr.bf16.mxu0 %v1404_v29 }
 0xab8   :  { %1574 = vmatmul.mubr.bf16.gmra.mrb[20].mxu0 %v1403_v5 }
 0xb83   :  { %v3438_v22 = vpop.f32.mrb[16].mxu0 }
 0xb84   :  { %v3439_v11 = vpop.f32.mrb[17].mxu0 }
 0xb85   :  { %v3440_v30 = vadd.f32 %v3439_v11, %v3438_v22  ;;  %v3441_v31 = vpop.f32.mrb[18].mxu0 }
 0xb86   :  { %v3442_v33 = vpop.f32.mrb[19].mxu0 }
 0xb87   :  { %v1582_v34 = vadd.f32 %v3440_v30, %v4699_v10  ;;  %v3443_v35 = vadd.f32 %v3442_v33, %v3441_v31 }
 0xb89   :  { %v4831_v36 = vadd.f32 %v3254_v32, %v1582_v34  ;;  %v1583_v37 = vadd.f32 %v3443_v35, %v4707_v15 }
 0xb8b   :  { %v4834_v39 = vadd.f32 %v3254_v32, %v1583_v37  ;;  %v3444_v17 = vpop.f32.mrb[20].mxu0  ;;  %v1601_v40 = vsel %vm130_vm0, %v4831_v36, 0.0  ;;  %v1617_v41 = vmul.f32 %v4831_v36, %v4831_v36 }
 0xb8c   :  { %1602 = vadd.xlane.f32.xlu0 %v1601_v40  ;;  %v3445_v43 = vpop.f32.mrb[21].mxu0 }
 0xb8d   :  { %v3446_v45 = vadd.f32 %v3445_v43, %v3444_v17  ;;  %v3447_v46 = vpop.f32.mrb[22].mxu0  ;;  %v1604_v10 = vsel %vm130_vm0, %v4834_v39, 0.0  ;;  %v1618_v48 = vmul.f32 %v4834_v39, %v4834_v39  ;;  %v1621_v53 = vsel %vm130_vm0, %v1617_v41, 0.0  ;;  %v3255_v41 = vld [vmem:[#allocation2 + $0x1] ss:$0 sm:$0xff] }
 0xb8e   :  { %1605 = vadd.xlane.f32.xlu1 %v1604_v10  ;;  %v3448_v15 = vpop.f32.mrb[23].mxu0 }
 0xb8f   :  { %v1584_v50 = vadd.f32 %v3446_v45, %v4727_v14  ;;  %v3449_v51 = vadd.f32 %v3448_v15, %v3447_v46  ;;  %v1624_v55 = vsel %vm130_vm0, %v1618_v48, 0.0  ;;  %v3256_v15 = vld [vmem:[#allocation5 + $0x1] ss:$0 sm:$0xff] }
 0xb90   :  { %1622 = vadd.xlane.f32.xlu0 %v1621_v53 }
 0xb91   :  { %v4846_v49 = vadd.f32 %v3254_v32, %v1584_v50  ;;  %v1585_v44 = vadd.f32 %v3449_v51, %v4713_v19 }
 0xb92   :  { %1625 = vadd.xlane.f32.xlu1 %v1624_v55 }
 0xb93   :  { %v4850_v56 = vadd.f32 %v3254_v32, %v1585_v44  ;;  %v1607_v47 = vsel %vm130_vm0, %v4846_v49, 0.0  ;;  %v1619_v54 = vmul.f32 %v4846_v49, %v4846_v49 }
 0xb94   :  { %1608 = vadd.xlane.f32.xlu0 %v1607_v47 }
 0xb95   :  { %v1610_v14 = vsel %vm130_vm0, %v4850_v56, 0.0  ;;  %v1620_v60 = vmul.f32 %v4850_v56, %v4850_v56  ;;  %v1627_v19 = vsel %vm130_vm0, %v1619_v54, 0.0 }
 0xb96   :  { %1611 = vadd.xlane.f32.xlu1 %v1610_v14 }
 0xb97   :  { %v1630_v61 = vsel %vm130_vm0, %v1620_v60, 0.0 }
 0xb98   :  { %1628 = vadd.xlane.f32.xlu0 %v1627_v19 }
 0xb9a   :  { %1631 = vadd.xlane.f32.xlu1 %v1630_v61 }
 0xc19   :  { %v1603_v3 = vpop.xlane.xlu0 %1602 }
 0xc1a   :  { %v1613_v4 = vmul.f32 0.015625, %v1603_v3 }
 0xc1b   :  { %v1606_v2 = vpop.xlane.xlu1 %1605 }
 0xc1c   :  { %v1614_v0 = vmul.f32 0.015625, %v1606_v2  ;;  %v1637_v57 = vmul.f32 %v1613_v4, %v1613_v4  ;;  %v1645_v17 = vsub.f32 %v4831_v36, %v1613_v4 }
 0xc1d   :  { %v1623_v6 = vpop.xlane.xlu0 %1622 }
 0xc1e   :  { %v1633_v7 = vmul.f32 0.015625, %v1623_v6  ;;  %v1638_v12 = vmul.f32 %v1614_v0, %v1614_v0  ;;  %v1646_v43 = vsub.f32 %v4834_v39, %v1614_v0 }
 0xc1f   :  { %v1626_v8 = vpop.xlane.xlu1 %1625 }
 0xc20   :  { %v1641_v13 = vsub.f32 %v1633_v7, %v1637_v57  ;;  %v1634_v18 = vmul.f32 0.015625, %v1626_v8 }
 0xc21   :  { %v1609_v25 = vpop.xlane.xlu0 %1608 }
 0xc22   :  { %v1649_v16 = vadd.f32 1e-05, %v1641_v13  ;;  %v1642_v9 = vsub.f32 %v1634_v18, %v1638_v12  ;;  %v1615_v20 = vmul.f32 0.015625, %v1609_v25 }
 0xc23   :  { %v1612_v21 = vpop.xlane.xlu1 %1611 }
 0xc24   :  { %3951 = vrsqrt.f32 %v1649_v16  ;;  %v1650_v23 = vadd.f32 1e-05, %v1642_v9  ;;  %v1616_v5 = vmul.f32 0.015625, %v1612_v21  ;;  %v1639_v22 = vmul.f32 %v1615_v20, %v1615_v20 }
 0xc25   :  { %v1629_v29 = vpop.xlane.xlu0 %1628  ;;  %v1647_v44 = vsub.f32 %v4846_v49, %v1615_v20 }
 0xc26   :  { %3953 = vrsqrt.f32 %v1650_v23  ;;  %v1635_v11 = vmul.f32 0.015625, %v1629_v29  ;;  %v1640_v31 = vmul.f32 %v1616_v5, %v1616_v5  ;;  %v1648_v47 = vsub.f32 %v4850_v56, %v1616_v5 }
 0xc27   :  { %v1632_v30 = vpop.xlane.xlu1 %1631 }
 0xc28   :  { %v1643_v32 = vsub.f32 %v1635_v11, %v1639_v22  ;;  %v1636_v33 = vmul.f32 0.015625, %v1632_v30 }
 0xc2a   :  { %v1651_v34 = vadd.f32 1e-05, %v1643_v32  ;;  %v1644_v35 = vsub.f32 %v1636_v33, %v1640_v31 }
 0xc2c   :  { %3955 = vrsqrt.f32 %v1651_v34  ;;  %v1652_v37 = vadd.f32 1e-05, %v1644_v35  ;;  %v4948_v34 = vld [vmem:[%s5307_s1 + $0x10] sm:$0xff] }
 0xc2e   :  { %v3952_v40 = vpop.eup %3951  ;;  %3957 = vrsqrt.f32 %v1652_v37 }
 0xc2f   :  { %v1657_v45 = vmul.f32 %v3952_v40, %v1645_v17  ;;  %v4954_v40 = vld [vmem:[%s5307_s1] sm:$0xff] }
 0xc30   :  { %v3954_v46 = vpop.eup %3953 }
 0xc31   :  { %v1667_v10 = vmul.f32 %v3255_v41, %v1657_v45  ;;  %v1658_v48 = vmul.f32 %v3954_v46, %v1646_v43  ;;  %v4963_v46 = vld [vmem:[%s5307_s1 + $0x8] sm:$0xff] }
 0xc33   :  { %v1668_v50 = vmul.f32 %v3255_v41, %v1658_v48  ;;  %v1677_v51 = vadd.f32 %v3256_v15, %v1667_v10 }
 0xc35   :  { %v1678_v53 = vadd.f32 %v3256_v15, %v1668_v50 }
 0xc36   :  { %v3956_v55 = vpop.eup %3955 }
 0xc37   :  { %v1681_v54 = vpack.c.bf16 %v1678_v53, %v1677_v51  ;;  %v1659_v14 = vmul.f32 %v3956_v55, %v1647_v44  ;;  %v4970_v53 = vld [vmem:[%s5307_s1 + $0x18] sm:$0xff] }
 0xc38   :  { %v3958_v60 = vpop.eup %3957 }
 0xc39   :  { %3273 = vmatmul.mubr.msk.bf16.vlgmr.msra.gmra.mrb[36].mxu1 %vm130_vm0, %v1681_v54  ;;  %v1660_v19 = vmul.f32 %v3958_v60, %v1648_v47  ;;  %v1669_v61 = vmul.f32 %v3255_v41, %v1659_v14 }
 0xc3a   :  { %1780 = vmatprep.mubr.bf16.mxu1 %v4186_v24 }
 0xc3b   :  { %v1670_v28 = vmul.f32 %v3255_v41, %v1660_v19  ;;  %v1679_v38 = vadd.f32 %v3256_v15, %v1669_v61 }
 0xc3d   :  { %v1680_v26 = vadd.f32 %v3256_v15, %v1670_v28 }
 0xc3f   :  { %v1682_v52 = vpack.c.bf16 %v1680_v26, %v1679_v38 }
 0xc41   :  { %3274 = vmatmul.mubr.msk.bf16.gmra.mrb[40].mxu1 %vm130_vm0, %v1682_v52 }
 0xd0c   :  { %v1772_v27 = vpop.f32.mrb[36].mxu1 }
 0xd0d   :  { %v1774_v62 = vpop.f32.mrb[37].mxu1 }
 0xd0e   :  { %v1776_v1 = vpop.f32.mrb[38].mxu1 }
 0xd0f   :  { %v4893_v63 = vpack.c.bf16 %v1776_v1, %v1772_v27  ;;  %v1778_v3 = vpop.f32.mrb[39].mxu1 }
 0xd10   :  { %v4895_v4 = vpack.c.bf16 %v1778_v3, %v1774_v62 }
 0xd11   :  { %1967 = vrot.lane.b32.xlu1 %v4893_v63, %s4187_s16  ;;  %1797 = vrot.lane.b32.xlu0 %v4893_v63, %s4188_s17 }
 0xd12   :  { %3602 = vmatprep.mubr.msk.bf16.mxu1 %vm331_vm1, %v4893_v63 }
 0xd14   :  { %v1782_v2 = vpop.f32.mrb[40].mxu1 }
 0xd15   :  { %1963 = vrot.lane.b32.xlu0 %v4893_v63, %s4189_s27  ;;  %v1784_v0 = vpop.f32.mrb[41].mxu1 }
 0xd16   :  { %v1786_v6 = vpop.f32.mrb[42].mxu1 }
 0xd17   :  { %v4905_v57 = vpack.c.bf16 %v1786_v6, %v1782_v2  ;;  %v1788_v7 = vpop.f32.mrb[43].mxu1 }
 0xd18   :  { %v4907_v8 = vpack.c.bf16 %v1788_v7, %v1784_v0 }
 0xd19   :  { %1965 = vrot.lane.b32.xlu0 %v4905_v57, %s4189_s27  ;;  %1799 = vrot.lane.b32.xlu1 %v4905_v57, %s4188_s17  ;;  %s3177_s17 = sshll.u32 %s4193_s4, 4  ;;  %s3178_s17 = int_to_ptr.vmem [resolvable:$true] %s3177_s17 }
 0xd1a   :  { %s4149_s25 = scalar_lea.vmem %s3178_s17, 512  ;;  %p4154_p13 = scmp.lt.s32.totalorder %s3178_s17, %s3178_s17 }
 0xd1b   :  { %p4150_p12 = scmp.ne.s32.totalorder %s3178_s17, %s4149_s25  ;;  %p4155_p0 = scmp.lt.s32.totalorder %s4149_s25, %s4149_s25 }
 0xd1d   :  { %2141 = vrot.lane.b32.xlu0 %v4893_v63, %s4190_s28  ;;  %1969 = vrot.lane.b32.xlu1 %v4905_v57, %s4187_s16  ;;  %p4156_p1 = por %p4155_p0, %p4154_p13 }
 0xd1f   :  { %p4157_p2 = pnand %p4156_p1, %p4150_p12 }
 0xd21   :  { %2145 = vrot.lane.b32.xlu1 %v4893_v63, %s4191_s7 }
 0xd25   :  { %2147 = vrot.lane.b32.xlu1 %v4905_v57, %s4191_s7 }
 0xd29   :  { %2143 = vrot.lane.b32.xlu1 %v4905_v57, %s4190_s28 }
 0xd83   :  { %v1798_v12 = vpop.permute.xlu0 %1797  ;;  %v1968_v13 = vpop.permute.xlu1 %1967 }
 0xd84   :  { %v1808_v18 = vsel %vm331_vm1, %v1798_v12, 0  ;;  %v1978_v25 = vsel %vm331_vm1, %v1968_v13, 0  ;;  %3694 = vmatprep.subr.msk.bf16.mxu1 %vm331_vm1, %v1798_v12  ;;  %3696 = vmatprep.subr.msk.bf16.mxu0 %vm331_vm1, %v1968_v13 }
 0xd85   :  { %3599 = vmatpush3.bf16.xpose.msra.mxu1 %v1808_v18  ;;  %3615 = vmatpush3.bf16.xpose.msra.mxu0 %v1978_v25 }
 0xd87   :  { %v1964_v16 = vpop.permute.xlu0 %1963 }
 0xd88   :  { %3618 = vmatprep.mubr.msk.bf16.mxu0 %vm331_vm1, %v1964_v16 }
 0xd8b   :  { %v1800_v9 = vpop.permute.xlu1 %1799  ;;  %v1966_v5 = vpop.permute.xlu0 %1965 }
 0xd8c   :  { %v1811_v20 = vsel %vm331_vm1, %v1800_v9, 0  ;;  %3695 = vmatprep.subr.msk.bf16.mxu1 %vm331_vm1, %v1800_v9 }
 0xd8d   :  { %3601 = vmatpush3.bf16.xpose.msra.mxu1 %v1811_v20 }
 0xd8e   :  { %3606 = vmatprep.subr.bf16.mxu1 %v4895_v4 }
 0xd8f   :  { %v1970_v21 = vpop.permute.xlu1 %1969  ;;  %v2142_v11 = vpop.permute.xlu0 %2141 }
 0xd90   :  { %v1981_v23 = vsel %vm331_vm1, %v1970_v21, 0  ;;  %3697 = vmatprep.subr.msk.bf16.mxu0 %vm331_vm1, %v1970_v21 }
 0xd91   :  { %3617 = vmatpush3.bf16.xpose.msra.mxu0 %v1981_v23 }
 0xd93   :  { %v2146_v29 = vpop.permute.xlu1 %2145 }
 0xd94   :  { %3603 = vmatmul.mubr.msk.bf16.vlgmr.msra.gmra.mrb[44].mxu1 %vm331_vm1, %v4905_v57  ;;  %3698 = vmatprep.subr.msk.bf16.mxu0 %vm331_vm1, %v2146_v29  ;;  %v2156_v22 = vsel %vm331_vm1, %v2146_v29, 0 }
 0xd95   :  { %3607 = vmatpush3.bf16.msra.mxu1 %v4895_v4 }
 0xd96   :  { %3608 = vmatprep.subr.bf16.mxu1 %v4907_v8 }
 0xd97   :  { %v2148_v30 = vpop.permute.xlu1 %2147 }
 0xd98   :  { %3619 = vmatmul.mubr.msk.bf16.vlgmr.msra.gmra.mrb[24].mxu0 %vm331_vm1, %v1966_v5  ;;  %v2159_v31 = vsel %vm331_vm1, %v2148_v30, 0 }
 0xd99   :  { %3609 = vmatpush3.bf16.msra.mxu1 %v4907_v8  ;;  %3631 = vmatpush3.bf16.xpose.msra.mxu0 %v2156_v22 }
 0xd9a   :  { %3634 = vmatprep.mubr.msk.bf16.mxu0 %vm331_vm1, %v2142_v11  ;;  %3699 = vmatprep.subr.msk.bf16.mxu0 %vm331_vm1, %v2148_v30 }
 0xd9b   :  { %v2144_v32 = vpop.permute.xlu1 %2143 }
 0xda1   :  { %3633 = vmatpush3.bf16.xpose.msra.mxu0 %v2159_v31 }
 0xda8   :  { %3635 = vmatmul.mubr.msk.bf16.vlgmr.msra.gmra.mrb[28].mxu0 %vm331_vm1, %v2144_v32 }
 0xe67   :  { %v3604_v33 = vpop.f32.mrb[44].mxu1 }
 0xe68   :  { %v1856_v35 = vadd.f32 %v4948_v34, %v3604_v33  ;;  %v1847_v37 = vpop.f32.mrb[45].mxu1 }
 0xe69   :  { %v3605_v17 = vpop.f32.mrb[46].mxu1  ;;  %v4957_v41 = vadd.f32 %v4954_v40, %v1847_v37 }
 0xe6a   :  { %v1850_v43 = vpop.f32.mrb[47].mxu1  ;;  %v1868_v45 = vsel %vm393_vm2, %v1856_v35, -inf  ;;  %v1859_v44 = vadd.f32 %v4970_v53, %v3605_v17 }
 0xe6b   :  { %v1851_v10 = vadd.f32 %v4963_v46, %v1850_v43  ;;  %1869 = vmax.xlane.f32.xlu0 %v1868_v45  ;;  %v3620_v48 = vpop.f32.mrb[24].mxu0  ;;  %v1862_v54 = vsel %vm393_vm2, %v4957_v41, -inf }
 0xe6c   :  { %v2017_v15 = vpop.f32.mrb[25].mxu0  ;;  %v1871_v61 = vsel %vm393_vm2, %v1859_v44, -inf  ;;  %v2026_v38 = vadd.f32 %v4948_v34, %v3620_v48 }
 0xe6d   :  { %v3621_v50 = vpop.f32.mrb[26].mxu0  ;;  %v1865_v51 = vsel %vm393_vm2, %v1851_v10, -inf  ;;  %v2018_v19 = vadd.f32 %v4954_v40, %v2017_v15 }
 0xe6e   :  { %v2029_v55 = vadd.f32 %v4970_v53, %v3621_v50  ;;  %1866 = vmax.xlane.f32.xlu1 %v1865_v51  ;;  %v2020_v47 = vpop.f32.mrb[27].mxu0  ;;  %v2038_v52 = vsel %vm393_vm2, %v2026_v38, -inf }
 0xe6f   :  { %1863 = vmax.xlane.f32.xlu0 %v1862_v54  ;;  %v2021_v60 = vadd.f32 %v4963_v46, %v2020_v47  ;;  %v2032_v26 = vsel %vm393_vm2, %v2018_v19, -inf }
 0xe70   :  { %v2041_v14 = vsel %vm393_vm2, %v2029_v55, -inf }
 0xe71   :  { %v2035_v28 = vsel %vm393_vm2, %v2021_v60, -inf }
 0xe72   :  { %2042 = vmax.xlane.f32.xlu1 %v2041_v14 }
 0xe73   :  { %1872 = vmax.xlane.f32.xlu0 %v1871_v61 }
 0xe76   :  { %2036 = vmax.xlane.f32.xlu1 %v2035_v28 }
 0xe77   :  { %2033 = vmax.xlane.f32.xlu0 %v2032_v26 }
 0xe7b   :  { %2039 = vmax.xlane.f32.xlu0 %v2038_v52  ;;  %v3636_v27 = vpop.f32.mrb[28].mxu0 }
 0xe7c   :  { %v2195_v62 = vpop.f32.mrb[29].mxu0  ;;  %v4989_v6 = vadd.f32 %v4948_v34, %v3636_v27 }
 0xe7d   :  { %v4985_v1 = vadd.f32 %v4954_v40, %v2195_v62  ;;  %v3637_v3 = vpop.f32.mrb[30].mxu0 }
 0xe7e   :  { %v2207_v2 = vadd.f32 %v4970_v53, %v3637_v3  ;;  %v2198_v0 = vpop.f32.mrb[31].mxu0  ;;  %v2216_v18 = vsel %vm393_vm2, %v4989_v6, -inf }
 0xe7f   :  { %v2210_v7 = vsel %vm393_vm2, %v4985_v1, -inf  ;;  %v2199_v12 = vadd.f32 %v4963_v46, %v2198_v0 }
 0xe80   :  { %2211 = vmax.xlane.f32.xlu0 %v2210_v7  ;;  %v2219_v13 = vsel %vm393_vm2, %v2207_v2, -inf }
 0xe81   :  { %2220 = vmax.xlane.f32.xlu1 %v2219_v13  ;;  %v2213_v25 = vsel %vm393_vm2, %v2199_v12, -inf }
 0xe84   :  { %2217 = vmax.xlane.f32.xlu0 %v2216_v18 }
 0xe85   :  { %2214 = vmax.xlane.f32.xlu1 %v2213_v25 }
 0xe96   :  { %2082 = vrot.lane.b32.xlu1 %v4907_v8, %s4189_s27 }
 0xe9a   :  { %2256 = vrot.lane.b32.xlu1 %v4895_v4, %s4190_s28 }
 0xef8   :  { %v1870_v16 = vpop.xlane.xlu0 %1869 }
 0xef9   :  { %v1876_v9 = vsub.f32 %v1856_v35, %v1870_v16 }
 0xefb   :  { %v1882_v20 = vmul.f32 1.442695, %v1876_v9  ;;  %v1867_v21 = vpop.xlane.xlu1 %1866 }
 0xefc   :  { %v1864_v23 = vpop.xlane.xlu0 %1863  ;;  %v1875_v30 = vsub.f32 %v1851_v10, %v1867_v21 }
 0xefd   :  { %3959 = vpow2.f32 %v1882_v20  ;;  %v1874_v17 = vsub.f32 %v4957_v41, %v1864_v23 }
 0xefe   :  { %v1880_v45 = vmul.f32 1.442695, %v1875_v30 }
 0xeff   :  { %v2043_v5 = vpop.xlane.xlu1 %2042  ;;  %v1878_v51 = vmul.f32 1.442695, %v1874_v17 }
 0xf00   :  { %v2047_v29 = vsub.f32 %v2029_v55, %v2043_v5  ;;  %v1873_v22 = vpop.xlane.xlu0 %1872 }
 0xf01   :  { %v1877_v11 = vsub.f32 %v1859_v44, %v1873_v22 }
 0xf02   :  { %v2054_v31 = vmul.f32 1.442695, %v2047_v29 }
 0xf03   :  { %v1884_v32 = vmul.f32 1.442695, %v1877_v11  ;;  %v2037_v33 = vpop.xlane.xlu1 %2036 }
 0xf04   :  { %v2034_v37 = vpop.xlane.xlu0 %2033  ;;  %v2045_v35 = vsub.f32 %v2021_v60, %v2037_v33 }
 0xf05   :  { %3961 = vpow2.f32 %v1884_v32  ;;  %v2044_v10 = vsub.f32 %v2018_v19, %v2034_v37 }
 0xf06   :  { %3963 = vpow2.f32 %v2054_v31  ;;  %v2050_v44 = vmul.f32 1.442695, %v2045_v35 }
 0xf07   :  { %v5003_v43 = vpop.eup %3959  ;;  %3965 = vpow2.f32 %v1880_v45  ;;  %v2048_v47 = vmul.f32 1.442695, %v2044_v10 }
 0xf08   :  { %v2040_v48 = vpop.xlane.xlu0 %2039  ;;  %v1892_v15 = vsel %vm393_vm2, %v5003_v43, 0.0 }
 0xf09   :  { %v2046_v50 = vsub.f32 %v2026_v38, %v2040_v48  ;;  %1893 = vadd.xlane.f32.xlu0 %v1892_v15 }
 0xf0b   :  { %v2052_v55 = vmul.f32 1.442695, %v2046_v50 }
 0xf0d   :  { %3967 = vpow2.f32 %v2052_v55  ;;  %v2212_v23 = vpop.xlane.xlu0 %2211 }
 0xf0e   :  { %3969 = vpow2.f32 %v1878_v51  ;;  %v2221_v41 = vpop.xlane.xlu1 %2220  ;;  %v2222_v22 = vsub.f32 %v4985_v1, %v2212_v23 }
 0xf0f   :  { %v5007_v54 = vpop.eup %3961  ;;  %3971 = vpow2.f32 %v2050_v44  ;;  %v2225_v14 = vsub.f32 %v2207_v2, %v2221_v41 }
 0xf10   :  { %v1895_v60 = vsel %vm393_vm2, %v5007_v54, 0.0  ;;  %v5011_v61 = vpop.eup %3963  ;;  %3973 = vpow2.f32 %v2048_v47  ;;  %v2226_v30 = vmul.f32 1.442695, %v2222_v22 }
 0xf11   :  { %v2232_v28 = vmul.f32 1.442695, %v2225_v14  ;;  %1896 = vadd.xlane.f32.xlu1 %v1895_v60  ;;  %v2065_v26 = vsel %vm393_vm2, %v5011_v61, 0.0  ;;  %v5015_v52 = vpop.eup %3965  ;;  %v2218_v5 = vpop.xlane.xlu0 %2217 }
 0xf12   :  { %v2215_v19 = vpop.xlane.xlu1 %2214  ;;  %v1889_v0 = vsel %vm393_vm2, %v5015_v52, 0.0  ;;  %v2224_v29 = vsub.f32 %v4989_v6, %v2218_v5 }
 0xf13   :  { %3975 = vpow2.f32 %v2232_v28  ;;  %v2223_v38 = vsub.f32 %v2199_v12, %v2215_v19 }
 0xf14   :  { %v2230_v11 = vmul.f32 1.442695, %v2224_v29 }
 0xf15   :  { %v2228_v27 = vmul.f32 1.442695, %v2223_v38  ;;  %2066 = vadd.xlane.f32.xlu1 %v2065_v26 }
 0xf17   :  { %v5017_v62 = vpop.eup %3967  ;;  %3977 = vpow2.f32 %v2228_v27 }
 0xf18   :  { %v5019_v3 = vpop.eup %3969  ;;  %v2062_v2 = vsel %vm393_vm2, %v5017_v62, 0.0  ;;  %3979 = vpow2.f32 %v2230_v11 }
 0xf19   :  { %v5025_v7 = vpop.eup %3971  ;;  %2063 = vadd.xlane.f32.xlu0 %v2062_v2  ;;  %1890 = vadd.xlane.f32.xlu1 %v1889_v0  ;;  %v1886_v13 = vsel %vm393_vm2, %v5019_v3, 0.0  ;;  %3981 = vpow2.f32 %v2226_v30 }
 0xf1a   :  { %v5027_v12 = vpop.eup %3973  ;;  %v2059_v18 = vsel %vm393_vm2, %v5025_v7, 0.0 }
 0xf1b   :  { %v2056_v16 = vsel %vm393_vm2, %v5027_v12, 0.0 }
 0xf1d   :  { %v5033_v25 = vpop.eup %3975  ;;  %1887 = vadd.xlane.f32.xlu0 %v1886_v13  ;;  %2060 = vadd.xlane.f32.xlu1 %v2059_v18 }
 0xf1e   :  { %v2243_v9 = vsel %vm393_vm2, %v5033_v25, 0.0 }
 0xf21   :  { %v5039_v20 = vpop.eup %3977  ;;  %2057 = vadd.xlane.f32.xlu0 %v2056_v16  ;;  %2244 = vadd.xlane.f32.xlu1 %v2243_v9 }
 0xf22   :  { %v2237_v21 = vsel %vm393_vm2, %v5039_v20, 0.0  ;;  %v5053_v31 = vpop.eup %3979 }
 0xf23   :  { %v2240_v32 = vsel %vm393_vm2, %v5053_v31, 0.0  ;;  %v5057_v33 = vpop.eup %3981 }
 0xf24   :  { %v2234_v37 = vsel %vm393_vm2, %v5057_v33, 0.0 }
 0xf25   :  { %2238 = vadd.xlane.f32.xlu1 %v2237_v21 }
 0xf36   :  { %2258 = vrot.lane.b32.xlu1 %v4907_v8, %s4190_s28 }
 0xf37   :  { %2080 = vrot.lane.b32.xlu0 %v4895_v4, %s4189_s27 }
 0xf3a   :  { %2323 = vrot.lane.b32.xlu1 %v4905_v57, %s4181_s30 }
 0xf3e   :  { %2319 = vrot.lane.b32.xlu1 %v4905_v57, %s4192_s20  ;;  %v2083_v57 = vpop.permute.xlu1 %2082 }
 0xf42   :  { %v2257_v1 = vpop.permute.xlu1 %2256 }
 0xf56   :  { %2241 = vadd.xlane.f32.xlu0 %v2240_v32 }
 0xf5a   :  { %2235 = vadd.xlane.f32.xlu0 %v2234_v37 }
 0xf70   :  { %2321 = vrot.lane.b32.xlu0 %v4893_v63, %s4181_s30 }
 0xf74   :  { %2317 = vrot.lane.b32.xlu0 %v4893_v63, %s4192_s20 }
 0xf96   :  { %v1894_v17 = vpop.xlane.xlu0 %1893 }
 0xf9e   :  { %v1897_v6 = vpop.xlane.xlu1 %1896 }
 0xf9f   :  { %3983 = vrcp.f32 %v1897_v6 }
 0xfa2   :  { %v2067_v45 = vpop.xlane.xlu1 %2066 }
 0xfa6   :  { %v2064_v35 = vpop.xlane.xlu0 %2063  ;;  %v1891_v48 = vpop.xlane.xlu1 %1890 }
 0xfa7   :  { %3985 = vrcp.f32 %v1891_v48 }
 0xfa8   :  { %3987 = vrcp.f32 %v1894_v17 }
 0xfa9   :  { %v3984_v10 = vpop.eup %3983 }
 0xfaa   :  { %v1888_v15 = vpop.xlane.xlu0 %1887  ;;  %v2061_v50 = vpop.xlane.xlu1 %2060  ;;  %v1905_v41 = vmul.f32 %v3984_v10, %v5007_v54 }
 0xfab   :  { %3989 = vrcp.f32 %v1888_v15 }
 0xfac   :  { %3991 = vrcp.f32 %v2061_v50 }
 0xfae   :  { %v2058_v51 = vpop.xlane.xlu0 %2057  ;;  %v2245_v38 = vpop.xlane.xlu1 %2244 }
 0xfaf   :  { %3993 = vrcp.f32 %v2058_v51 }
 0xfb0   :  { %3995 = vrcp.f32 %v2064_v35 }
 0xfb1   :  { %3997 = vrcp.f32 %v2067_v45  ;;  %v3986_v44 = vpop.eup %3985 }
 0xfb2   :  { %v2081_v63 = vpop.permute.xlu0 %2080  ;;  %v3988_v55 = vpop.eup %3987  ;;  %v1903_v60 = vmul.f32 %v3986_v44, %v5015_v52 }
 0xfb3   :  { %3622 = vmatprep.subr.bf16.mxu1 %v2081_v63  ;;  %v1904_v19 = vmul.f32 %v3988_v55, %v5003_v43  ;;  %v2239_v43 = vpop.xlane.xlu1 %2238 }
 0xfb5   :  { %v3990_v47 = vpop.eup %3989  ;;  %v1907_v2 = vpack.c.bf16 %v1905_v41, %v1904_v19 }
 0xfb6   :  { %v1902_v14 = vmul.f32 %v3990_v47, %v5019_v3  ;;  %v3992_v28 = vpop.eup %3991 }
 0xfb7   :  { %v2073_v18 = vmul.f32 %v3992_v28, %v5025_v7 }
 0xfb8   :  { %v1906_v26 = vpack.c.bf16 %v1903_v60, %v1902_v14 }
 0xfb9   :  { %v3994_v27 = vpop.eup %3993 }
 0xfba   :  { %v3996_v0 = vpop.eup %3995  ;;  %3610 = vmatprep.mubr.msk.bf16.mxu1 %vm393_vm2, %v1906_v26  ;;  %v2072_v13 = vmul.f32 %v3994_v27, %v5027_v12  ;;  %v2259_v12 = vpop.permute.xlu1 %2258 }
 0xfbb   :  { %3611 = vmatmul.mubr.msk.bf16.vlgmr.msra.gmra.mrb[48].mxu1 %vm393_vm2, %v1907_v2  ;;  %v3998_v54 = vpop.eup %3997  ;;  %v2074_v52 = vmul.f32 %v3996_v0, %v5017_v62 }
 0xfbc   :  { %3623 = vmatpush3.bf16.msra.mxu1 %v2081_v63  ;;  %v2076_v3 = vpack.c.bf16 %v2073_v18, %v2072_v13  ;;  %v2075_v16 = vmul.f32 %v3998_v54, %v5011_v61 }
 0xfbd   :  { %3624 = vmatprep.subr.bf16.mxu1 %v2083_v57 }
 0xfbe   :  { %3626 = vmatprep.mubr.msk.bf16.mxu1 %vm393_vm2, %v2076_v3  ;;  %v2077_v9 = vpack.c.bf16 %v2075_v16, %v2074_v52  ;;  %v2324_v17 = vpop.permute.xlu1 %2323 }
 0xfc0   :  { %3625 = vmatpush3.bf16.msra.mxu1 %v2083_v57 }
 0xfc1   :  { %3638 = vmatprep.subr.bf16.mxu1 %v2257_v1 }
 0xfc3   :  { %3627 = vmatmul.mubr.msk.bf16.vlgmr.msra.gmra.mrb[52].mxu1 %vm393_vm2, %v2077_v9 }
 0xfc4   :  { %3639 = vmatpush3.bf16.msra.mxu1 %v2257_v1 }
 0xfc5   :  { %3640 = vmatprep.subr.bf16.mxu1 %v2259_v12 }
 0xfc8   :  { %3641 = vmatpush3.bf16.msra.mxu1 %v2259_v12 }
 0xfe3   :  { %v2242_v7 = vpop.xlane.xlu0 %2241 }
 0xfe4   :  { %3999 = vrcp.f32 %v2242_v7 }
 0xfe5   :  { %4001 = vrcp.f32 %v2239_v43 }
 0xfe6   :  { %4003 = vrcp.f32 %v2245_v38 }
 0xfe7   :  { %v2236_v62 = vpop.xlane.xlu0 %2235 }
 0xfe8   :  { %4005 = vrcp.f32 %v2236_v62 }
 0xfeb   :  { %v2322_v21 = vpop.permute.xlu0 %2321 }
 0xfec   :  { %3700 = vmatprep.subr.msk.bf16.mxu1 %vm331_vm1, %v2322_v21  ;;  %v2332_v1 = vsel %vm331_vm1, %v2322_v21, 0 }
 0xfee   :  { %v4000_v23 = vpop.eup %3999 }
 0xfef   :  { %v4002_v61 = vpop.eup %4001  ;;  %v2252_v22 = vmul.f32 %v4000_v23, %v5053_v31  ;;  %v2318_v6 = vpop.permute.xlu0 %2317  ;;  %v2335_v31 = vsel %vm331_vm1, %v2324_v17, 0 }
 0xff0   :  { %v4004_v5 = vpop.eup %4003  ;;  %v2251_v30 = vmul.f32 %v4002_v61, %v5039_v20  ;;  %v2320_v20 = vpop.permute.xlu1 %2319 }
 0xff1   :  { %v2253_v32 = vmul.f32 %v4004_v5, %v5033_v25 }
 0xff2   :  { %v4006_v29 = vpop.eup %4005 }
 0xff3   :  { %v2250_v11 = vmul.f32 %v4006_v29, %v5057_v33  ;;  %v2255_v57 = vpack.c.bf16 %v2253_v32, %v2252_v22 }
 0xff5   :  { %v2254_v37 = vpack.c.bf16 %v2251_v30, %v2250_v11 }
 0xff7   :  { %3642 = vmatprep.mubr.msk.bf16.mxu1 %vm393_vm2, %v2254_v37 }
 0xff8   :  { %3643 = vmatmul.mubr.msk.bf16.vlgmr.msra.gmra.mrb[56].mxu1 %vm393_vm2, %v2255_v57 }
 0xff9   :  { %3647 = vmatpush3.bf16.xpose.msra.mxu1 %v2332_v1  ;;  %3650 = vmatprep.mubr.msk.bf16.mxu1 %vm331_vm1, %v2318_v6 }
 0xffa   :  { %3701 = vmatprep.subr.msk.bf16.mxu1 %vm331_vm1, %v2324_v17 }
0x1001   :  { %3649 = vmatpush3.bf16.xpose.msra.mxu1 %v2335_v31 }
0x1008   :  { %3651 = vmatmul.mubr.msk.bf16.vlgmr.msra.gmra.mrb[60].mxu1 %vm331_vm1, %v2320_v20 }
0x1009   :  { %2845 = vmatprep.mubr.bf16.mxu1 %v4186_v24 }
0x108e   :  { %v5090_v25 = vpop.f32.mrb[48].mxu1 }
0x108f   :  { %v5092_v33 = vpop.f32.mrb[49].mxu1 }
0x1090   :  { %v5094_v45 = vpop.f32.mrb[50].mxu1 }
0x1091   :  { %v5096_v35 = vpop.f32.mrb[51].mxu1 }
0x1096   :  { %v3628_v48 = vpop.f32.mrb[52].mxu1 }
0x1097   :  { %v2126_v15 = vpop.f32.mrb[53].mxu1 }
0x1098   :  { %v3629_v50 = vpop.f32.mrb[54].mxu1 }
0x1099   :  { %v3754_v51 = vpack.i.bf16 %v3629_v50, %v3628_v48  ;;  %v2129_v10 = vpop.f32.mrb[55].mxu1 }
0x109a   :  { %v3749_v63 = vpack.i.bf16 %v2129_v10, %v2126_v15 }
0x10cb   :  { %v3644_v44 = vpop.f32.mrb[56].mxu1 }
0x10cc   :  { %v2302_v55 = vpop.f32.mrb[57].mxu1 }
0x10cd   :  { %v3645_v47 = vpop.f32.mrb[58].mxu1 }
0x10ce   :  { %v3764_v41 = vpack.i.bf16 %v3645_v47, %v3644_v44  ;;  %v2305_v14 = vpop.f32.mrb[59].mxu1  ;;  %v3835_v47 = vld [vmem:[%s5311_s5 + $0x20] sm:$0xff]  }
0x10cf   :  { %v3759_v60 = vpack.i.bf16 %v2305_v14, %v2302_v55  ;;  %v3837_v14 = vld [vmem:[%s5311_s5 + $0x30] sm:$0xff]  }
0x10db   :  { %v3652_v28 = vpop.f32.mrb[60].mxu1 }
0x10dc   :  { %v2371_v19 = vpop.f32.mrb[61].mxu1  ;;  %v2380_v2 = vadd.f32 %v4948_v34, %v3652_v28 }
0x10dd   :  { %v2372_v38 = vadd.f32 %v4954_v40, %v2371_v19  ;;  %v3653_v26 = vpop.f32.mrb[62].mxu1 }
0x10de   :  { %v2374_v27 = vpop.f32.mrb[63].mxu1  ;;  %v2383_v54 = vadd.f32 %v4970_v53, %v3653_v26  ;;  %v2392_v3 = vsel %vm393_vm2, %v2380_v2, -inf }
0x10df   :  { %v2375_v0 = vadd.f32 %v4963_v46, %v2374_v27  ;;  %v2386_v13 = vsel %vm393_vm2, %v2372_v38, -inf }
0x10e0   :  { %2387 = vmax.xlane.f32.xlu0 %v2386_v13  ;;  %v2395_v52 = vsel %vm393_vm2, %v2383_v54, -inf }
0x10e1   :  { %v2389_v18 = vsel %vm393_vm2, %v2375_v0, -inf }
0x10e2   :  { %2390 = vmax.xlane.f32.xlu1 %v2389_v18 }
0x10e4   :  { %2393 = vmax.xlane.f32.xlu0 %v2392_v3 }
0x10e8   :  { %2396 = vmax.xlane.f32.xlu0 %v2395_v52 }
0x116d   :  { %v2388_v40 = vpop.xlane.xlu0 %2387 }
0x116e   :  { %v2398_v43 = vsub.f32 %v2372_v38, %v2388_v40 }
0x116f   :  { %v2391_v16 = vpop.xlane.xlu1 %2390 }
0x1170   :  { %v2402_v46 = vmul.f32 1.442695, %v2398_v43  ;;  %v2399_v12 = vsub.f32 %v2375_v0, %v2391_v16 }
0x1171   :  { %v2394_v34 = vpop.xlane.xlu0 %2393 }
0x1172   :  { %v2400_v9 = vsub.f32 %v2380_v2, %v2394_v34  ;;  %v2404_v23 = vmul.f32 1.442695, %v2399_v12 }
0x1174   :  { %v2406_v7 = vmul.f32 1.442695, %v2400_v9 }
0x1175   :  { %v2397_v62 = vpop.xlane.xlu0 %2396 }
0x1176   :  { %4007 = vpow2.f32 %v2406_v7  ;;  %v2401_v21 = vsub.f32 %v2383_v54, %v2397_v62 }
0x1177   :  { %4009 = vpow2.f32 %v2402_v46 }
0x1178   :  { %v2408_v53 = vmul.f32 1.442695, %v2401_v21 }
0x117a   :  { %4011 = vpow2.f32 %v2408_v53 }
0x117b   :  { %4013 = vpow2.f32 %v2404_v23 }
0x1180   :  { %v4008_v61 = vpop.eup %4007 }
0x1181   :  { %v2416_v5 = vsel %vm393_vm2, %v4008_v61, 0.0  ;;  %v4010_v29 = vpop.eup %4009 }
0x1182   :  { %2417 = vadd.xlane.f32.xlu0 %v2416_v5  ;;  %v2410_v11 = vsel %vm393_vm2, %v4010_v29, 0.0 }
0x1184   :  { %v4012_v22 = vpop.eup %4011 }
0x1185   :  { %v2419_v30 = vsel %vm393_vm2, %v4012_v22, 0.0  ;;  %v4014_v32 = vpop.eup %4013 }
0x1186   :  { %2411 = vadd.xlane.f32.xlu0 %v2410_v11  ;;  %2420 = vadd.xlane.f32.xlu1 %v2419_v30  ;;  %v2413_v37 = vsel %vm393_vm2, %v4014_v32, 0.0 }
0x118a   :  { %2414 = vadd.xlane.f32.xlu1 %v2413_v37 }
0x119b   :  { %2434 = vrot.lane.b32.xlu1 %v4907_v8, %s4192_s20 }
0x119c   :  { %2432 = vrot.lane.b32.xlu0 %v4895_v4, %s4192_s20 }
0x119f   :  { %3750 = vrot.lane.b32.xlu1 %v3749_v63, %s4181_s30 }
0x11a0   :  { %3760 = vrot.lane.b32.xlu0 %v3759_v60, %s4191_s7  ;;  %v3838_v60 = vld [vmem:[%s5311_s5 + $0x38] sm:$0xff]  }
0x11a3   :  { %3755 = vrot.lane.b32.xlu1 %v3754_v51, %s4181_s30 }
0x11a7   :  { %3765 = vrot.lane.b32.xlu1 %v3764_v41, %s4191_s7  ;;  %v3836_v41 = vld [vmem:[%s5311_s5 + $0x28] sm:$0xff]  }
0x120f   :  { %v2418_v57 = vpop.xlane.xlu0 %2417 }
0x1213   :  { %v2421_v1 = vpop.xlane.xlu1 %2420  ;;  %v2412_v6 = vpop.xlane.xlu0 %2411 }
0x1214   :  { %4015 = vrcp.f32 %v2421_v1 }
0x1215   :  { %4017 = vrcp.f32 %v2412_v6 }
0x1216   :  { %4019 = vrcp.f32 %v2418_v57 }
0x1217   :  { %v2415_v17 = vpop.xlane.xlu1 %2414  ;;  %v2433_v31 = vpop.permute.xlu0 %2432 }
0x1218   :  { %4021 = vrcp.f32 %v2415_v17  ;;  %3654 = vmatprep.subr.bf16.mxu0 %v2433_v31  ;;  %v3305_v17 = vld [vmem:[#allocation7 + $0x1] ss:$0 sm:$0xff] }
0x1219   :  { %3655 = vmatpush3.bf16.msra.mxu0 %v2433_v31 }
0x121b   :  { %v2435_v4 = vpop.permute.xlu1 %2434  ;;  %v3761_v52 = vpop.permute.xlu0 %3760 }
0x121c   :  { %3656 = vmatprep.subr.bf16.mxu0 %v2435_v4  ;;  %v3763_v9 = vunpack.i.h.bf16 %v3761_v52  ;;  %v3762_v46 = vunpack.i.l.bf16 %v3761_v52  ;;  %v3851_v52 = vld [vmem:[%s5317_s11 + $0xc0] sm:$0xff]  }
0x121d   :  { %3657 = vmatpush3.bf16.msra.mxu0 %v2435_v4 }
0x121e   :  { %v4016_v8 = vpop.eup %4015  ;;  %3662 = vmatprep.subr.bf16.mxu0 %v3835_v47 }
0x121f   :  { %v4018_v20 = vpop.eup %4017  ;;  %v2429_v50 = vmul.f32 %v4016_v8, %v4012_v22  ;;  %v3751_v0 = vpop.permute.xlu1 %3750 }
0x1220   :  { %v4020_v48 = vpop.eup %4019  ;;  %v2426_v51 = vmul.f32 %v4018_v20, %v4010_v29  ;;  %v3753_v54 = vunpack.i.h.bf16 %v3751_v0  ;;  %v3752_v3 = vunpack.i.l.bf16 %v3751_v0  ;;  %v3842_v0 = vld [vmem:[%s5315_s9 + $0x50] ss:$8 sps:$4 sm:$0xff]  }
0x1221   :  { %v2428_v63 = vmul.f32 %v4020_v48, %v4008_v61 }
0x1222   :  { %v4022_v15 = vpop.eup %4021  ;;  %v2542_v12 = vsel %vm331_vm1, %v5096_v35, %v3753_v54  ;;  %v2541_v7 = vsel %vm331_vm1, %v5092_v33, %v3752_v3  ;;  %v3850_v54 = vld [vmem:[%s5315_s9 + $0x74] ss:$8 sps:$4 sm:$0xff]   ;;  %v3848_v3 = vld [vmem:[%s5315_s9 + $0x70] ss:$8 sps:$4 sm:$0xff]  }
0x1223   :  { %v2427_v10 = vmul.f32 %v4022_v15, %v4014_v32  ;;  %v2431_v55 = vpack.c.bf16 %v2429_v50, %v2428_v63  ;;  %v3756_v13 = vpop.permute.xlu1 %3755  ;;  %v2545_v32 = vsel %vm393_vm2, %v2541_v7, %v3762_v46  ;;  %v3857_v46 = vld [vmem:[%s5317_s11 + $0xd8] sm:$0xff]   ;;  %v3859_v7 = vld [vmem:[%s5317_s11 + $0xe0] sm:$0xff]  }
0x1224   :  { %v3758_v40 = vunpack.i.h.bf16 %v3756_v13  ;;  %v3757_v43 = vunpack.i.l.bf16 %v3756_v13  ;;  %v3847_v13 = vld [vmem:[%s5315_s9 + $0x64] ss:$8 sps:$4 sm:$0xff]  }
0x1225   :  { %v2430_v44 = vpack.c.bf16 %v2427_v10, %v2426_v51 }
0x1226   :  { %v2544_v21 = vsel %vm331_vm1, %v5094_v45, %v3758_v40  ;;  %v2543_v23 = vsel %vm331_vm1, %v5090_v25, %v3757_v43  ;;  %v2546_v45 = vsel %vm393_vm2, %v2542_v12, %v3763_v9  ;;  %v3852_v40 = vld [vmem:[%s5317_s11 + $0x80] sm:$0xff]   ;;  %v3853_v43 = vld [vmem:[%s5317_s11 + $0xc8] sm:$0xff]   ;;  %v3856_v9 = vld [vmem:[%s5317_s11 + $0x90] sm:$0xff]  }
0x1227   :  { %3658 = vmatprep.mubr.msk.bf16.mxu0 %vm393_vm2, %v2430_v44  ;;  %v3766_v18 = vpop.permute.xlu1 %3765  ;;  %v3858_v12 = vld [vmem:[%s5317_s11 + $0x98] sm:$0xff]  }
0x1228   :  { %3659 = vmatmul.mubr.msk.bf16.vlgmr.msra.gmra.mrb[32].mxu0 %vm393_vm2, %v2431_v55  ;;  %v3768_v16 = vunpack.i.h.bf16 %v3766_v18  ;;  %v3767_v34 = vunpack.i.l.bf16 %v3766_v18  ;;  %v3845_v18 = vld [vmem:[%s5315_s9 + $0x60] ss:$8 sps:$4 sm:$0xff]  }
0x1229   :  { %3663 = vmatpush3.bf16.msra.mxu0 %v3835_v47 }
0x122a   :  { %3664 = vmatprep.subr.bf16.mxu0 %v3836_v41  ;;  %v2547_v29 = vsel %vm393_vm2, %v2543_v23, %v3767_v34  ;;  %v2548_v22 = vsel %vm393_vm2, %v2544_v21, %v3768_v16  ;;  %v3854_v16 = vld [vmem:[%s5317_s11 + $0x88] sm:$0xff]   ;;  %v3855_v34 = vld [vmem:[%s5317_s11 + $0xd0] sm:$0xff]  }
0x122b   :  { %v3861_v21 = vld [vmem:[%s5317_s11 + $0xe8] sm:$0xff]  }
0x122d   :  { %3665 = vmatpush3.bf16.msra.mxu0 %v3836_v41 }
0x122e   :  { %3666 = vmatprep.subr.bf16.mxu0 %v3837_v14 }
0x1231   :  { %3667 = vmatpush3.bf16.msra.mxu0 %v3837_v14 }
0x1232   :  { %3668 = vmatprep.subr.bf16.mxu0 %v3838_v60 }
0x1235   :  { %3669 = vmatpush3.bf16.msra.mxu0 %v3838_v60 }
0x1236   :  { %3488 = vmatprep.subr.bf16.mxu0 %v3851_v52 }
0x12fb   :  { %v3660_v28 = vpop.f32.mrb[32].mxu0 }
0x12fc   :  { %v2478_v19 = vpop.f32.mrb[33].mxu0 }
0x12fd   :  { %v3661_v38 = vpop.f32.mrb[34].mxu0 }
0x12fe   :  { %v3774_v26 = vpack.i.bf16 %v3661_v38, %v3660_v28  ;;  %v2481_v27 = vpop.f32.mrb[35].mxu0 }
0x12ff   :  { %v3769_v2 = vpack.i.bf16 %v2481_v27, %v2478_v19  ;;  %v3839_v27 = vld [vmem:[%s5315_s9 + $0x40] ss:$8 sps:$4 sm:$0xff]  }
0x1300   :  { %3775 = vrot.lane.b32.xlu1 %v3774_v26, %s4187_s16  ;;  %v3841_v26 = vld [vmem:[%s5315_s9 + $0x44] ss:$8 sps:$4 sm:$0xff]  }
0x1301   :  { %3770 = vrot.lane.b32.xlu0 %v3769_v2, %s4187_s16  ;;  %2813 = vmatprep.subr.bf16.mxu1 %v3841_v26  ;;  %v3844_v2 = vld [vmem:[%s5315_s9 + $0x54] ss:$8 sps:$4 sm:$0xff]   ;;  %v3307_v26 = vld [vmem:[#allocation10 + $0x1] ss:$0 sm:$0xff] }
0x1302   :  { %2814 = vmatpush1.bf16.msra.mxu1 %v3839_v27 }
0x1303   :  { %2815 = vmatprep.subr.bf16.mxu1 %v3844_v2 }
0x1306   :  { %2816 = vmatpush1.bf16.msra.mxu1 %v3842_v0 }
0x1307   :  { %2817 = vmatprep.subr.bf16.mxu1 %v3847_v13 }
0x130a   :  { %2818 = vmatpush1.bf16.msra.mxu1 %v3845_v18 }
0x130b   :  { %2819 = vmatprep.subr.bf16.mxu1 %v3850_v54 }
0x130e   :  { %2820 = vmatpush1.bf16.msra.mxu1 %v3848_v3 }
0x1372   :  { %v3776_v62 = vpop.permute.xlu1 %3775 }
0x1373   :  { %v3778_v53 = vunpack.i.h.bf16 %v3776_v62  ;;  %v3777_v61 = vunpack.i.l.bf16 %v3776_v62  ;;  %v3771_v5 = vpop.permute.xlu0 %3770  ;;  %v3860_v62 = vld [vmem:[%s5317_s11 + $0xa0] sm:$0xff]  }
0x1374   :  { %v3773_v11 = vunpack.i.h.bf16 %v3771_v5  ;;  %v3772_v30 = vunpack.i.l.bf16 %v3771_v5 }
0x1375   :  { %v2552_v35 = vsel %vm1081_vm3, %v2548_v22, %v3778_v53  ;;  %v2551_v33 = vsel %vm1081_vm3, %v2547_v29, %v3777_v61 }
0x1376   :  { %v2554_v37 = vpack.c.bf16 %v2552_v35, %v2551_v33  ;;  %v2549_v25 = vsel %vm1081_vm3, %v2545_v32, %v3772_v30  ;;  %v2550_v57 = vsel %vm1081_vm3, %v2546_v45, %v3773_v11 }
0x1377   :  { %v2553_v1 = vpack.c.bf16 %v2550_v57, %v2549_v25 }
0x1379   :  { %3670 = vmatprep.mubr.msk.bf16.mxu0 %vm130_vm0, %v2553_v1 }
0x137a   :  { %3671 = vmatmul.mubr.msk.bf16.vlgmr.msra.gmra.mrb[36].mxu0 %vm130_vm0, %v2554_v37 }
0x137b   :  { %3489 = vmatpush3.bf16.msra.mxu0 %v3852_v40 }
0x137c   :  { %3490 = vmatprep.subr.bf16.mxu0 %v3853_v43 }
0x137f   :  { %3491 = vmatpush3.bf16.msra.mxu0 %v3854_v16 }
0x1380   :  { %3492 = vmatprep.subr.bf16.mxu0 %v3855_v34 }
0x1383   :  { %3493 = vmatpush3.bf16.msra.mxu0 %v3856_v9 }
0x1384   :  { %3494 = vmatprep.subr.bf16.mxu0 %v3857_v46 }
0x1387   :  { %3495 = vmatpush3.bf16.msra.mxu0 %v3858_v12  ;;  %v3862_v12 = vld [vmem:[%s5317_s11 + $0xa8] sm:$0xff]  }
0x1388   :  { %3496 = vmatprep.subr.bf16.mxu0 %v3859_v7  ;;  %v3863_v7 = vld [vmem:[%s5317_s11 + $0xf0] sm:$0xff]  }
0x138b   :  { %3497 = vmatpush3.bf16.msra.mxu0 %v3860_v62  ;;  %v3864_v62 = vld [vmem:[%s5317_s11 + $0xb0] sm:$0xff]  }
0x138c   :  { %3498 = vmatprep.subr.bf16.mxu0 %v3861_v21  ;;  %v3866_v21 = vld [vmem:[%s5317_s11 + $0xb8] sm:$0xff]  }
0x138f   :  { %3499 = vmatpush3.bf16.msra.mxu0 %v3862_v12 }
0x1390   :  { %3500 = vmatprep.subr.bf16.mxu0 %v3863_v7 }
0x1393   :  { %3501 = vmatpush3.bf16.msra.mxu0 %v3864_v62 }
0x144d   :  { %v3672_v6 = vpop.f32.mrb[36].mxu0 }
0x144e   :  { %v2628_v31 = vpop.f32.mrb[37].mxu0  ;;  %v2645_v55 = vadd.f32 %v3672_v6, %v4846_v49 }
0x144f   :  { %v2643_v4 = vadd.f32 %v2628_v31, %v4831_v36  ;;  %v3673_v8 = vpop.f32.mrb[38].mxu0 }
0x1450   :  { %v2631_v20 = vpop.f32.mrb[39].mxu0  ;;  %v2646_v15 = vadd.f32 %v3673_v8, %v4850_v56  ;;  %v5175_v14 = vadd.f32 %v3305_v17, %v2645_v55 }
0x1451   :  { %v5153_v48 = vadd.f32 %v3305_v17, %v2643_v4  ;;  %v2644_v50 = vadd.f32 %v2631_v20, %v4834_v39 }
0x1452   :  { %v5163_v44 = vadd.f32 %v3305_v17, %v2646_v15  ;;  %v2669_v28 = vsel %vm130_vm0, %v5175_v14, 0.0  ;;  %v2681_v19 = vmul.f32 %v5175_v14, %v5175_v14 }
0x1453   :  { %v5157_v51 = vadd.f32 %v3305_v17, %v2644_v50  ;;  %v2663_v10 = vsel %vm130_vm0, %v5153_v48, 0.0  ;;  %v2679_v63 = vmul.f32 %v5153_v48, %v5153_v48 }
0x1454   :  { %2664 = vadd.xlane.f32.xlu0 %v2663_v10  ;;  %v2672_v47 = vsel %vm130_vm0, %v5163_v44, 0.0  ;;  %v2682_v41 = vmul.f32 %v5163_v44, %v5163_v44  ;;  %v2689_v38 = vsel %vm130_vm0, %v2681_v19, 0.0 }
0x1455   :  { %v2666_v36 = vsel %vm130_vm0, %v5157_v51, 0.0  ;;  %v2683_v56 = vsel %vm130_vm0, %v2679_v63, 0.0  ;;  %v2680_v39 = vmul.f32 %v5157_v51, %v5157_v51 }
0x1456   :  { %2667 = vadd.xlane.f32.xlu1 %v2666_v36  ;;  %v2692_v49 = vsel %vm130_vm0, %v2682_v41, 0.0  ;;  %v3306_v41 = vld [vmem:[#allocation8 + $0x1] ss:$0 sm:$0xff] }
0x1457   :  { %v2686_v60 = vsel %vm130_vm0, %v2680_v39, 0.0 }
0x1458   :  { %2684 = vadd.xlane.f32.xlu0 %v2683_v56 }
0x145a   :  { %2673 = vadd.xlane.f32.xlu1 %v2672_v47 }
0x145c   :  { %2687 = vadd.xlane.f32.xlu0 %v2686_v60 }
0x145e   :  { %2693 = vadd.xlane.f32.xlu1 %v2692_v49 }
0x1460   :  { %2670 = vadd.xlane.f32.xlu0 %v2669_v28 }
0x1464   :  { %2690 = vadd.xlane.f32.xlu0 %v2689_v38 }
0x14e1   :  { %v2665_v23 = vpop.xlane.xlu0 %2664 }
0x14e2   :  { %v2675_v53 = vmul.f32 0.015625, %v2665_v23  ;;  %v3316_v23 = vld [vmem:[%s5316_s10 + $0x2] sm:$0x3] }
0x14e3   :  { %v2668_v61 = vpop.xlane.xlu1 %2667 }
0x14e4   :  { %v2699_v29 = vmul.f32 %v2675_v53, %v2675_v53  ;;  %v2676_v22 = vmul.f32 0.015625, %v2668_v61  ;;  %v2707_v55 = vsub.f32 %v5153_v48, %v2675_v53  ;;  %v2760_v53 = vrot.slane %v3316_v23, %v1286_v58 }
0x14e5   :  { %v2685_v5 = vpop.xlane.xlu0 %2684  ;;  %v2764_v61 = vrot.slane %v3316_v23, %v1290_v59 }
0x14e6   :  { %v2695_v11 = vmul.f32 0.015625, %v2685_v5  ;;  %v2700_v45 = vmul.f32 %v2676_v22, %v2676_v22  ;;  %v2708_v60 = vsub.f32 %v5157_v51, %v2676_v22 }
0x14e7   :  { %v2674_v30 = vpop.xlane.xlu1 %2673 }
0x14e8   :  { %v2703_v35 = vsub.f32 %v2695_v11, %v2699_v29  ;;  %v2678_v33 = vmul.f32 0.015625, %v2674_v30 }
0x14e9   :  { %v2688_v32 = vpop.xlane.xlu0 %2687 }
0x14ea   :  { %v2711_v37 = vadd.f32 1e-05, %v2703_v35  ;;  %v2696_v25 = vmul.f32 0.015625, %v2688_v32  ;;  %v2702_v1 = vmul.f32 %v2678_v33, %v2678_v33  ;;  %v2710_v27 = vsub.f32 %v5163_v44, %v2678_v33 }
0x14eb   :  { %v2694_v57 = vpop.xlane.xlu1 %2693 }
0x14ec   :  { %4023 = vrsqrt.f32 %v2711_v37  ;;  %v2704_v6 = vsub.f32 %v2696_v25, %v2700_v45  ;;  %v2698_v17 = vmul.f32 0.015625, %v2694_v57 }
0x14ed   :  { %v2671_v31 = vpop.xlane.xlu0 %2670 }
0x14ee   :  { %v2712_v4 = vadd.f32 1e-05, %v2704_v6  ;;  %v2706_v8 = vsub.f32 %v2698_v17, %v2702_v1  ;;  %v2677_v20 = vmul.f32 0.015625, %v2671_v31 }
0x14f0   :  { %4025 = vrsqrt.f32 %v2712_v4  ;;  %v2714_v15 = vadd.f32 1e-05, %v2706_v8  ;;  %v2701_v10 = vmul.f32 %v2677_v20, %v2677_v20  ;;  %v2709_v54 = vsub.f32 %v5175_v14, %v2677_v20 }
0x14f1   :  { %v2691_v50 = vpop.xlane.xlu0 %2690 }
0x14f2   :  { %4027 = vrsqrt.f32 %v2714_v15  ;;  %v2697_v63 = vmul.f32 0.015625, %v2691_v50 }
0x14f4   :  { %v2705_v36 = vsub.f32 %v2697_v63, %v2701_v10 }
0x14f6   :  { %v4024_v56 = vpop.eup %4023  ;;  %v2713_v39 = vadd.f32 1e-05, %v2705_v36 }
0x14f7   :  { %v2719_v47 = vmul.f32 %v4024_v56, %v2707_v55  ;;  %v3867_v56 = vld [vmem:[%s5319_s13] sm:$0xff]  }
0x14f8   :  { %4029 = vrsqrt.f32 %v2713_v39  ;;  %3674 = vmatprep.subr.bf16.mxu1 %v3867_v56  ;;  %v3868_v39 = vld [vmem:[%s5319_s13 + $0x8] sm:$0xff]  }
0x14f9   :  { %v2729_v19 = vmul.f32 %v3306_v41, %v2719_v47  ;;  %v3869_v47 = vld [vmem:[%s5319_s13 + $0x10] sm:$0xff]  }
0x14fa   :  { %v4026_v49 = vpop.eup %4025 }
0x14fb   :  { %v2720_v28 = vmul.f32 %v4026_v49, %v2708_v60  ;;  %v2739_v0 = vadd.f32 %v3307_v26, %v2729_v19 }
0x14fc   :  { %v4028_v38 = vpop.eup %4027 }
0x14fd   :  { %v2730_v2 = vmul.f32 %v3306_v41, %v2720_v28  ;;  %v2722_v18 = vmul.f32 %v4028_v38, %v2710_v27 }
0x14ff   :  { %v2740_v13 = vadd.f32 %v3307_v26, %v2730_v2  ;;  %v2732_v43 = vmul.f32 %v3306_v41, %v2722_v18  ;;  %v3376_v2 = vld [vmem:[%s5318_s12 + $0x1] ss:$0 sm:$0xff] }
0x1501   :  { %v2743_v3 = vpack.c.bf16 %v2740_v13, %v2739_v0  ;;  %v2742_v9 = vadd.f32 %v3307_v26, %v2732_v43 }
0x1502   :  { %v4030_v52 = vpop.eup %4029 }
0x1503   :  { %3325 = vmatmul.mubr.msk.bf16.vlgmr.msra.gmra.mrb[64].mxu1 %vm130_vm0, %v2743_v3  ;;  %v2721_v40 = vmul.f32 %v4030_v52, %v2709_v54 }
0x1504   :  { %2855 = vmatprep.mubr.bf16.mxu1 %v4186_v24  ;;  %v3865_v24 = vld [vmem:[%s5317_s11 + $0xf8] sm:$0xff]   ;;  %3675 = vmatpush3.bf16.msra.mxu1 %v3867_v56 }
0x1505   :  { %v2731_v16 = vmul.f32 %v3306_v41, %v2721_v40  ;;  %3502 = vmatprep.subr.bf16.mxu0 %v3865_v24  ;;  %3676 = vmatprep.subr.bf16.mxu1 %v3868_v39  ;;  %v3870_v41 = vld [vmem:[%s5319_s13 + $0x18] sm:$0xff]  }
0x1506   :  { %3503 = vmatpush3.bf16.msra.mxu0 %v3866_v21 }
0x1507   :  { %v2741_v34 = vadd.f32 %v3307_v26, %v2731_v16 }
0x1508   :  { %3677 = vmatpush3.bf16.msra.mxu1 %v3868_v39 }
0x1509   :  { %v2744_v46 = vpack.c.bf16 %v2742_v9, %v2741_v34  ;;  %3678 = vmatprep.subr.bf16.mxu1 %v3869_v47 }
0x150b   :  { %3326 = vmatmul.mubr.msk.bf16.gmra.mrb[68].mxu1 %vm130_vm0, %v2744_v46 }
0x150c   :  { %3679 = vmatpush3.bf16.msra.mxu1 %v3869_v47 }
0x150d   :  { %3680 = vmatprep.subr.bf16.mxu1 %v3870_v41 }
0x1510   :  { %3681 = vmatpush3.bf16.msra.mxu1 %v3870_v41 }
0x15d6   :  { %v2847_v5 = vpop.f32.mrb[64].mxu1 }
0x15d7   :  { %v2848_v29 = vadd.f32 %v2847_v5, %v2760_v53  ;;  %v2849_v22 = vpop.f32.mrb[65].mxu1 }
0x15d8   :  { %v2850_v11 = vadd.f32 %v2849_v22, %v2764_v61  ;;  %v2851_v30 = vpop.f32.mrb[66].mxu1 }
0x15d9   :  { %v2852_v35 = vadd.f32 %v2851_v30, %v2760_v53  ;;  %v2853_v33 = vpop.f32.mrb[67].mxu1  ;;  %v2866_v45 = vmax.f32 %v2848_v29, 0.0 }
0x15da   :  { %v2854_v32 = vadd.f32 %v2853_v33, %v2764_v61  ;;  %v2867_v25 = vmax.f32 %v2850_v11, 0.0 }
0x15db   :  { %v2868_v37 = vmax.f32 %v2852_v35, 0.0 }
0x15dc   :  { %v2869_v57 = vmax.f32 %v2854_v32, 0.0 }
0x15dd   :  { %v2874_v1 = vpack.c.bf16 %v2868_v37, %v2866_v45 }
0x15de   :  { %v2875_v6 = vpack.c.bf16 %v2869_v57, %v2867_v25  ;;  %v2857_v17 = vpop.f32.mrb[68].mxu1 }
0x15df   :  { %v2858_v31 = vadd.f32 %v2857_v17, %v2760_v53  ;;  %v2859_v58 = vpop.f32.mrb[69].mxu1 }
0x15e0   :  { %v2860_v4 = vadd.f32 %v2859_v58, %v2764_v61  ;;  %v2861_v42 = vpop.f32.mrb[70].mxu1  ;;  %3039 = vmatprep.mubr.bf16.mxu0 %v2875_v6 }
0x15e1   :  { %v2862_v59 = vadd.f32 %v2861_v42, %v2760_v53  ;;  %v2863_v8 = vpop.f32.mrb[71].mxu1  ;;  %3040 = vmatmul.mubr.bf16.vlgmr.msra.gmra.mrb[40].mxu0 %v2874_v1  ;;  %v2870_v15 = vmax.f32 %v2858_v31, 0.0 }
0x15e2   :  { %v2864_v20 = vadd.f32 %v2863_v8, %v2764_v61  ;;  %v2871_v10 = vmax.f32 %v2860_v4, 0.0 }
0x15e3   :  { %v2872_v50 = vmax.f32 %v2862_v59, 0.0 }
0x15e4   :  { %v2873_v63 = vmax.f32 %v2864_v20, 0.0 }
0x15e5   :  { %v2876_v36 = vpack.c.bf16 %v2872_v50, %v2870_v15 }
0x15e6   :  { %v2877_v55 = vpack.c.bf16 %v2873_v63, %v2871_v10 }
0x15e8   :  { %3047 = vmatprep.mubr.bf16.mxu0 %v2877_v55 }
0x15e9   :  { %3048 = vmatmul.mubr.bf16.gmra.mrb[44].mxu0 %v2876_v36 }
0x16b4   :  { %v3504_v60 = vpop.f32.mrb[40].mxu0 }
0x16b5   :  { %v3505_v49 = vpop.f32.mrb[41].mxu0 }
0x16b6   :  { %v3506_v28 = vadd.f32 %v3505_v49, %v3504_v60  ;;  %v3507_v19 = vpop.f32.mrb[42].mxu0 }
0x16b7   :  { %v3508_v38 = vpop.f32.mrb[43].mxu0 }
0x16b8   :  { %v3056_v26 = vadd.f32 %v3506_v28, %v5153_v48  ;;  %v3509_v27 = vadd.f32 %v3508_v38, %v3507_v19 }
0x16ba   :  { %v3057_v0 = vadd.f32 %v3509_v27, %v5157_v51  ;;  %v3068_v13 = vadd.f32 %v3376_v2, %v3056_v26  ;;  %v3377_v51 = vld [vmem:[%s5320_s14] ss:$0 sm:$0xff] }
0x16bc   :  { %v3069_v18 = vadd.f32 %v3376_v2, %v3057_v0  ;;  %v3510_v54 = vpop.f32.mrb[44].mxu0 }
0x16bd   :  { %v3511_v3 = vpop.f32.mrb[45].mxu0 }
0x16be   :  { %v3072_v52 = vpack.c.bf16 %v3069_v18, %v3068_v13  ;;  %v3512_v40 = vadd.f32 %v3511_v3, %v3510_v54  ;;  %v3513_v43 = vpop.f32.mrb[46].mxu0 }
0x16bf   :  { %v3514_v16 = vpop.f32.mrb[47].mxu0 }
0x16c0   :  { %v3058_v34 = vadd.f32 %v3512_v40, %v5175_v14  ;;  %v3515_v9 = vadd.f32 %v3514_v16, %v3513_v43  ;;  %3682 = vmatprep.mubr.msk.bf16.mxu1 %vm130_vm0, %v3072_v52 }
0x16c2   :  { %v3059_v48 = vadd.f32 %v3515_v9, %v5163_v44  ;;  %v3070_v46 = vadd.f32 %v3376_v2, %v3058_v34 }
0x16c4   :  { %v3071_v12 = vadd.f32 %v3376_v2, %v3059_v48 }
0x16c6   :  { %v3073_v7 = vpack.c.bf16 %v3071_v12, %v3070_v46 }
0x16c8   :  { %3683 = vmatmul.mubr.msk.bf16.vlgmr.msra.gmra.mrb[72].mxu1 %vm130_vm0, %v3073_v7 }
0x179b   :  { %v3684_v62 = vpop.f32.mrb[72].mxu1 }
0x179c   :  { %v3162_v24 = vadd.f32 %v3684_v62, %v3377_v51  ;;  %v3153_v21 = vpop.f32.mrb[73].mxu1 }
0x179d   :  { %v3154_v14 = vadd.f32 %v3377_v51, %v3153_v21  ;;  %v3685_v23 = vpop.f32.mrb[74].mxu1 }
0x179e   :  { %3170 = vst [vmem:[#allocation11 + $0x10] sm:$0xff] %v3162_v24  ;;  %v3165_v53 = vadd.f32 %v3685_v23, %v3377_v51  ;;  %v3156_v61 = vpop.f32.mrb[75].mxu1 }
0x179f   :  { %3168 = vst [vmem:[#allocation11] sm:$0xff] %v3154_v14  ;;  %v3157_v44 = vadd.f32 %v3377_v51, %v3156_v61 }
0x17a0   :  { %3171 = vst [vmem:[#allocation11 + $0x18] sm:$0xff] %v3165_v53 }
0x17a1   :  { %3169 = vst [vmem:[#allocation11 + $0x8] sm:$0xff] %v3157_v44 }
0x17a2   :  { %4160 = shalt.err (!%p4157_p2)
}
0x17a3   :  { %s4161_s0 = scalar_lea.hbm %s5321_s15, 512 }
0x17a4   :  { %p4162_p3 = scmp.ne.s32.totalorder %s5321_s15, %s4161_s0  ;;  %p4165_p4 = scmp.lt.u32.totalorder %s4161_s0, %s5321_s15 }
0x17a6   :  { %p4167_p5 = pnand %p4165_p4, %p4162_p3 }
0x17a8   :  { %4170 = shalt.err (!%p4167_p5)
}
0x17a9   :  { %s4194_s30 = smov 128   ;;  %s4195_s27 = smov 8  }
0x17aa   :  { %3183 = dma.vmem_to_hbm [thread:$0]  %s3178_s17, 512, %s5321_s15, [#allocation4], %s4194_s30, %s4194_s30, %s4195_s27  }
0x17ab   :  { %4177 = dma.done.wait [#allocation4], 512  }
0x17ac   :  { %4178 = vsyncadd [#allocation4], 4294966784 }
0x17ad   :  { %3187 = vsyncpa [#allocation3], 1 }
0x17ae   :  { %3188 = vsyncpa [#allocation6], 1 }
0x17af   :  { %3189 = vsyncpa [#allocation9], 1 }
0x17b0   :  { %3190 = vsyncpa [#allocation4], 1 }

</bundles_post_ra>
